<compile_context>
chip_gen: v7x
topology: tpu7x:2x2x1
jax: 0.10.0
libtpu: 0.0.40
codegen_flags: <defaults>
</compile_context>

<pallas_src>
import functools

import jax
import jax.numpy as jnp
from jax import lax
from jax.experimental import pallas as pl
from jax.experimental.pallas import tpu as pltpu


LANE = 128      # pad all Cout (and layer-2 Cin) to full lane width
SUBLANE = 8     # pad layer-1 Cin to a sublane multiple


# ----------------------------------------------------------------------------
# Fused kernel: conv3x3(s=1,p=1) + bias + ReLU  ->  conv3x3(s=2,p=1) + bias + ReLU
# Everything is done in "parity space" so all slices are contiguous.
#
#   xpp_ref : (4, gh+1, gw+1, cin1p)  parity planes of the padded input image
#   w1_ref  : (3, 3, cin1p, LANE)     layer-1 weights (Cin, Cout zero-padded)
#   b1_ref  : (1, LANE)
#   w2_ref  : (3, 3, LANE, LANE)      layer-2 weights (Cin, Cout zero-padded)
#   b2_ref  : (1, LANE)
#   o_ref   : (1, gh, gw, LANE)       final feature map (lane-dense)
#   pp_ref  : (4, gh+1, gw+1, LANE)   VMEM scratch: parity planes of the
#                                     zero-padded layer-1 activation
# ----------------------------------------------------------------------------
def _fused_conv_encoder_kernel(xpp_ref, w1_ref, b1_ref, w2_ref, b2_ref,
                               o_ref, pp_ref, *, gh, gw, cin1p, lane):
    m = gh * gw  # rows of each parity-group matmul

    def conv_group(read_plane, w_ref, b_ref, py, px, k):
        # Output-parity group (py, px) of a 3x3 / stride-1 / pad-1 conv,
        # computed as 9 shifted-view accumulated matmuls on the MXU.
        acc = jnp.zeros((m, lane), jnp.float32)
        for i in range(3):
            for j in range(3):
                ri, qi = (py + i) % 2, (py + i) // 2
                rj, qj = (px + j) % 2, (px + j) // 2
                patch = read_plane(ri, rj, qi, qj)            # (gh, gw, k)
                acc += jnp.dot(patch.reshape(m, k), w_ref[i, j],
                               preferred_element_type=jnp.float32)
        return jnp.maximum(acc + b_ref[...], 0.0)             # bias + ReLU

    # ---------------- layer 1: stride 1 -> all four output parity groups ----
    def read_x(ri, rj, qi, qj):
        return xpp_ref[2 * ri + rj, qi:qi + gh, qj:qj + gw, :]

    h = [[None, None], [None, None]]
    for py in range(2):
        for px in range(2):
            h[py][px] = conv_group(read_x, w1_ref, b1_ref, py, px,
                                   cin1p).reshape(gh, gw, lane)

    # --- repack layer-1 parity groups into the parity planes of its
    #     zero-padded (pad=1) activation map, kept entirely in VMEM ----------
    pp_ref[...] = jnp.zeros((4, gh + 1, gw + 1, lane), jnp.float32)
    pp_ref[0, 1:gh + 1, 1:gw + 1, :] = h[1][1]   # plane (row even, col even)
    pp_ref[1, 1:gh + 1, 0:gw, :] = h[1][0]       # plane (row even, col odd)
    pp_ref[2, 0:gh, 1:gw + 1, :] = h[0][1]       # plane (row odd,  col even)
    pp_ref[3, 0:gh, 0:gw, :] = h[0][0]           # plane (row odd,  col odd)

    # ---------------- layer 2: stride 2 == parity group (0, 0) of stride 1 --
    def read_h(ri, rj, qi, qj):
        return pp_ref[2 * ri + rj, qi:qi + gh, qj:qj + gw, :]

    y = conv_group(read_h, w2_ref, b2_ref, 0, 0, lane)         # (m, lane)
    o_ref[...] = y.reshape(1, gh, gw, lane)


# ----------------------------------------------------------------------------
# One-time parameter prep (hoisted out of the per-forward path).
# ----------------------------------------------------------------------------
def prep_conv_encoder_params(params, *, lane=LANE, sublane=SUBLANE):
    (w1, b1), (w2, b2) = params
    f1, c1, kh, kw = w1.shape
    f2, c2, kh2, kw2 = w2.shape
    assert (kh, kw, kh2, kw2) == (3, 3, 3, 3) and c2 == f1
    cin1p = ((c1 + sublane - 1) // sublane) * sublane

    w1t = jnp.transpose(w1, (2, 3, 1, 0))                       # (3,3,c1,f1)
    w1p = jnp.zeros((kh, kw, cin1p, lane), jnp.float32).at[:, :, :c1, :f1].set(w1t)
    b1p = jnp.zeros((1, lane), jnp.float32).at[0, :f1].set(b1)

    w2t = jnp.transpose(w2, (2, 3, 1, 0))                       # (3,3,f1,f2)
    w2p = jnp.zeros((kh, kw, lane, lane), jnp.float32).at[:, :, :f1, :f2].set(w2t)
    b2p = jnp.zeros((1, lane), jnp.float32).at[0, :f2].set(b2)
    return w1p, b1p, w2p, b2p


# ----------------------------------------------------------------------------
# ConvEncoder forward: NCHW in / NCHW out (PyTorch semantics).
# ----------------------------------------------------------------------------
def conv_encoder_forward(x_nchw, prepped, *, final_channels):
    w1p, b1p, w2p, b2p = prepped
    n, cin, hh, ww = x_nchw.shape
    assert hh % 2 == 0 and ww % 2 == 0
    cin1p = w1p.shape[2]
    lane = w1p.shape[3]
    gh, gw = hh // 2, ww // 2

    # NCHW -> NHWC, spatial pad 1, channel pad cin -> cin1p (cheap, tiny tensor)
    x = jnp.transpose(x_nchw, (0, 2, 3, 1))
    x = jnp.pad(x, ((0, 0), (1, 1), (1, 1), (0, cin1p - cin)))   # (n, h+2, w+2, cin1p)

    # Parity decomposition of the padded input:
    #   xpp[4b + 2r + c, p, q, ch] = xpad[b, 2p + r, 2q + c, ch]
    xpp = x.reshape(n, gh + 1, 2, gw + 1, 2, cin1p)
    xpp = xpp.transpose(0, 2, 4, 1, 3, 5)
    xpp = xpp.reshape(n * 4, gh + 1, gw + 1, cin1p)

    kernel = functools.partial(_fused_conv_encoder_kernel,
                               gh=gh, gw=gw, cin1p=cin1p, lane=lane)

    out = pl.pallas_call(
        kernel,
        out_shape=jax.ShapeDtypeStruct((n, gh, gw, lane), jnp.float32),
        grid=(n,),
        in_specs=[
            pl.BlockSpec((4, gh + 1, gw + 1, cin1p), lambda i: (i, 0, 0, 0)),
            pl.BlockSpec(w1p.shape, lambda i: (0, 0, 0, 0)),   # resident weights
            pl.BlockSpec(b1p.shape, lambda i: (0, 0)),
            pl.BlockSpec(w2p.shape, lambda i: (0, 0, 0, 0)),
            pl.BlockSpec(b2p.shape, lambda i: (0, 0)),
        ],
        out_specs=pl.BlockSpec((1, gh, gw, lane), lambda i: (i, 0, 0, 0)),
        scratch_shapes=[pltpu.VMEM((4, gh + 1, gw + 1, lane), jnp.float32)],
        compiler_params=pltpu.CompilerParams(dimension_semantics=("parallel",)),
    )(xpp, w1p, b1p, w2p, b2p)

    out = out[..., :final_channels]              # drop lane padding
    return jnp.transpose(out, (0, 3, 1, 2))      # NHWC -> NCHW


# ----------------------------------------------------------------------------
# Pure-JAX reference (lax.conv) for correctness check
# ----------------------------------------------------------------------------
def conv_encoder_reference(x_nchw, params, strides, paddings):
    x = x_nchw
    for (w, b), s, p in zip(params, strides, paddings):
        y = lax.conv_general_dilated(
            x, w, window_strides=(s, s), padding=[(p, p), (p, p)],
            dimension_numbers=("NCHW", "OIHW", "NCHW"))
        x = jnp.maximum(y + b.reshape(1, -1, 1, 1), 0.0)
    return x


if __name__ == "__main__":
    # ConvConfig: input_size=(4,16,16), kernel_sizes=[3,3], strides=[1,2],
    #             padding=[1,1], num_filters=[8,16], use_bias=True, ReLU, dropout 0.
    in_channels = 4
    num_filters = [8, 16]
    kernel_sizes = [3, 3]
    strides = [1, 2]
    paddings = [1, 1]

    key = jax.random.PRNGKey(0)
    params = []
    cin = in_channels
    for f, ks in zip(num_filters, kernel_sizes):
        key, kw_key, kb_key = jax.random.split(key, 3)
        fan_in = cin * ks * ks
        bound = 1.0 / (fan_in ** 0.5)  # deterministic, PyTorch-style uniform bound
        w = jax.random.uniform(kw_key, (f, cin, ks, ks), jnp.float32, -bound, bound)
        b = jax.random.uniform(kb_key, (f,), jnp.float32, -bound, bound)
        params.append((w, b))
        cin = f

    key, kx = jax.random.split(key)
    x = jax.random.normal(kx, (2, in_channels, 16, 16), jnp.float32)  # NCHW

    prepped = prep_conv_encoder_params(params)   # one-time prep, hoisted
    fwd = jax.jit(functools.partial(conv_encoder_forward,
                                    final_channels=num_filters[-1]))
    out = jax.block_until_ready(fwd(x, prepped))

    ref = conv_encoder_reference(x, params, strides, paddings)
    assert out.shape == (2, num_filters[-1], 8, 8), out.shape
    assert jnp.allclose(out, ref, atol=1e-4, rtol=1e-4), float(jnp.max(jnp.abs(out - ref)))

    print("KERNEL_OK")
</pallas_src>

<mosaic_0001>
module attributes {stable_mosaic.version = 11 : i64} {
  func.func @_fused_conv_encoder_kernel(%arg0: i32, %arg1: memref<4x9x9x8xf32, #tpu.memory_space<vmem>>, %arg2: memref<3x3x8x128xf32, #tpu.memory_space<vmem>>, %arg3: memref<1x128xf32, #tpu.memory_space<vmem>>, %arg4: memref<3x3x128x128xf32, #tpu.memory_space<vmem>>, %arg5: memref<1x128xf32, #tpu.memory_space<vmem>>, %arg6: memref<1x8x8x128xf32, #tpu.memory_space<vmem>>, %arg7: memref<4x9x9x128xf32, #tpu.memory_space<vmem>>) attributes {dimension_semantics = [#tpu.dimension_semantics<parallel>], iteration_bounds = array<i64: 2>, scalar_prefetch = 0 : i64, scratch_operands = 1 : i64, tpu.core_type = #tpu.core_type<tc>, window_params = [{transform_indices = @transform_0, window_bounds = array<i64: 4, 9, 9, 8>}, {pipeline_mode = #tpu.pipeline_mode<synchronous>, transform_indices = @transform_1, window_bounds = array<i64: 3, 3, 8, 128>}, {pipeline_mode = #tpu.pipeline_mode<synchronous>, transform_indices = @transform_2, window_bounds = array<i64: 1, 128>}, {pipeline_mode = #tpu.pipeline_mode<synchronous>, transform_indices = @transform_3, window_bounds = array<i64: 3, 3, 128, 128>}, {pipeline_mode = #tpu.pipeline_mode<synchronous>, transform_indices = @transform_4, window_bounds = array<i64: 1, 128>}, {transform_indices = @transform_5, window_bounds = array<i64: 1, 8, 8, 128>}]} {
    %cst = arith.constant 0.000000e+00 : f32
    %0 = vector.broadcast %cst : f32 to vector<64x128xf32>
    %c0 = arith.constant 0 : index
    %c0_0 = arith.constant 0 : index
    %c0_1 = arith.constant 0 : index
    %c0_2 = arith.constant 0 : index
    %1 = vector.load %arg1[%c0, %c0_0, %c0_1, %c0_2] : memref<4x9x9x8xf32, #tpu.memory_space<vmem>>, vector<1x8x8x8xf32>
    %2 = vector.shape_cast %1 : vector<1x8x8x8xf32> to vector<8x8x8xf32>
    %3 = vector.shape_cast %2 : vector<8x8x8xf32> to vector<64x8xf32>
    %c0_3 = arith.constant 0 : index
    %c0_4 = arith.constant 0 : index
    %c0_5 = arith.constant 0 : index
    %c0_6 = arith.constant 0 : index
    %4 = vector.load %arg2[%c0_3, %c0_4, %c0_5, %c0_6] : memref<3x3x8x128xf32, #tpu.memory_space<vmem>>, vector<1x1x8x128xf32>
    %5 = vector.shape_cast %4 : vector<1x1x8x128xf32> to vector<8x128xf32>
    %cst_7 = arith.constant dense<0.000000e+00> : vector<64x128xf32>
    %6 = tpu.matmul %3, %5, %cst_7 {dimension_numbers = #tpu.dot_dimension_numbers<[1], [0], [0], [1], [0, 0, 1, 1], [], []>} : vector<64x8xf32>, vector<8x128xf32>, vector<64x128xf32> -> vector<64x128xf32>
    %7 = arith.addf %0, %6 : vector<64x128xf32>
    %c1 = arith.constant 1 : index
    %c0_8 = arith.constant 0 : index
    %c0_9 = arith.constant 0 : index
    %c0_10 = arith.constant 0 : index
    %8 = vector.load %arg1[%c1, %c0_8, %c0_9, %c0_10] : memref<4x9x9x8xf32, #tpu.memory_space<vmem>>, vector<1x8x8x8xf32>
    %9 = vector.shape_cast %8 : vector<1x8x8x8xf32> to vector<8x8x8xf32>
    %10 = vector.shape_cast %9 : vector<8x8x8xf32> to vector<64x8xf32>
    %c0_11 = arith.constant 0 : index
    %c1_12 = arith.constant 1 : index
    %c0_13 = arith.constant 0 : index
    %c0_14 = arith.constant 0 : index
    %11 = vector.load %arg2[%c0_11, %c1_12, %c0_13, %c0_14] : memref<3x3x8x128xf32, #tpu.memory_space<vmem>>, vector<1x1x8x128xf32>
    %12 = vector.shape_cast %11 : vector<1x1x8x128xf32> to vector<8x128xf32>
    %cst_15 = arith.constant dense<0.000000e+00> : vector<64x128xf32>
    %13 = tpu.matmul %10, %12, %cst_15 {dimension_numbers = #tpu.dot_dimension_numbers<[1], [0], [0], [1], [0, 0, 1, 1], [], []>} : vector<64x8xf32>, vector<8x128xf32>, vector<64x128xf32> -> vector<64x128xf32>
    %14 = arith.addf %7, %13 : vector<64x128xf32>
    %c0_16 = arith.constant 0 : index
    %c0_17 = arith.constant 0 : index
    %c1_18 = arith.constant 1 : index
    %c0_19 = arith.constant 0 : index
    %15 = vector.load %arg1[%c0_16, %c0_17, %c1_18, %c0_19] : memref<4x9x9x8xf32, #tpu.memory_space<vmem>>, vector<1x8x8x8xf32>
    %16 = vector.shape_cast %15 : vector<1x8x8x8xf32> to vector<8x8x8xf32>
    %17 = vector.shape_cast %16 : vector<8x8x8xf32> to vector<64x8xf32>
    %c0_20 = arith.constant 0 : index
    %c2 = arith.constant 2 : index
    %c0_21 = arith.constant 0 : index
    %c0_22 = arith.constant 0 : index
    %18 = vector.load %arg2[%c0_20, %c2, %c0_21, %c0_22] : memref<3x3x8x128xf32, #tpu.memory_space<vmem>>, vector<1x1x8x128xf32>
    %19 = vector.shape_cast %18 : vector<1x1x8x128xf32> to vector<8x128xf32>
    %cst_23 = arith.constant dense<0.000000e+00> : vector<64x128xf32>
    %20 = tpu.matmul %17, %19, %cst_23 {dimension_numbers = #tpu.dot_dimension_numbers<[1], [0], [0], [1], [0, 0, 1, 1], [], []>} : vector<64x8xf32>, vector<8x128xf32>, vector<64x128xf32> -> vector<64x128xf32>
    %21 = arith.addf %14, %20 : vector<64x128xf32>
    %c2_24 = arith.constant 2 : index
    %c0_25 = arith.constant 0 : index
    %c0_26 = arith.constant 0 : index
    %c0_27 = arith.constant 0 : index
    %22 = vector.load %arg1[%c2_24, %c0_25, %c0_26, %c0_27] : memref<4x9x9x8xf32, #tpu.memory_space<vmem>>, vector<1x8x8x8xf32>
    %23 = vector.shape_cast %22 : vector<1x8x8x8xf32> to vector<8x8x8xf32>
    %24 = vector.shape_cast %23 : vector<8x8x8xf32> to vector<64x8xf32>
    %c1_28 = arith.constant 1 : index
    %c0_29 = arith.constant 0 : index
    %c0_30 = arith.constant 0 : index
    %c0_31 = arith.constant 0 : index
    %25 = vector.load %arg2[%c1_28, %c0_29, %c0_30, %c0_31] : memref<3x3x8x128xf32, #tpu.memory_space<vmem>>, vector<1x1x8x128xf32>
    %26 = vector.shape_cast %25 : vector<1x1x8x128xf32> to vector<8x128xf32>
    %cst_32 = arith.constant dense<0.000000e+00> : vector<64x128xf32>
    %27 = tpu.matmul %24, %26, %cst_32 {dimension_numbers = #tpu.dot_dimension_numbers<[1], [0], [0], [1], [0, 0, 1, 1], [], []>} : vector<64x8xf32>, vector<8x128xf32>, vector<64x128xf32> -> vector<64x128xf32>
    %28 = arith.addf %21, %27 : vector<64x128xf32>
    %c3 = arith.constant 3 : index
    %c0_33 = arith.constant 0 : index
    %c0_34 = arith.constant 0 : index
    %c0_35 = arith.constant 0 : index
    %29 = vector.load %arg1[%c3, %c0_33, %c0_34, %c0_35] : memref<4x9x9x8xf32, #tpu.memory_space<vmem>>, vector<1x8x8x8xf32>
    %30 = vector.shape_cast %29 : vector<1x8x8x8xf32> to vector<8x8x8xf32>
    %31 = vector.shape_cast %30 : vector<8x8x8xf32> to vector<64x8xf32>
    %c1_36 = arith.constant 1 : index
    %c1_37 = arith.constant 1 : index
    %c0_38 = arith.constant 0 : index
    %c0_39 = arith.constant 0 : index
    %32 = vector.load %arg2[%c1_36, %c1_37, %c0_38, %c0_39] : memref<3x3x8x128xf32, #tpu.memory_space<vmem>>, vector<1x1x8x128xf32>
    %33 = vector.shape_cast %32 : vector<1x1x8x128xf32> to vector<8x128xf32>
    %cst_40 = arith.constant dense<0.000000e+00> : vector<64x128xf32>
    %34 = tpu.matmul %31, %33, %cst_40 {dimension_numbers = #tpu.dot_dimension_numbers<[1], [0], [0], [1], [0, 0, 1, 1], [], []>} : vector<64x8xf32>, vector<8x128xf32>, vector<64x128xf32> -> vector<64x128xf32>
    %35 = arith.addf %28, %34 : vector<64x128xf32>
    %c2_41 = arith.constant 2 : index
    %c0_42 = arith.constant 0 : index
    %c1_43 = arith.constant 1 : index
    %c0_44 = arith.constant 0 : index
    %36 = vector.load %arg1[%c2_41, %c0_42, %c1_43, %c0_44] : memref<4x9x9x8xf32, #tpu.memory_space<vmem>>, vector<1x8x8x8xf32>
    %37 = vector.shape_cast %36 : vector<1x8x8x8xf32> to vector<8x8x8xf32>
    %38 = vector.shape_cast %37 : vector<8x8x8xf32> to vector<64x8xf32>
    %c1_45 = arith.constant 1 : index
    %c2_46 = arith.constant 2 : index
    %c0_47 = arith.constant 0 : index
    %c0_48 = arith.constant 0 : index
    %39 = vector.load %arg2[%c1_45, %c2_46, %c0_47, %c0_48] : memref<3x3x8x128xf32, #tpu.memory_space<vmem>>, vector<1x1x8x128xf32>
    %40 = vector.shape_cast %39 : vector<1x1x8x128xf32> to vector<8x128xf32>
    %cst_49 = arith.constant dense<0.000000e+00> : vector<64x128xf32>
    %41 = tpu.matmul %38, %40, %cst_49 {dimension_numbers = #tpu.dot_dimension_numbers<[1], [0], [0], [1], [0, 0, 1, 1], [], []>} : vector<64x8xf32>, vector<8x128xf32>, vector<64x128xf32> -> vector<64x128xf32>
    %42 = arith.addf %35, %41 : vector<64x128xf32>
    %c0_50 = arith.constant 0 : index
    %c1_51 = arith.constant 1 : index
    %c0_52 = arith.constant 0 : index
    %c0_53 = arith.constant 0 : index
    %43 = vector.load %arg1[%c0_50, %c1_51, %c0_52, %c0_53] : memref<4x9x9x8xf32, #tpu.memory_space<vmem>>, vector<1x8x8x8xf32>
    %44 = vector.shape_cast %43 : vector<1x8x8x8xf32> to vector<8x8x8xf32>
    %45 = vector.shape_cast %44 : vector<8x8x8xf32> to vector<64x8xf32>
    %c2_54 = arith.constant 2 : index
    %c0_55 = arith.constant 0 : index
    %c0_56 = arith.constant 0 : index
    %c0_57 = arith.constant 0 : index
    %46 = vector.load %arg2[%c2_54, %c0_55, %c0_56, %c0_57] : memref<3x3x8x128xf32, #tpu.memory_space<vmem>>, vector<1x1x8x128xf32>
    %47 = vector.shape_cast %46 : vector<1x1x8x128xf32> to vector<8x128xf32>
    %cst_58 = arith.constant dense<0.000000e+00> : vector<64x128xf32>
    %48 = tpu.matmul %45, %47, %cst_58 {dimension_numbers = #tpu.dot_dimension_numbers<[1], [0], [0], [1], [0, 0, 1, 1], [], []>} : vector<64x8xf32>, vector<8x128xf32>, vector<64x128xf32> -> vector<64x128xf32>
    %49 = arith.addf %42, %48 : vector<64x128xf32>
    %c1_59 = arith.constant 1 : index
    %c1_60 = arith.constant 1 : index
    %c0_61 = arith.constant 0 : index
    %c0_62 = arith.constant 0 : index
    %50 = vector.load %arg1[%c1_59, %c1_60, %c0_61, %c0_62] : memref<4x9x9x8xf32, #tpu.memory_space<vmem>>, vector<1x8x8x8xf32>
    %51 = vector.shape_cast %50 : vector<1x8x8x8xf32> to vector<8x8x8xf32>
    %52 = vector.shape_cast %51 : vector<8x8x8xf32> to vector<64x8xf32>
    %c2_63 = arith.constant 2 : index
    %c1_64 = arith.constant 1 : index
    %c0_65 = arith.constant 0 : index
    %c0_66 = arith.constant 0 : index
    %53 = vector.load %arg2[%c2_63, %c1_64, %c0_65, %c0_66] : memref<3x3x8x128xf32, #tpu.memory_space<vmem>>, vector<1x1x8x128xf32>
    %54 = vector.shape_cast %53 : vector<1x1x8x128xf32> to vector<8x128xf32>
    %cst_67 = arith.constant dense<0.000000e+00> : vector<64x128xf32>
    %55 = tpu.matmul %52, %54, %cst_67 {dimension_numbers = #tpu.dot_dimension_numbers<[1], [0], [0], [1], [0, 0, 1, 1], [], []>} : vector<64x8xf32>, vector<8x128xf32>, vector<64x128xf32> -> vector<64x128xf32>
    %56 = arith.addf %49, %55 : vector<64x128xf32>
    %c0_68 = arith.constant 0 : index
    %c1_69 = arith.constant 1 : index
    %c1_70 = arith.constant 1 : index
    %c0_71 = arith.constant 0 : index
    %57 = vector.load %arg1[%c0_68, %c1_69, %c1_70, %c0_71] : memref<4x9x9x8xf32, #tpu.memory_space<vmem>>, vector<1x8x8x8xf32>
    %58 = vector.shape_cast %57 : vector<1x8x8x8xf32> to vector<8x8x8xf32>
    %59 = vector.shape_cast %58 : vector<8x8x8xf32> to vector<64x8xf32>
    %c2_72 = arith.constant 2 : index
    %c2_73 = arith.constant 2 : index
    %c0_74 = arith.constant 0 : index
    %c0_75 = arith.constant 0 : index
    %60 = vector.load %arg2[%c2_72, %c2_73, %c0_74, %c0_75] : memref<3x3x8x128xf32, #tpu.memory_space<vmem>>, vector<1x1x8x128xf32>
    %61 = vector.shape_cast %60 : vector<1x1x8x128xf32> to vector<8x128xf32>
    %cst_76 = arith.constant dense<0.000000e+00> : vector<64x128xf32>
    %62 = tpu.matmul %59, %61, %cst_76 {dimension_numbers = #tpu.dot_dimension_numbers<[1], [0], [0], [1], [0, 0, 1, 1], [], []>} : vector<64x8xf32>, vector<8x128xf32>, vector<64x128xf32> -> vector<64x128xf32>
    %63 = arith.addf %56, %62 : vector<64x128xf32>
    %c0_77 = arith.constant 0 : index
    %c0_78 = arith.constant 0 : index
    %64 = vector.load %arg3[%c0_77, %c0_78] : memref<1x128xf32, #tpu.memory_space<vmem>>, vector<1x128xf32>
    %65 = vector.broadcast %64 : vector<1x128xf32> to vector<64x128xf32>
    %66 = arith.addf %63, %65 : vector<64x128xf32>
    %cst_79 = arith.constant 0.000000e+00 : f32
    %67 = vector.broadcast %cst_79 : f32 to vector<64x128xf32>
    %68 = arith.maximumf %66, %67 : vector<64x128xf32>
    %69 = vector.shape_cast %68 : vector<64x128xf32> to vector<8x8x128xf32>
    %cst_80 = arith.constant 0.000000e+00 : f32
    %70 = vector.broadcast %cst_80 : f32 to vector<64x128xf32>
    %c1_81 = arith.constant 1 : index
    %c0_82 = arith.constant 0 : index
    %c0_83 = arith.constant 0 : index
    %c0_84 = arith.constant 0 : index
    %71 = vector.load %arg1[%c1_81, %c0_82, %c0_83, %c0_84] : memref<4x9x9x8xf32, #tpu.memory_space<vmem>>, vector<1x8x8x8xf32>
    %72 = vector.shape_cast %71 : vector<1x8x8x8xf32> to vector<8x8x8xf32>
    %73 = vector.shape_cast %72 : vector<8x8x8xf32> to vector<64x8xf32>
    %c0_85 = arith.constant 0 : index
    %c0_86 = arith.constant 0 : index
    %c0_87 = arith.constant 0 : index
    %c0_88 = arith.constant 0 : index
    %74 = vector.load %arg2[%c0_85, %c0_86, %c0_87, %c0_88] : memref<3x3x8x128xf32, #tpu.memory_space<vmem>>, vector<1x1x8x128xf32>
    %75 = vector.shape_cast %74 : vector<1x1x8x128xf32> to vector<8x128xf32>
    %cst_89 = arith.constant dense<0.000000e+00> : vector<64x128xf32>
    %76 = tpu.matmul %73, %75, %cst_89 {dimension_numbers = #tpu.dot_dimension_numbers<[1], [0], [0], [1], [0, 0, 1, 1], [], []>} : vector<64x8xf32>, vector<8x128xf32>, vector<64x128xf32> -> vector<64x128xf32>
    %77 = arith.addf %70, %76 : vector<64x128xf32>
    %c0_90 = arith.constant 0 : index
    %c0_91 = arith.constant 0 : index
    %c1_92 = arith.constant 1 : index
    %c0_93 = arith.constant 0 : index
    %78 = vector.load %arg1[%c0_90, %c0_91, %c1_92, %c0_93] : memref<4x9x9x8xf32, #tpu.memory_space<vmem>>, vector<1x8x8x8xf32>
    %79 = vector.shape_cast %78 : vector<1x8x8x8xf32> to vector<8x8x8xf32>
    %80 = vector.shape_cast %79 : vector<8x8x8xf32> to vector<64x8xf32>
    %c0_94 = arith.constant 0 : index
    %c1_95 = arith.constant 1 : index
    %c0_96 = arith.constant 0 : index
    %c0_97 = arith.constant 0 : index
    %81 = vector.load %arg2[%c0_94, %c1_95, %c0_96, %c0_97] : memref<3x3x8x128xf32, #tpu.memory_space<vmem>>, vector<1x1x8x128xf32>
    %82 = vector.shape_cast %81 : vector<1x1x8x128xf32> to vector<8x128xf32>
    %cst_98 = arith.constant dense<0.000000e+00> : vector<64x128xf32>
    %83 = tpu.matmul %80, %82, %cst_98 {dimension_numbers = #tpu.dot_dimension_numbers<[1], [0], [0], [1], [0, 0, 1, 1], [], []>} : vector<64x8xf32>, vector<8x128xf32>, vector<64x128xf32> -> vector<64x128xf32>
    %84 = arith.addf %77, %83 : vector<64x128xf32>
    %c1_99 = arith.constant 1 : index
    %c0_100 = arith.constant 0 : index
    %c1_101 = arith.constant 1 : index
    %c0_102 = arith.constant 0 : index
    %85 = vector.load %arg1[%c1_99, %c0_100, %c1_101, %c0_102] : memref<4x9x9x8xf32, #tpu.memory_space<vmem>>, vector<1x8x8x8xf32>
    %86 = vector.shape_cast %85 : vector<1x8x8x8xf32> to vector<8x8x8xf32>
    %87 = vector.shape_cast %86 : vector<8x8x8xf32> to vector<64x8xf32>
    %c0_103 = arith.constant 0 : index
    %c2_104 = arith.constant 2 : index
    %c0_105 = arith.constant 0 : index
    %c0_106 = arith.constant 0 : index
    %88 = vector.load %arg2[%c0_103, %c2_104, %c0_105, %c0_106] : memref<3x3x8x128xf32, #tpu.memory_space<vmem>>, vector<1x1x8x128xf32>
    %89 = vector.shape_cast %88 : vector<1x1x8x128xf32> to vector<8x128xf32>
    %cst_107 = arith.constant dense<0.000000e+00> : vector<64x128xf32>
    %90 = tpu.matmul %87, %89, %cst_107 {dimension_numbers = #tpu.dot_dimension_numbers<[1], [0], [0], [1], [0, 0, 1, 1], [], []>} : vector<64x8xf32>, vector<8x128xf32>, vector<64x128xf32> -> vector<64x128xf32>
    %91 = arith.addf %84, %90 : vector<64x128xf32>
    %c3_108 = arith.constant 3 : index
    %c0_109 = arith.constant 0 : index
    %c0_110 = arith.constant 0 : index
    %c0_111 = arith.constant 0 : index
    %92 = vector.load %arg1[%c3_108, %c0_109, %c0_110, %c0_111] : memref<4x9x9x8xf32, #tpu.memory_space<vmem>>, vector<1x8x8x8xf32>
    %93 = vector.shape_cast %92 : vector<1x8x8x8xf32> to vector<8x8x8xf32>
    %94 = vector.shape_cast %93 : vector<8x8x8xf32> to vector<64x8xf32>
    %c1_112 = arith.constant 1 : index
    %c0_113 = arith.constant 0 : index
    %c0_114 = arith.constant 0 : index
    %c0_115 = arith.constant 0 : index
    %95 = vector.load %arg2[%c1_112, %c0_113, %c0_114, %c0_115] : memref<3x3x8x128xf32, #tpu.memory_space<vmem>>, vector<1x1x8x128xf32>
    %96 = vector.shape_cast %95 : vector<1x1x8x128xf32> to vector<8x128xf32>
    %cst_116 = arith.constant dense<0.000000e+00> : vector<64x128xf32>
    %97 = tpu.matmul %94, %96, %cst_116 {dimension_numbers = #tpu.dot_dimension_numbers<[1], [0], [0], [1], [0, 0, 1, 1], [], []>} : vector<64x8xf32>, vector<8x128xf32>, vector<64x128xf32> -> vector<64x128xf32>
    %98 = arith.addf %91, %97 : vector<64x128xf32>
    %c2_117 = arith.constant 2 : index
    %c0_118 = arith.constant 0 : index
    %c1_119 = arith.constant 1 : index
    %c0_120 = arith.constant 0 : index
    %99 = vector.load %arg1[%c2_117, %c0_118, %c1_119, %c0_120] : memref<4x9x9x8xf32, #tpu.memory_space<vmem>>, vector<1x8x8x8xf32>
    %100 = vector.shape_cast %99 : vector<1x8x8x8xf32> to vector<8x8x8xf32>
    %101 = vector.shape_cast %100 : vector<8x8x8xf32> to vector<64x8xf32>
    %c1_121 = arith.constant 1 : index
    %c1_122 = arith.constant 1 : index
    %c0_123 = arith.constant 0 : index
    %c0_124 = arith.constant 0 : index
    %102 = vector.load %arg2[%c1_121, %c1_122, %c0_123, %c0_124] : memref<3x3x8x128xf32, #tpu.memory_space<vmem>>, vector<1x1x8x128xf32>
    %103 = vector.shape_cast %102 : vector<1x1x8x128xf32> to vector<8x128xf32>
    %cst_125 = arith.constant dense<0.000000e+00> : vector<64x128xf32>
    %104 = tpu.matmul %101, %103, %cst_125 {dimension_numbers = #tpu.dot_dimension_numbers<[1], [0], [0], [1], [0, 0, 1, 1], [], []>} : vector<64x8xf32>, vector<8x128xf32>, vector<64x128xf32> -> vector<64x128xf32>
    %105 = arith.addf %98, %104 : vector<64x128xf32>
    %c3_126 = arith.constant 3 : index
    %c0_127 = arith.constant 0 : index
    %c1_128 = arith.constant 1 : index
    %c0_129 = arith.constant 0 : index
    %106 = vector.load %arg1[%c3_126, %c0_127, %c1_128, %c0_129] : memref<4x9x9x8xf32, #tpu.memory_space<vmem>>, vector<1x8x8x8xf32>
    %107 = vector.shape_cast %106 : vector<1x8x8x8xf32> to vector<8x8x8xf32>
    %108 = vector.shape_cast %107 : vector<8x8x8xf32> to vector<64x8xf32>
    %c1_130 = arith.constant 1 : index
    %c2_131 = arith.constant 2 : index
    %c0_132 = arith.constant 0 : index
    %c0_133 = arith.constant 0 : index
    %109 = vector.load %arg2[%c1_130, %c2_131, %c0_132, %c0_133] : memref<3x3x8x128xf32, #tpu.memory_space<vmem>>, vector<1x1x8x128xf32>
    %110 = vector.shape_cast %109 : vector<1x1x8x128xf32> to vector<8x128xf32>
    %cst_134 = arith.constant dense<0.000000e+00> : vector<64x128xf32>
    %111 = tpu.matmul %108, %110, %cst_134 {dimension_numbers = #tpu.dot_dimension_numbers<[1], [0], [0], [1], [0, 0, 1, 1], [], []>} : vector<64x8xf32>, vector<8x128xf32>, vector<64x128xf32> -> vector<64x128xf32>
    %112 = arith.addf %105, %111 : vector<64x128xf32>
    %c1_135 = arith.constant 1 : index
    %c1_136 = arith.constant 1 : index
    %c0_137 = arith.constant 0 : index
    %c0_138 = arith.constant 0 : index
    %113 = vector.load %arg1[%c1_135, %c1_136, %c0_137, %c0_138] : memref<4x9x9x8xf32, #tpu.memory_space<vmem>>, vector<1x8x8x8xf32>
    %114 = vector.shape_cast %113 : vector<1x8x8x8xf32> to vector<8x8x8xf32>
    %115 = vector.shape_cast %114 : vector<8x8x8xf32> to vector<64x8xf32>
    %c2_139 = arith.constant 2 : index
    %c0_140 = arith.constant 0 : index
    %c0_141 = arith.constant 0 : index
    %c0_142 = arith.constant 0 : index
    %116 = vector.load %arg2[%c2_139, %c0_140, %c0_141, %c0_142] : memref<3x3x8x128xf32, #tpu.memory_space<vmem>>, vector<1x1x8x128xf32>
    %117 = vector.shape_cast %116 : vector<1x1x8x128xf32> to vector<8x128xf32>
    %cst_143 = arith.constant dense<0.000000e+00> : vector<64x128xf32>
    %118 = tpu.matmul %115, %117, %cst_143 {dimension_numbers = #tpu.dot_dimension_numbers<[1], [0], [0], [1], [0, 0, 1, 1], [], []>} : vector<64x8xf32>, vector<8x128xf32>, vector<64x128xf32> -> vector<64x128xf32>
    %119 = arith.addf %112, %118 : vector<64x128xf32>
    %c0_144 = arith.constant 0 : index
    %c1_145 = arith.constant 1 : index
    %c1_146 = arith.constant 1 : index
    %c0_147 = arith.constant 0 : index
    %120 = vector.load %arg1[%c0_144, %c1_145, %c1_146, %c0_147] : memref<4x9x9x8xf32, #tpu.memory_space<vmem>>, vector<1x8x8x8xf32>
    %121 = vector.shape_cast %120 : vector<1x8x8x8xf32> to vector<8x8x8xf32>
    %122 = vector.shape_cast %121 : vector<8x8x8xf32> to vector<64x8xf32>
    %c2_148 = arith.constant 2 : index
    %c1_149 = arith.constant 1 : index
    %c0_150 = arith.constant 0 : index
    %c0_151 = arith.constant 0 : index
    %123 = vector.load %arg2[%c2_148, %c1_149, %c0_150, %c0_151] : memref<3x3x8x128xf32, #tpu.memory_space<vmem>>, vector<1x1x8x128xf32>
    %124 = vector.shape_cast %123 : vector<1x1x8x128xf32> to vector<8x128xf32>
    %cst_152 = arith.constant dense<0.000000e+00> : vector<64x128xf32>
    %125 = tpu.matmul %122, %124, %cst_152 {dimension_numbers = #tpu.dot_dimension_numbers<[1], [0], [0], [1], [0, 0, 1, 1], [], []>} : vector<64x8xf32>, vector<8x128xf32>, vector<64x128xf32> -> vector<64x128xf32>
    %126 = arith.addf %119, %125 : vector<64x128xf32>
    %c1_153 = arith.constant 1 : index
    %c1_154 = arith.constant 1 : index
    %c1_155 = arith.constant 1 : index
    %c0_156 = arith.constant 0 : index
    %127 = vector.load %arg1[%c1_153, %c1_154, %c1_155, %c0_156] : memref<4x9x9x8xf32, #tpu.memory_space<vmem>>, vector<1x8x8x8xf32>
    %128 = vector.shape_cast %127 : vector<1x8x8x8xf32> to vector<8x8x8xf32>
    %129 = vector.shape_cast %128 : vector<8x8x8xf32> to vector<64x8xf32>
    %c2_157 = arith.constant 2 : index
    %c2_158 = arith.constant 2 : index
    %c0_159 = arith.constant 0 : index
    %c0_160 = arith.constant 0 : index
    %130 = vector.load %arg2[%c2_157, %c2_158, %c0_159, %c0_160] : memref<3x3x8x128xf32, #tpu.memory_space<vmem>>, vector<1x1x8x128xf32>
    %131 = vector.shape_cast %130 : vector<1x1x8x128xf32> to vector<8x128xf32>
    %cst_161 = arith.constant dense<0.000000e+00> : vector<64x128xf32>
    %132 = tpu.matmul %129, %131, %cst_161 {dimension_numbers = #tpu.dot_dimension_numbers<[1], [0], [0], [1], [0, 0, 1, 1], [], []>} : vector<64x8xf32>, vector<8x128xf32>, vector<64x128xf32> -> vector<64x128xf32>
    %133 = arith.addf %126, %132 : vector<64x128xf32>
    %c0_162 = arith.constant 0 : index
    %c0_163 = arith.constant 0 : index
    %134 = vector.load %arg3[%c0_162, %c0_163] : memref<1x128xf32, #tpu.memory_space<vmem>>, vector<1x128xf32>
    %135 = vector.broadcast %134 : vector<1x128xf32> to vector<64x128xf32>
    %136 = arith.addf %133, %135 : vector<64x128xf32>
    %cst_164 = arith.constant 0.000000e+00 : f32
    %137 = vector.broadcast %cst_164 : f32 to vector<64x128xf32>
    %138 = arith.maximumf %136, %137 : vector<64x128xf32>
    %139 = vector.shape_cast %138 : vector<64x128xf32> to vector<8x8x128xf32>
    %cst_165 = arith.constant 0.000000e+00 : f32
    %140 = vector.broadcast %cst_165 : f32 to vector<64x128xf32>
    %c2_166 = arith.constant 2 : index
    %c0_167 = arith.constant 0 : index
    %c0_168 = arith.constant 0 : index
    %c0_169 = arith.constant 0 : index
    %141 = vector.load %arg1[%c2_166, %c0_167, %c0_168, %c0_169] : memref<4x9x9x8xf32, #tpu.memory_space<vmem>>, vector<1x8x8x8xf32>
    %142 = vector.shape_cast %141 : vector<1x8x8x8xf32> to vector<8x8x8xf32>
    %143 = vector.shape_cast %142 : vector<8x8x8xf32> to vector<64x8xf32>
    %c0_170 = arith.constant 0 : index
    %c0_171 = arith.constant 0 : index
    %c0_172 = arith.constant 0 : index
    %c0_173 = arith.constant 0 : index
    %144 = vector.load %arg2[%c0_170, %c0_171, %c0_172, %c0_173] : memref<3x3x8x128xf32, #tpu.memory_space<vmem>>, vector<1x1x8x128xf32>
    %145 = vector.shape_cast %144 : vector<1x1x8x128xf32> to vector<8x128xf32>
    %cst_174 = arith.constant dense<0.000000e+00> : vector<64x128xf32>
    %146 = tpu.matmul %143, %145, %cst_174 {dimension_numbers = #tpu.dot_dimension_numbers<[1], [0], [0], [1], [0, 0, 1, 1], [], []>} : vector<64x8xf32>, vector<8x128xf32>, vector<64x128xf32> -> vector<64x128xf32>
    %147 = arith.addf %140, %146 : vector<64x128xf32>
    %c3_175 = arith.constant 3 : index
    %c0_176 = arith.constant 0 : index
    %c0_177 = arith.constant 0 : index
    %c0_178 = arith.constant 0 : index
    %148 = vector.load %arg1[%c3_175, %c0_176, %c0_177, %c0_178] : memref<4x9x9x8xf32, #tpu.memory_space<vmem>>, vector<1x8x8x8xf32>
    %149 = vector.shape_cast %148 : vector<1x8x8x8xf32> to vector<8x8x8xf32>
    %150 = vector.shape_cast %149 : vector<8x8x8xf32> to vector<64x8xf32>
    %c0_179 = arith.constant 0 : index
    %c1_180 = arith.constant 1 : index
    %c0_181 = arith.constant 0 : index
    %c0_182 = arith.constant 0 : index
    %151 = vector.load %arg2[%c0_179, %c1_180, %c0_181, %c0_182] : memref<3x3x8x128xf32, #tpu.memory_space<vmem>>, vector<1x1x8x128xf32>
    %152 = vector.shape_cast %151 : vector<1x1x8x128xf32> to vector<8x128xf32>
    %cst_183 = arith.constant dense<0.000000e+00> : vector<64x128xf32>
    %153 = tpu.matmul %150, %152, %cst_183 {dimension_numbers = #tpu.dot_dimension_numbers<[1], [0], [0], [1], [0, 0, 1, 1], [], []>} : vector<64x8xf32>, vector<8x128xf32>, vector<64x128xf32> -> vector<64x128xf32>
    %154 = arith.addf %147, %153 : vector<64x128xf32>
    %c2_184 = arith.constant 2 : index
    %c0_185 = arith.constant 0 : index
    %c1_186 = arith.constant 1 : index
    %c0_187 = arith.constant 0 : index
    %155 = vector.load %arg1[%c2_184, %c0_185, %c1_186, %c0_187] : memref<4x9x9x8xf32, #tpu.memory_space<vmem>>, vector<1x8x8x8xf32>
    %156 = vector.shape_cast %155 : vector<1x8x8x8xf32> to vector<8x8x8xf32>
    %157 = vector.shape_cast %156 : vector<8x8x8xf32> to vector<64x8xf32>
    %c0_188 = arith.constant 0 : index
    %c2_189 = arith.constant 2 : index
    %c0_190 = arith.constant 0 : index
    %c0_191 = arith.constant 0 : index
    %158 = vector.load %arg2[%c0_188, %c2_189, %c0_190, %c0_191] : memref<3x3x8x128xf32, #tpu.memory_space<vmem>>, vector<1x1x8x128xf32>
    %159 = vector.shape_cast %158 : vector<1x1x8x128xf32> to vector<8x128xf32>
    %cst_192 = arith.constant dense<0.000000e+00> : vector<64x128xf32>
    %160 = tpu.matmul %157, %159, %cst_192 {dimension_numbers = #tpu.dot_dimension_numbers<[1], [0], [0], [1], [0, 0, 1, 1], [], []>} : vector<64x8xf32>, vector<8x128xf32>, vector<64x128xf32> -> vector<64x128xf32>
    %161 = arith.addf %154, %160 : vector<64x128xf32>
    %c0_193 = arith.constant 0 : index
    %c1_194 = arith.constant 1 : index
    %c0_195 = arith.constant 0 : index
    %c0_196 = arith.constant 0 : index
    %162 = vector.load %arg1[%c0_193, %c1_194, %c0_195, %c0_196] : memref<4x9x9x8xf32, #tpu.memory_space<vmem>>, vector<1x8x8x8xf32>
    %163 = vector.shape_cast %162 : vector<1x8x8x8xf32> to vector<8x8x8xf32>
    %164 = vector.shape_cast %163 : vector<8x8x8xf32> to vector<64x8xf32>
    %c1_197 = arith.constant 1 : index
    %c0_198 = arith.constant 0 : index
    %c0_199 = arith.constant 0 : index
    %c0_200 = arith.constant 0 : index
    %165 = vector.load %arg2[%c1_197, %c0_198, %c0_199, %c0_200] : memref<3x3x8x128xf32, #tpu.memory_space<vmem>>, vector<1x1x8x128xf32>
    %166 = vector.shape_cast %165 : vector<1x1x8x128xf32> to vector<8x128xf32>
    %cst_201 = arith.constant dense<0.000000e+00> : vector<64x128xf32>
    %167 = tpu.matmul %164, %166, %cst_201 {dimension_numbers = #tpu.dot_dimension_numbers<[1], [0], [0], [1], [0, 0, 1, 1], [], []>} : vector<64x8xf32>, vector<8x128xf32>, vector<64x128xf32> -> vector<64x128xf32>
    %168 = arith.addf %161, %167 : vector<64x128xf32>
    %c1_202 = arith.constant 1 : index
    %c1_203 = arith.constant 1 : index
    %c0_204 = arith.constant 0 : index
    %c0_205 = arith.constant 0 : index
    %169 = vector.load %arg1[%c1_202, %c1_203, %c0_204, %c0_205] : memref<4x9x9x8xf32, #tpu.memory_space<vmem>>, vector<1x8x8x8xf32>
    %170 = vector.shape_cast %169 : vector<1x8x8x8xf32> to vector<8x8x8xf32>
    %171 = vector.shape_cast %170 : vector<8x8x8xf32> to vector<64x8xf32>
    %c1_206 = arith.constant 1 : index
    %c1_207 = arith.constant 1 : index
    %c0_208 = arith.constant 0 : index
    %c0_209 = arith.constant 0 : index
    %172 = vector.load %arg2[%c1_206, %c1_207, %c0_208, %c0_209] : memref<3x3x8x128xf32, #tpu.memory_space<vmem>>, vector<1x1x8x128xf32>
    %173 = vector.shape_cast %172 : vector<1x1x8x128xf32> to vector<8x128xf32>
    %cst_210 = arith.constant dense<0.000000e+00> : vector<64x128xf32>
    %174 = tpu.matmul %171, %173, %cst_210 {dimension_numbers = #tpu.dot_dimension_numbers<[1], [0], [0], [1], [0, 0, 1, 1], [], []>} : vector<64x8xf32>, vector<8x128xf32>, vector<64x128xf32> -> vector<64x128xf32>
    %175 = arith.addf %168, %174 : vector<64x128xf32>
    %c0_211 = arith.constant 0 : index
    %c1_212 = arith.constant 1 : index
    %c1_213 = arith.constant 1 : index
    %c0_214 = arith.constant 0 : index
    %176 = vector.load %arg1[%c0_211, %c1_212, %c1_213, %c0_214] : memref<4x9x9x8xf32, #tpu.memory_space<vmem>>, vector<1x8x8x8xf32>
    %177 = vector.shape_cast %176 : vector<1x8x8x8xf32> to vector<8x8x8xf32>
    %178 = vector.shape_cast %177 : vector<8x8x8xf32> to vector<64x8xf32>
    %c1_215 = arith.constant 1 : index
    %c2_216 = arith.constant 2 : index
    %c0_217 = arith.constant 0 : index
    %c0_218 = arith.constant 0 : index
    %179 = vector.load %arg2[%c1_215, %c2_216, %c0_217, %c0_218] : memref<3x3x8x128xf32, #tpu.memory_space<vmem>>, vector<1x1x8x128xf32>
    %180 = vector.shape_cast %179 : vector<1x1x8x128xf32> to vector<8x128xf32>
    %cst_219 = arith.constant dense<0.000000e+00> : vector<64x128xf32>
    %181 = tpu.matmul %178, %180, %cst_219 {dimension_numbers = #tpu.dot_dimension_numbers<[1], [0], [0], [1], [0, 0, 1, 1], [], []>} : vector<64x8xf32>, vector<8x128xf32>, vector<64x128xf32> -> vector<64x128xf32>
    %182 = arith.addf %175, %181 : vector<64x128xf32>
    %c2_220 = arith.constant 2 : index
    %c1_221 = arith.constant 1 : index
    %c0_222 = arith.constant 0 : index
    %c0_223 = arith.constant 0 : index
    %183 = vector.load %arg1[%c2_220, %c1_221, %c0_222, %c0_223] : memref<4x9x9x8xf32, #tpu.memory_space<vmem>>, vector<1x8x8x8xf32>
    %184 = vector.shape_cast %183 : vector<1x8x8x8xf32> to vector<8x8x8xf32>
    %185 = vector.shape_cast %184 : vector<8x8x8xf32> to vector<64x8xf32>
    %c2_224 = arith.constant 2 : index
    %c0_225 = arith.constant 0 : index
    %c0_226 = arith.constant 0 : index
    %c0_227 = arith.constant 0 : index
    %186 = vector.load %arg2[%c2_224, %c0_225, %c0_226, %c0_227] : memref<3x3x8x128xf32, #tpu.memory_space<vmem>>, vector<1x1x8x128xf32>
    %187 = vector.shape_cast %186 : vector<1x1x8x128xf32> to vector<8x128xf32>
    %cst_228 = arith.constant dense<0.000000e+00> : vector<64x128xf32>
    %188 = tpu.matmul %185, %187, %cst_228 {dimension_numbers = #tpu.dot_dimension_numbers<[1], [0], [0], [1], [0, 0, 1, 1], [], []>} : vector<64x8xf32>, vector<8x128xf32>, vector<64x128xf32> -> vector<64x128xf32>
    %189 = arith.addf %182, %188 : vector<64x128xf32>
    %c3_229 = arith.constant 3 : index
    %c1_230 = arith.constant 1 : index
    %c0_231 = arith.constant 0 : index
    %c0_232 = arith.constant 0 : index
    %190 = vector.load %arg1[%c3_229, %c1_230, %c0_231, %c0_232] : memref<4x9x9x8xf32, #tpu.memory_space<vmem>>, vector<1x8x8x8xf32>
    %191 = vector.shape_cast %190 : vector<1x8x8x8xf32> to vector<8x8x8xf32>
    %192 = vector.shape_cast %191 : vector<8x8x8xf32> to vector<64x8xf32>
    %c2_233 = arith.constant 2 : index
    %c1_234 = arith.constant 1 : index
    %c0_235 = arith.constant 0 : index
    %c0_236 = arith.constant 0 : index
    %193 = vector.load %arg2[%c2_233, %c1_234, %c0_235, %c0_236] : memref<3x3x8x128xf32, #tpu.memory_space<vmem>>, vector<1x1x8x128xf32>
    %194 = vector.shape_cast %193 : vector<1x1x8x128xf32> to vector<8x128xf32>
    %cst_237 = arith.constant dense<0.000000e+00> : vector<64x128xf32>
    %195 = tpu.matmul %192, %194, %cst_237 {dimension_numbers = #tpu.dot_dimension_numbers<[1], [0], [0], [1], [0, 0, 1, 1], [], []>} : vector<64x8xf32>, vector<8x128xf32>, vector<64x128xf32> -> vector<64x128xf32>
    %196 = arith.addf %189, %195 : vector<64x128xf32>
    %c2_238 = arith.constant 2 : index
    %c1_239 = arith.constant 1 : index
    %c1_240 = arith.constant 1 : index
    %c0_241 = arith.constant 0 : index
    %197 = vector.load %arg1[%c2_238, %c1_239, %c1_240, %c0_241] : memref<4x9x9x8xf32, #tpu.memory_space<vmem>>, vector<1x8x8x8xf32>
    %198 = vector.shape_cast %197 : vector<1x8x8x8xf32> to vector<8x8x8xf32>
    %199 = vector.shape_cast %198 : vector<8x8x8xf32> to vector<64x8xf32>
    %c2_242 = arith.constant 2 : index
    %c2_243 = arith.constant 2 : index
    %c0_244 = arith.constant 0 : index
    %c0_245 = arith.constant 0 : index
    %200 = vector.load %arg2[%c2_242, %c2_243, %c0_244, %c0_245] : memref<3x3x8x128xf32, #tpu.memory_space<vmem>>, vector<1x1x8x128xf32>
    %201 = vector.shape_cast %200 : vector<1x1x8x128xf32> to vector<8x128xf32>
    %cst_246 = arith.constant dense<0.000000e+00> : vector<64x128xf32>
    %202 = tpu.matmul %199, %201, %cst_246 {dimension_numbers = #tpu.dot_dimension_numbers<[1], [0], [0], [1], [0, 0, 1, 1], [], []>} : vector<64x8xf32>, vector<8x128xf32>, vector<64x128xf32> -> vector<64x128xf32>
    %203 = arith.addf %196, %202 : vector<64x128xf32>
    %c0_247 = arith.constant 0 : index
    %c0_248 = arith.constant 0 : index
    %204 = vector.load %arg3[%c0_247, %c0_248] : memref<1x128xf32, #tpu.memory_space<vmem>>, vector<1x128xf32>
    %205 = vector.broadcast %204 : vector<1x128xf32> to vector<64x128xf32>
    %206 = arith.addf %203, %205 : vector<64x128xf32>
    %cst_249 = arith.constant 0.000000e+00 : f32
    %207 = vector.broadcast %cst_249 : f32 to vector<64x128xf32>
    %208 = arith.maximumf %206, %207 : vector<64x128xf32>
    %209 = vector.shape_cast %208 : vector<64x128xf32> to vector<8x8x128xf32>
    %cst_250 = arith.constant 0.000000e+00 : f32
    %210 = vector.broadcast %cst_250 : f32 to vector<64x128xf32>
    %c3_251 = arith.constant 3 : index
    %c0_252 = arith.constant 0 : index
    %c0_253 = arith.constant 0 : index
    %c0_254 = arith.constant 0 : index
    %211 = vector.load %arg1[%c3_251, %c0_252, %c0_253, %c0_254] : memref<4x9x9x8xf32, #tpu.memory_space<vmem>>, vector<1x8x8x8xf32>
    %212 = vector.shape_cast %211 : vector<1x8x8x8xf32> to vector<8x8x8xf32>
    %213 = vector.shape_cast %212 : vector<8x8x8xf32> to vector<64x8xf32>
    %c0_255 = arith.constant 0 : index
    %c0_256 = arith.constant 0 : index
    %c0_257 = arith.constant 0 : index
    %c0_258 = arith.constant 0 : index
    %214 = vector.load %arg2[%c0_255, %c0_256, %c0_257, %c0_258] : memref<3x3x8x128xf32, #tpu.memory_space<vmem>>, vector<1x1x8x128xf32>
    %215 = vector.shape_cast %214 : vector<1x1x8x128xf32> to vector<8x128xf32>
    %cst_259 = arith.constant dense<0.000000e+00> : vector<64x128xf32>
    %216 = tpu.matmul %213, %215, %cst_259 {dimension_numbers = #tpu.dot_dimension_numbers<[1], [0], [0], [1], [0, 0, 1, 1], [], []>} : vector<64x8xf32>, vector<8x128xf32>, vector<64x128xf32> -> vector<64x128xf32>
    %217 = arith.addf %210, %216 : vector<64x128xf32>
    %c2_260 = arith.constant 2 : index
    %c0_261 = arith.constant 0 : index
    %c1_262 = arith.constant 1 : index
    %c0_263 = arith.constant 0 : index
    %218 = vector.load %arg1[%c2_260, %c0_261, %c1_262, %c0_263] : memref<4x9x9x8xf32, #tpu.memory_space<vmem>>, vector<1x8x8x8xf32>
    %219 = vector.shape_cast %218 : vector<1x8x8x8xf32> to vector<8x8x8xf32>
    %220 = vector.shape_cast %219 : vector<8x8x8xf32> to vector<64x8xf32>
    %c0_264 = arith.constant 0 : index
    %c1_265 = arith.constant 1 : index
    %c0_266 = arith.constant 0 : index
    %c0_267 = arith.constant 0 : index
    %221 = vector.load %arg2[%c0_264, %c1_265, %c0_266, %c0_267] : memref<3x3x8x128xf32, #tpu.memory_space<vmem>>, vector<1x1x8x128xf32>
    %222 = vector.shape_cast %221 : vector<1x1x8x128xf32> to vector<8x128xf32>
    %cst_268 = arith.constant dense<0.000000e+00> : vector<64x128xf32>
    %223 = tpu.matmul %220, %222, %cst_268 {dimension_numbers = #tpu.dot_dimension_numbers<[1], [0], [0], [1], [0, 0, 1, 1], [], []>} : vector<64x8xf32>, vector<8x128xf32>, vector<64x128xf32> -> vector<64x128xf32>
    %224 = arith.addf %217, %223 : vector<64x128xf32>
    %c3_269 = arith.constant 3 : index
    %c0_270 = arith.constant 0 : index
    %c1_271 = arith.constant 1 : index
    %c0_272 = arith.constant 0 : index
    %225 = vector.load %arg1[%c3_269, %c0_270, %c1_271, %c0_272] : memref<4x9x9x8xf32, #tpu.memory_space<vmem>>, vector<1x8x8x8xf32>
    %226 = vector.shape_cast %225 : vector<1x8x8x8xf32> to vector<8x8x8xf32>
    %227 = vector.shape_cast %226 : vector<8x8x8xf32> to vector<64x8xf32>
    %c0_273 = arith.constant 0 : index
    %c2_274 = arith.constant 2 : index
    %c0_275 = arith.constant 0 : index
    %c0_276 = arith.constant 0 : index
    %228 = vector.load %arg2[%c0_273, %c2_274, %c0_275, %c0_276] : memref<3x3x8x128xf32, #tpu.memory_space<vmem>>, vector<1x1x8x128xf32>
    %229 = vector.shape_cast %228 : vector<1x1x8x128xf32> to vector<8x128xf32>
    %cst_277 = arith.constant dense<0.000000e+00> : vector<64x128xf32>
    %230 = tpu.matmul %227, %229, %cst_277 {dimension_numbers = #tpu.dot_dimension_numbers<[1], [0], [0], [1], [0, 0, 1, 1], [], []>} : vector<64x8xf32>, vector<8x128xf32>, vector<64x128xf32> -> vector<64x128xf32>
    %231 = arith.addf %224, %230 : vector<64x128xf32>
    %c1_278 = arith.constant 1 : index
    %c1_279 = arith.constant 1 : index
    %c0_280 = arith.constant 0 : index
    %c0_281 = arith.constant 0 : index
    %232 = vector.load %arg1[%c1_278, %c1_279, %c0_280, %c0_281] : memref<4x9x9x8xf32, #tpu.memory_space<vmem>>, vector<1x8x8x8xf32>
    %233 = vector.shape_cast %232 : vector<1x8x8x8xf32> to vector<8x8x8xf32>
    %234 = vector.shape_cast %233 : vector<8x8x8xf32> to vector<64x8xf32>
    %c1_282 = arith.constant 1 : index
    %c0_283 = arith.constant 0 : index
    %c0_284 = arith.constant 0 : index
    %c0_285 = arith.constant 0 : index
    %235 = vector.load %arg2[%c1_282, %c0_283, %c0_284, %c0_285] : memref<3x3x8x128xf32, #tpu.memory_space<vmem>>, vector<1x1x8x128xf32>
    %236 = vector.shape_cast %235 : vector<1x1x8x128xf32> to vector<8x128xf32>
    %cst_286 = arith.constant dense<0.000000e+00> : vector<64x128xf32>
    %237 = tpu.matmul %234, %236, %cst_286 {dimension_numbers = #tpu.dot_dimension_numbers<[1], [0], [0], [1], [0, 0, 1, 1], [], []>} : vector<64x8xf32>, vector<8x128xf32>, vector<64x128xf32> -> vector<64x128xf32>
    %238 = arith.addf %231, %237 : vector<64x128xf32>
    %c0_287 = arith.constant 0 : index
    %c1_288 = arith.constant 1 : index
    %c1_289 = arith.constant 1 : index
    %c0_290 = arith.constant 0 : index
    %239 = vector.load %arg1[%c0_287, %c1_288, %c1_289, %c0_290] : memref<4x9x9x8xf32, #tpu.memory_space<vmem>>, vector<1x8x8x8xf32>
    %240 = vector.shape_cast %239 : vector<1x8x8x8xf32> to vector<8x8x8xf32>
    %241 = vector.shape_cast %240 : vector<8x8x8xf32> to vector<64x8xf32>
    %c1_291 = arith.constant 1 : index
    %c1_292 = arith.constant 1 : index
    %c0_293 = arith.constant 0 : index
    %c0_294 = arith.constant 0 : index
    %242 = vector.load %arg2[%c1_291, %c1_292, %c0_293, %c0_294] : memref<3x3x8x128xf32, #tpu.memory_space<vmem>>, vector<1x1x8x128xf32>
    %243 = vector.shape_cast %242 : vector<1x1x8x128xf32> to vector<8x128xf32>
    %cst_295 = arith.constant dense<0.000000e+00> : vector<64x128xf32>
    %244 = tpu.matmul %241, %243, %cst_295 {dimension_numbers = #tpu.dot_dimension_numbers<[1], [0], [0], [1], [0, 0, 1, 1], [], []>} : vector<64x8xf32>, vector<8x128xf32>, vector<64x128xf32> -> vector<64x128xf32>
    %245 = arith.addf %238, %244 : vector<64x128xf32>
    %c1_296 = arith.constant 1 : index
    %c1_297 = arith.constant 1 : index
    %c1_298 = arith.constant 1 : index
    %c0_299 = arith.constant 0 : index
    %246 = vector.load %arg1[%c1_296, %c1_297, %c1_298, %c0_299] : memref<4x9x9x8xf32, #tpu.memory_space<vmem>>, vector<1x8x8x8xf32>
    %247 = vector.shape_cast %246 : vector<1x8x8x8xf32> to vector<8x8x8xf32>
    %248 = vector.shape_cast %247 : vector<8x8x8xf32> to vector<64x8xf32>
    %c1_300 = arith.constant 1 : index
    %c2_301 = arith.constant 2 : index
    %c0_302 = arith.constant 0 : index
    %c0_303 = arith.constant 0 : index
    %249 = vector.load %arg2[%c1_300, %c2_301, %c0_302, %c0_303] : memref<3x3x8x128xf32, #tpu.memory_space<vmem>>, vector<1x1x8x128xf32>
    %250 = vector.shape_cast %249 : vector<1x1x8x128xf32> to vector<8x128xf32>
    %cst_304 = arith.constant dense<0.000000e+00> : vector<64x128xf32>
    %251 = tpu.matmul %248, %250, %cst_304 {dimension_numbers = #tpu.dot_dimension_numbers<[1], [0], [0], [1], [0, 0, 1, 1], [], []>} : vector<64x8xf32>, vector<8x128xf32>, vector<64x128xf32> -> vector<64x128xf32>
    %252 = arith.addf %245, %251 : vector<64x128xf32>
    %c3_305 = arith.constant 3 : index
    %c1_306 = arith.constant 1 : index
    %c0_307 = arith.constant 0 : index
    %c0_308 = arith.constant 0 : index
    %253 = vector.load %arg1[%c3_305, %c1_306, %c0_307, %c0_308] : memref<4x9x9x8xf32, #tpu.memory_space<vmem>>, vector<1x8x8x8xf32>
    %254 = vector.shape_cast %253 : vector<1x8x8x8xf32> to vector<8x8x8xf32>
    %255 = vector.shape_cast %254 : vector<8x8x8xf32> to vector<64x8xf32>
    %c2_309 = arith.constant 2 : index
    %c0_310 = arith.constant 0 : index
    %c0_311 = arith.constant 0 : index
    %c0_312 = arith.constant 0 : index
    %256 = vector.load %arg2[%c2_309, %c0_310, %c0_311, %c0_312] : memref<3x3x8x128xf32, #tpu.memory_space<vmem>>, vector<1x1x8x128xf32>
    %257 = vector.shape_cast %256 : vector<1x1x8x128xf32> to vector<8x128xf32>
    %cst_313 = arith.constant dense<0.000000e+00> : vector<64x128xf32>
    %258 = tpu.matmul %255, %257, %cst_313 {dimension_numbers = #tpu.dot_dimension_numbers<[1], [0], [0], [1], [0, 0, 1, 1], [], []>} : vector<64x8xf32>, vector<8x128xf32>, vector<64x128xf32> -> vector<64x128xf32>
    %259 = arith.addf %252, %258 : vector<64x128xf32>
    %c2_314 = arith.constant 2 : index
    %c1_315 = arith.constant 1 : index
    %c1_316 = arith.constant 1 : index
    %c0_317 = arith.constant 0 : index
    %260 = vector.load %arg1[%c2_314, %c1_315, %c1_316, %c0_317] : memref<4x9x9x8xf32, #tpu.memory_space<vmem>>, vector<1x8x8x8xf32>
    %261 = vector.shape_cast %260 : vector<1x8x8x8xf32> to vector<8x8x8xf32>
    %262 = vector.shape_cast %261 : vector<8x8x8xf32> to vector<64x8xf32>
    %c2_318 = arith.constant 2 : index
    %c1_319 = arith.constant 1 : index
    %c0_320 = arith.constant 0 : index
    %c0_321 = arith.constant 0 : index
    %263 = vector.load %arg2[%c2_318, %c1_319, %c0_320, %c0_321] : memref<3x3x8x128xf32, #tpu.memory_space<vmem>>, vector<1x1x8x128xf32>
    %264 = vector.shape_cast %263 : vector<1x1x8x128xf32> to vector<8x128xf32>
    %cst_322 = arith.constant dense<0.000000e+00> : vector<64x128xf32>
    %265 = tpu.matmul %262, %264, %cst_322 {dimension_numbers = #tpu.dot_dimension_numbers<[1], [0], [0], [1], [0, 0, 1, 1], [], []>} : vector<64x8xf32>, vector<8x128xf32>, vector<64x128xf32> -> vector<64x128xf32>
    %266 = arith.addf %259, %265 : vector<64x128xf32>
    %c3_323 = arith.constant 3 : index
    %c1_324 = arith.constant 1 : index
    %c1_325 = arith.constant 1 : index
    %c0_326 = arith.constant 0 : index
    %267 = vector.load %arg1[%c3_323, %c1_324, %c1_325, %c0_326] : memref<4x9x9x8xf32, #tpu.memory_space<vmem>>, vector<1x8x8x8xf32>
    %268 = vector.shape_cast %267 : vector<1x8x8x8xf32> to vector<8x8x8xf32>
    %269 = vector.shape_cast %268 : vector<8x8x8xf32> to vector<64x8xf32>
    %c2_327 = arith.constant 2 : index
    %c2_328 = arith.constant 2 : index
    %c0_329 = arith.constant 0 : index
    %c0_330 = arith.constant 0 : index
    %270 = vector.load %arg2[%c2_327, %c2_328, %c0_329, %c0_330] : memref<3x3x8x128xf32, #tpu.memory_space<vmem>>, vector<1x1x8x128xf32>
    %271 = vector.shape_cast %270 : vector<1x1x8x128xf32> to vector<8x128xf32>
    %cst_331 = arith.constant dense<0.000000e+00> : vector<64x128xf32>
    %272 = tpu.matmul %269, %271, %cst_331 {dimension_numbers = #tpu.dot_dimension_numbers<[1], [0], [0], [1], [0, 0, 1, 1], [], []>} : vector<64x8xf32>, vector<8x128xf32>, vector<64x128xf32> -> vector<64x128xf32>
    %273 = arith.addf %266, %272 : vector<64x128xf32>
    %c0_332 = arith.constant 0 : index
    %c0_333 = arith.constant 0 : index
    %274 = vector.load %arg3[%c0_332, %c0_333] : memref<1x128xf32, #tpu.memory_space<vmem>>, vector<1x128xf32>
    %275 = vector.broadcast %274 : vector<1x128xf32> to vector<64x128xf32>
    %276 = arith.addf %273, %275 : vector<64x128xf32>
    %cst_334 = arith.constant 0.000000e+00 : f32
    %277 = vector.broadcast %cst_334 : f32 to vector<64x128xf32>
    %278 = arith.maximumf %276, %277 : vector<64x128xf32>
    %279 = vector.shape_cast %278 : vector<64x128xf32> to vector<8x8x128xf32>
    %cst_335 = arith.constant 0.000000e+00 : f32
    %280 = vector.broadcast %cst_335 : f32 to vector<4x9x9x128xf32>
    %c0_336 = arith.constant 0 : index
    %c0_337 = arith.constant 0 : index
    %c0_338 = arith.constant 0 : index
    %c0_339 = arith.constant 0 : index
    %281 = vector.load %arg7[%c0_336, %c0_337, %c0_338, %c0_339] : memref<4x9x9x128xf32, #tpu.memory_space<vmem>>, vector<4x9x9x128xf32>
    tpu.vector_store %arg7[%c0_336, %c0_337, %c0_338, %c0_339], %280 {strides = array<i32>} : memref<4x9x9x128xf32, #tpu.memory_space<vmem>>, vector<4x9x9x128xf32>,
    %c0_340 = arith.constant 0 : index
    %c1_341 = arith.constant 1 : index
    %c1_342 = arith.constant 1 : index
    %c0_343 = arith.constant 0 : index
    %282 = vector.load %arg7[%c0_340, %c1_341, %c1_342, %c0_343] : memref<4x9x9x128xf32, #tpu.memory_space<vmem>>, vector<1x8x8x128xf32>
    %283 = vector.shape_cast %282 : vector<1x8x8x128xf32> to vector<8x8x128xf32>
    %284 = vector.shape_cast %279 : vector<8x8x128xf32> to vector<1x8x8x128xf32>
    tpu.vector_store %arg7[%c0_340, %c1_341, %c1_342, %c0_343], %284 {strides = array<i32>} : memref<4x9x9x128xf32, #tpu.memory_space<vmem>>, vector<1x8x8x128xf32>,
    %c1_344 = arith.constant 1 : index
    %c1_345 = arith.constant 1 : index
    %c0_346 = arith.constant 0 : index
    %c0_347 = arith.constant 0 : index
    %285 = vector.load %arg7[%c1_344, %c1_345, %c0_346, %c0_347] : memref<4x9x9x128xf32, #tpu.memory_space<vmem>>, vector<1x8x8x128xf32>
    %286 = vector.shape_cast %285 : vector<1x8x8x128xf32> to vector<8x8x128xf32>
    %287 = vector.shape_cast %209 : vector<8x8x128xf32> to vector<1x8x8x128xf32>
    tpu.vector_store %arg7[%c1_344, %c1_345, %c0_346, %c0_347], %287 {strides = array<i32>} : memref<4x9x9x128xf32, #tpu.memory_space<vmem>>, vector<1x8x8x128xf32>,
    %c2_348 = arith.constant 2 : index
    %c0_349 = arith.constant 0 : index
    %c1_350 = arith.constant 1 : index
    %c0_351 = arith.constant 0 : index
    %288 = vector.load %arg7[%c2_348, %c0_349, %c1_350, %c0_351] : memref<4x9x9x128xf32, #tpu.memory_space<vmem>>, vector<1x8x8x128xf32>
    %289 = vector.shape_cast %288 : vector<1x8x8x128xf32> to vector<8x8x128xf32>
    %290 = vector.shape_cast %139 : vector<8x8x128xf32> to vector<1x8x8x128xf32>
    tpu.vector_store %arg7[%c2_348, %c0_349, %c1_350, %c0_351], %290 {strides = array<i32>} : memref<4x9x9x128xf32, #tpu.memory_space<vmem>>, vector<1x8x8x128xf32>,
    %c3_352 = arith.constant 3 : index
    %c0_353 = arith.constant 0 : index
    %c0_354 = arith.constant 0 : index
    %c0_355 = arith.constant 0 : index
    %291 = vector.load %arg7[%c3_352, %c0_353, %c0_354, %c0_355] : memref<4x9x9x128xf32, #tpu.memory_space<vmem>>, vector<1x8x8x128xf32>
    %292 = vector.shape_cast %291 : vector<1x8x8x128xf32> to vector<8x8x128xf32>
    %293 = vector.shape_cast %69 : vector<8x8x128xf32> to vector<1x8x8x128xf32>
    tpu.vector_store %arg7[%c3_352, %c0_353, %c0_354, %c0_355], %293 {strides = array<i32>} : memref<4x9x9x128xf32, #tpu.memory_space<vmem>>, vector<1x8x8x128xf32>,
    %cst_356 = arith.constant 0.000000e+00 : f32
    %294 = vector.broadcast %cst_356 : f32 to vector<64x128xf32>
    %c0_357 = arith.constant 0 : index
    %c0_358 = arith.constant 0 : index
    %c0_359 = arith.constant 0 : index
    %c0_360 = arith.constant 0 : index
    %295 = vector.load %arg7[%c0_357, %c0_358, %c0_359, %c0_360] : memref<4x9x9x128xf32, #tpu.memory_space<vmem>>, vector<1x8x8x128xf32>
    %296 = vector.shape_cast %295 : vector<1x8x8x128xf32> to vector<8x8x128xf32>
    %297 = vector.shape_cast %296 : vector<8x8x128xf32> to vector<64x128xf32>
    %c0_361 = arith.constant 0 : index
    %c0_362 = arith.constant 0 : index
    %c0_363 = arith.constant 0 : index
    %c0_364 = arith.constant 0 : index
    %298 = vector.load %arg4[%c0_361, %c0_362, %c0_363, %c0_364] : memref<3x3x128x128xf32, #tpu.memory_space<vmem>>, vector<1x1x128x128xf32>
    %299 = vector.shape_cast %298 : vector<1x1x128x128xf32> to vector<128x128xf32>
    %cst_365 = arith.constant dense<0.000000e+00> : vector<64x128xf32>
    %300 = tpu.matmul %297, %299, %cst_365 {dimension_numbers = #tpu.dot_dimension_numbers<[1], [0], [0], [1], [0, 0, 1, 1], [], []>} : vector<64x128xf32>, vector<128x128xf32>, vector<64x128xf32> -> vector<64x128xf32>
    %301 = arith.addf %294, %300 : vector<64x128xf32>
    %c1_366 = arith.constant 1 : index
    %c0_367 = arith.constant 0 : index
    %c0_368 = arith.constant 0 : index
    %c0_369 = arith.constant 0 : index
    %302 = vector.load %arg7[%c1_366, %c0_367, %c0_368, %c0_369] : memref<4x9x9x128xf32, #tpu.memory_space<vmem>>, vector<1x8x8x128xf32>
    %303 = vector.shape_cast %302 : vector<1x8x8x128xf32> to vector<8x8x128xf32>
    %304 = vector.shape_cast %303 : vector<8x8x128xf32> to vector<64x128xf32>
    %c0_370 = arith.constant 0 : index
    %c1_371 = arith.constant 1 : index
    %c0_372 = arith.constant 0 : index
    %c0_373 = arith.constant 0 : index
    %305 = vector.load %arg4[%c0_370, %c1_371, %c0_372, %c0_373] : memref<3x3x128x128xf32, #tpu.memory_space<vmem>>, vector<1x1x128x128xf32>
    %306 = vector.shape_cast %305 : vector<1x1x128x128xf32> to vector<128x128xf32>
    %cst_374 = arith.constant dense<0.000000e+00> : vector<64x128xf32>
    %307 = tpu.matmul %304, %306, %cst_374 {dimension_numbers = #tpu.dot_dimension_numbers<[1], [0], [0], [1], [0, 0, 1, 1], [], []>} : vector<64x128xf32>, vector<128x128xf32>, vector<64x128xf32> -> vector<64x128xf32>
    %308 = arith.addf %301, %307 : vector<64x128xf32>
    %c0_375 = arith.constant 0 : index
    %c0_376 = arith.constant 0 : index
    %c1_377 = arith.constant 1 : index
    %c0_378 = arith.constant 0 : index
    %309 = vector.load %arg7[%c0_375, %c0_376, %c1_377, %c0_378] : memref<4x9x9x128xf32, #tpu.memory_space<vmem>>, vector<1x8x8x128xf32>
    %310 = vector.shape_cast %309 : vector<1x8x8x128xf32> to vector<8x8x128xf32>
    %311 = vector.shape_cast %310 : vector<8x8x128xf32> to vector<64x128xf32>
    %c0_379 = arith.constant 0 : index
    %c2_380 = arith.constant 2 : index
    %c0_381 = arith.constant 0 : index
    %c0_382 = arith.constant 0 : index
    %312 = vector.load %arg4[%c0_379, %c2_380, %c0_381, %c0_382] : memref<3x3x128x128xf32, #tpu.memory_space<vmem>>, vector<1x1x128x128xf32>
    %313 = vector.shape_cast %312 : vector<1x1x128x128xf32> to vector<128x128xf32>
    %cst_383 = arith.constant dense<0.000000e+00> : vector<64x128xf32>
    %314 = tpu.matmul %311, %313, %cst_383 {dimension_numbers = #tpu.dot_dimension_numbers<[1], [0], [0], [1], [0, 0, 1, 1], [], []>} : vector<64x128xf32>, vector<128x128xf32>, vector<64x128xf32> -> vector<64x128xf32>
    %315 = arith.addf %308, %314 : vector<64x128xf32>
    %c2_384 = arith.constant 2 : index
    %c0_385 = arith.constant 0 : index
    %c0_386 = arith.constant 0 : index
    %c0_387 = arith.constant 0 : index
    %316 = vector.load %arg7[%c2_384, %c0_385, %c0_386, %c0_387] : memref<4x9x9x128xf32, #tpu.memory_space<vmem>>, vector<1x8x8x128xf32>
    %317 = vector.shape_cast %316 : vector<1x8x8x128xf32> to vector<8x8x128xf32>
    %318 = vector.shape_cast %317 : vector<8x8x128xf32> to vector<64x128xf32>
    %c1_388 = arith.constant 1 : index
    %c0_389 = arith.constant 0 : index
    %c0_390 = arith.constant 0 : index
    %c0_391 = arith.constant 0 : index
    %319 = vector.load %arg4[%c1_388, %c0_389, %c0_390, %c0_391] : memref<3x3x128x128xf32, #tpu.memory_space<vmem>>, vector<1x1x128x128xf32>
    %320 = vector.shape_cast %319 : vector<1x1x128x128xf32> to vector<128x128xf32>
    %cst_392 = arith.constant dense<0.000000e+00> : vector<64x128xf32>
    %321 = tpu.matmul %318, %320, %cst_392 {dimension_numbers = #tpu.dot_dimension_numbers<[1], [0], [0], [1], [0, 0, 1, 1], [], []>} : vector<64x128xf32>, vector<128x128xf32>, vector<64x128xf32> -> vector<64x128xf32>
    %322 = arith.addf %315, %321 : vector<64x128xf32>
    %c3_393 = arith.constant 3 : index
    %c0_394 = arith.constant 0 : index
    %c0_395 = arith.constant 0 : index
    %c0_396 = arith.constant 0 : index
    %323 = vector.load %arg7[%c3_393, %c0_394, %c0_395, %c0_396] : memref<4x9x9x128xf32, #tpu.memory_space<vmem>>, vector<1x8x8x128xf32>
    %324 = vector.shape_cast %323 : vector<1x8x8x128xf32> to vector<8x8x128xf32>
    %325 = vector.shape_cast %324 : vector<8x8x128xf32> to vector<64x128xf32>
    %c1_397 = arith.constant 1 : index
    %c1_398 = arith.constant 1 : index
    %c0_399 = arith.constant 0 : index
    %c0_400 = arith.constant 0 : index
    %326 = vector.load %arg4[%c1_397, %c1_398, %c0_399, %c0_400] : memref<3x3x128x128xf32, #tpu.memory_space<vmem>>, vector<1x1x128x128xf32>
    %327 = vector.shape_cast %326 : vector<1x1x128x128xf32> to vector<128x128xf32>
    %cst_401 = arith.constant dense<0.000000e+00> : vector<64x128xf32>
    %328 = tpu.matmul %325, %327, %cst_401 {dimension_numbers = #tpu.dot_dimension_numbers<[1], [0], [0], [1], [0, 0, 1, 1], [], []>} : vector<64x128xf32>, vector<128x128xf32>, vector<64x128xf32> -> vector<64x128xf32>
    %329 = arith.addf %322, %328 : vector<64x128xf32>
    %c2_402 = arith.constant 2 : index
    %c0_403 = arith.constant 0 : index
    %c1_404 = arith.constant 1 : index
    %c0_405 = arith.constant 0 : index
    %330 = vector.load %arg7[%c2_402, %c0_403, %c1_404, %c0_405] : memref<4x9x9x128xf32, #tpu.memory_space<vmem>>, vector<1x8x8x128xf32>
    %331 = vector.shape_cast %330 : vector<1x8x8x128xf32> to vector<8x8x128xf32>
    %332 = vector.shape_cast %331 : vector<8x8x128xf32> to vector<64x128xf32>
    %c1_406 = arith.constant 1 : index
    %c2_407 = arith.constant 2 : index
    %c0_408 = arith.constant 0 : index
    %c0_409 = arith.constant 0 : index
    %333 = vector.load %arg4[%c1_406, %c2_407, %c0_408, %c0_409] : memref<3x3x128x128xf32, #tpu.memory_space<vmem>>, vector<1x1x128x128xf32>
    %334 = vector.shape_cast %333 : vector<1x1x128x128xf32> to vector<128x128xf32>
    %cst_410 = arith.constant dense<0.000000e+00> : vector<64x128xf32>
    %335 = tpu.matmul %332, %334, %cst_410 {dimension_numbers = #tpu.dot_dimension_numbers<[1], [0], [0], [1], [0, 0, 1, 1], [], []>} : vector<64x128xf32>, vector<128x128xf32>, vector<64x128xf32> -> vector<64x128xf32>
    %336 = arith.addf %329, %335 : vector<64x128xf32>
    %c0_411 = arith.constant 0 : index
    %c1_412 = arith.constant 1 : index
    %c0_413 = arith.constant 0 : index
    %c0_414 = arith.constant 0 : index
    %337 = vector.load %arg7[%c0_411, %c1_412, %c0_413, %c0_414] : memref<4x9x9x128xf32, #tpu.memory_space<vmem>>, vector<1x8x8x128xf32>
    %338 = vector.shape_cast %337 : vector<1x8x8x128xf32> to vector<8x8x128xf32>
    %339 = vector.shape_cast %338 : vector<8x8x128xf32> to vector<64x128xf32>
    %c2_415 = arith.constant 2 : index
    %c0_416 = arith.constant 0 : index
    %c0_417 = arith.constant 0 : index
    %c0_418 = arith.constant 0 : index
    %340 = vector.load %arg4[%c2_415, %c0_416, %c0_417, %c0_418] : memref<3x3x128x128xf32, #tpu.memory_space<vmem>>, vector<1x1x128x128xf32>
    %341 = vector.shape_cast %340 : vector<1x1x128x128xf32> to vector<128x128xf32>
    %cst_419 = arith.constant dense<0.000000e+00> : vector<64x128xf32>
    %342 = tpu.matmul %339, %341, %cst_419 {dimension_numbers = #tpu.dot_dimension_numbers<[1], [0], [0], [1], [0, 0, 1, 1], [], []>} : vector<64x128xf32>, vector<128x128xf32>, vector<64x128xf32> -> vector<64x128xf32>
    %343 = arith.addf %336, %342 : vector<64x128xf32>
    %c1_420 = arith.constant 1 : index
    %c1_421 = arith.constant 1 : index
    %c0_422 = arith.constant 0 : index
    %c0_423 = arith.constant 0 : index
    %344 = vector.load %arg7[%c1_420, %c1_421, %c0_422, %c0_423] : memref<4x9x9x128xf32, #tpu.memory_space<vmem>>, vector<1x8x8x128xf32>
    %345 = vector.shape_cast %344 : vector<1x8x8x128xf32> to vector<8x8x128xf32>
    %346 = vector.shape_cast %345 : vector<8x8x128xf32> to vector<64x128xf32>
    %c2_424 = arith.constant 2 : index
    %c1_425 = arith.constant 1 : index
    %c0_426 = arith.constant 0 : index
    %c0_427 = arith.constant 0 : index
    %347 = vector.load %arg4[%c2_424, %c1_425, %c0_426, %c0_427] : memref<3x3x128x128xf32, #tpu.memory_space<vmem>>, vector<1x1x128x128xf32>
    %348 = vector.shape_cast %347 : vector<1x1x128x128xf32> to vector<128x128xf32>
    %cst_428 = arith.constant dense<0.000000e+00> : vector<64x128xf32>
    %349 = tpu.matmul %346, %348, %cst_428 {dimension_numbers = #tpu.dot_dimension_numbers<[1], [0], [0], [1], [0, 0, 1, 1], [], []>} : vector<64x128xf32>, vector<128x128xf32>, vector<64x128xf32> -> vector<64x128xf32>
    %350 = arith.addf %343, %349 : vector<64x128xf32>
    %c0_429 = arith.constant 0 : index
    %c1_430 = arith.constant 1 : index
    %c1_431 = arith.constant 1 : index
    %c0_432 = arith.constant 0 : index
    %351 = vector.load %arg7[%c0_429, %c1_430, %c1_431, %c0_432] : memref<4x9x9x128xf32, #tpu.memory_space<vmem>>, vector<1x8x8x128xf32>
    %352 = vector.shape_cast %351 : vector<1x8x8x128xf32> to vector<8x8x128xf32>
    %353 = vector.shape_cast %352 : vector<8x8x128xf32> to vector<64x128xf32>
    %c2_433 = arith.constant 2 : index
    %c2_434 = arith.constant 2 : index
    %c0_435 = arith.constant 0 : index
    %c0_436 = arith.constant 0 : index
    %354 = vector.load %arg4[%c2_433, %c2_434, %c0_435, %c0_436] : memref<3x3x128x128xf32, #tpu.memory_space<vmem>>, vector<1x1x128x128xf32>
    %355 = vector.shape_cast %354 : vector<1x1x128x128xf32> to vector<128x128xf32>
    %cst_437 = arith.constant dense<0.000000e+00> : vector<64x128xf32>
    %356 = tpu.matmul %353, %355, %cst_437 {dimension_numbers = #tpu.dot_dimension_numbers<[1], [0], [0], [1], [0, 0, 1, 1], [], []>} : vector<64x128xf32>, vector<128x128xf32>, vector<64x128xf32> -> vector<64x128xf32>
    %357 = arith.addf %350, %356 : vector<64x128xf32>
    %c0_438 = arith.constant 0 : index
    %c0_439 = arith.constant 0 : index
    %358 = vector.load %arg5[%c0_438, %c0_439] : memref<1x128xf32, #tpu.memory_space<vmem>>, vector<1x128xf32>
    %359 = vector.broadcast %358 : vector<1x128xf32> to vector<64x128xf32>
    %360 = arith.addf %357, %359 : vector<64x128xf32>
    %cst_440 = arith.constant 0.000000e+00 : f32
    %361 = vector.broadcast %cst_440 : f32 to vector<64x128xf32>
    %362 = arith.maximumf %360, %361 : vector<64x128xf32>
    %363 = vector.shape_cast %362 : vector<64x128xf32> to vector<1x8x8x128xf32>
    %c0_441 = arith.constant 0 : index
    %c0_442 = arith.constant 0 : index
    %c0_443 = arith.constant 0 : index
    %c0_444 = arith.constant 0 : index
    %364 = vector.load %arg6[%c0_441, %c0_442, %c0_443, %c0_444] : memref<1x8x8x128xf32, #tpu.memory_space<vmem>>, vector<1x8x8x128xf32>
    tpu.vector_store %arg6[%c0_441, %c0_442, %c0_443, %c0_444], %363 {strides = array<i32>} : memref<1x8x8x128xf32, #tpu.memory_space<vmem>>, vector<1x8x8x128xf32>,
    return
  }
  func.func @transform_0(%arg0: i32) -> (i32, i32, i32, i32) {
    %c0_i32 = arith.constant 0 : i32
    %c0_i32_0 = arith.constant 0 : i32
    %c0_i32_1 = arith.constant 0 : i32
    %c0_i32_2 = arith.constant 0 : i32
    return %arg0, %c0_i32, %c0_i32_0, %c0_i32_1 : i32, i32, i32, i32
  }
  func.func @transform_1(%arg0: i32) -> (i32, i32, i32, i32) {
    %c0_i32 = arith.constant 0 : i32
    %c0_i32_0 = arith.constant 0 : i32
    %c0_i32_1 = arith.constant 0 : i32
    %c0_i32_2 = arith.constant 0 : i32
    %c0_i32_3 = arith.constant 0 : i32
    return %c0_i32, %c0_i32_0, %c0_i32_1, %c0_i32_2 : i32, i32, i32, i32
  }
  func.func @transform_2(%arg0: i32) -> (i32, i32) {
    %c0_i32 = arith.constant 0 : i32
    %c0_i32_0 = arith.constant 0 : i32
    %c0_i32_1 = arith.constant 0 : i32
    return %c0_i32, %c0_i32_0 : i32, i32
  }
  func.func @transform_3(%arg0: i32) -> (i32, i32, i32, i32) {
    %c0_i32 = arith.constant 0 : i32
    %c0_i32_0 = arith.constant 0 : i32
    %c0_i32_1 = arith.constant 0 : i32
    %c0_i32_2 = arith.constant 0 : i32
    %c0_i32_3 = arith.constant 0 : i32
    return %c0_i32, %c0_i32_0, %c0_i32_1, %c0_i32_2 : i32, i32, i32, i32
  }
  func.func @transform_4(%arg0: i32) -> (i32, i32) {
    %c0_i32 = arith.constant 0 : i32
    %c0_i32_0 = arith.constant 0 : i32
    %c0_i32_1 = arith.constant 0 : i32
    return %c0_i32, %c0_i32_0 : i32, i32
  }
  func.func @transform_5(%arg0: i32) -> (i32, i32, i32, i32) {
    %c0_i32 = arith.constant 0 : i32
    %c0_i32_0 = arith.constant 0 : i32
    %c0_i32_1 = arith.constant 0 : i32
    %c0_i32_2 = arith.constant 0 : i32
    return %arg0, %c0_i32, %c0_i32_0, %c0_i32_1 : i32, i32, i32, i32
  }
}

</mosaic_0001>

<bundles_post_ra>
// kernel: conv_encoder_forward.1
= control target key start
LH: loop header
LB: loop body
LE: loop exit
PB: predicated region body
PF: predicated region fallthrough
CT: control target
= control target key end

     0   :  { %s8909_s18 = smov 0   ;;  %s10452_s0 = inlined_call_operand.vmem [shape: f32[8,9,9,8], index: 0, kind: input, shape index: {}]   ;;  %s10453_s1 = inlined_call_operand.vmem [shape: f32[3,3,8,128], index: 1, kind: input, shape index: {}]   ;;  %s10454_s2 = inlined_call_operand.vmem [shape: f32[1,128], index: 2, kind: input, shape index: {}]   ;;  %s10455_s3 = inlined_call_operand.vmem [shape: f32[3,3,128,128], index: 3, kind: input, shape index: {}]   ;;  %s10456_s4 = inlined_call_operand.vmem [shape: f32[1,128], index: 4, kind: input, shape index: {}]   ;;  %s10457_s5 = inlined_call_operand.vmem [shape: f32[2,8,8,128], index: 5, kind: output, shape index: {}]  }
   0x1 LB: > { %s8915_s19 = sadd.s32 4294967295, %s8876_s18   ;;  %p6266_p0 = scmp.ge.s32.totalorder %s8876_s18, 1  ;;  %s8876_s18 = sphi %s8909_s18, %s15_s18  }
   0x2   : > { %p189_p1 = scmp.lt.s32.totalorder %s8876_s18, 3 }
   0x4   : > { %p190_p2 = pnand %p6266_p0, %p189_p1 }
   0x6   : > { %193 = sbr.rel (%p190_p2) target bundleno = 833 (0x341), region = 40 }
   0xd   : > { %v8922_v0 = vld [vmem:[%s10453_s1 + $0x8] sm:$0xff]  ;;  %v8927_v1 = vld [vmem:[%s10453_s1] sm:$0xff]  ;;  %s6267_s24 = sshll.u32 %s8915_s19, 2  ;;  %v8933_v2 = vld [vmem:[%s10453_s1 + $0x10] sm:$0xff]  ;;  %vm250_vm0 = vcmask 64512   ;;  %p225_p4 = scmp.lt.s32.totalorder %s8915_s19, 1 }
   0xe   : > { %7352 = vmatprep.subr.mxu1 %v8922_v0  ;;  %7366 = vmatprep.subr.mxu0 %v8927_v1  ;;  %p219_p3 = scmp.lt.s32.totalorder %s6267_s24, 7  ;;  %v8972_v9 = vld [vmem:[%s10453_s1 + $0x18] sm:$0xff]  ;;  %v9048_v23 = vld [vmem:[%s10453_s1 + $0x20] sm:$0xff]  ;;  %v9113_v32 = vld [vmem:[%s10453_s1 + $0x28] sm:$0xff] }
   0xf   : > { %7353 = vmatpush3.msra.mxu1 %v8922_v0  ;;  %7367 = vmatpush3.msra.mxu0 %v8927_v1  ;;  %v9184_v44 = vld [vmem:[%s10453_s1 + $0x30] sm:$0xff]  ;;  %v9264_v58 = vld [vmem:[%s10453_s1 + $0x38] sm:$0xff]  ;;  %s10490_s19 = smov (!%p225_p4, %s8915_s19), 1 }
  0x10   : > { %s10488_s24 = smov (!%p219_p3, %s6267_s24), 7  ;;  %7478 = vmatprep.subr.mxu1 %v8922_v0  ;;  %7380 = vmatprep.subr.mxu0 %v8933_v2  ;;  %10472 = vst [vmem:[#allocation4_spill] sm:$0xff] %v9184_v44  ;;  %10473 = vst [vmem:[#allocation5_spill] sm:$0xff] %v9264_v58  ;;  %s6811_s13 = sshll.u32 %s10490_s19, 6 }
  0x11   : > { %s8860_s27 = smul.u32 144, %s10488_s24  ;;  %s10439_s16 = scalar_lea.vmem %s10457_s5, %s6811_s13 }
  0x13   : > { %s8944_s30 = scalar_lea.vmem %s10452_s0, %s8860_s27 }
  0x14   : > { %v8947_v3 = vld [vmem:[%s8944_s30 + $0x90] sm:$0xff]  ;;  %v230_v4 = vld [vmem:[%s8944_s30] sm:$0xff] }
  0x15   : > { %v8951_v5 = vld [vmem:[%s8944_s30 + $0xa0] sm:$0xff]  ;;  %7354 = vmatprep.mubr.msk.f32.mxu1 %vm250_vm0, %v8947_v3  ;;  %7368 = vmatprep.mubr.msk.f32.mxu0 %vm250_vm0, %v230_v4  ;;  %v8957_v6 = vld [vmem:[%s8944_s30 + $0x10] sm:$0xff] }
  0x16   : > { %v8960_v7 = vld [vmem:[%s8944_s30 + $0xb0] sm:$0xff]  ;;  %v8963_v8 = vld [vmem:[%s8944_s30 + $0x20] sm:$0xff]  ;;  %7355 = vmatmul.mubr.msk.f32.vlgmr.msra.gmra.mrb[0].mxu1 %vm250_vm0, %v8951_v5  ;;  %7369 = vmatmul.mubr.msk.f32.vlgmr.msra.gmra.mrb[0].mxu0 %vm250_vm0, %v8957_v6 }
  0x17   : > { %7479 = vmatpush3.msra.mxu1 %v8922_v0  ;;  %7381 = vmatpush3.msra.mxu0 %v8933_v2  ;;  %v8977_v10 = vld [vmem:[%s8944_s30 + $0xc0] sm:$0xff]  ;;  %v8980_v11 = vld [vmem:[%s8944_s30 + $0x30] sm:$0xff] }
  0x18   : > { %7357 = vmatprep.mubr.msk.f32.mxu1 %vm250_vm0, %v8960_v7  ;;  %7371 = vmatprep.mubr.msk.f32.mxu0 %vm250_vm0, %v8963_v8  ;;  %v8987_v12 = vld [vmem:[%s8944_s30 + $0xd0] sm:$0xff]  ;;  %v8990_v13 = vld [vmem:[%s8944_s30 + $0x40] sm:$0xff] }
  0x19   : > { %7492 = vmatprep.subr.mxu1 %v8927_v1  ;;  %7394 = vmatprep.subr.mxu0 %v8972_v9  ;;  %v9003_v14 = vld [vmem:[%s8944_s30 + $0xe0] sm:$0xff]  ;;  %v9006_v15 = vld [vmem:[%s8944_s30 + $0x50] sm:$0xff] }
  0x1a   : > { %7358 = vmatmul.mubr.msk.f32.gmra.mrb[2].mxu1 %vm250_vm0, %v8977_v10  ;;  %7372 = vmatmul.mubr.msk.f32.gmra.mrb[2].mxu0 %vm250_vm0, %v8980_v11  ;;  %v9009_v16 = vld [vmem:[%s8944_s30 + $0xf0] sm:$0xff]  ;;  %v9012_v17 = vld [vmem:[%s8944_s30 + $0x60] sm:$0xff] }
  0x1b   : > { %7360 = vmatprep.mubr.msk.f32.mxu1 %vm250_vm0, %v8987_v12  ;;  %7374 = vmatprep.mubr.msk.f32.mxu0 %vm250_vm0, %v8990_v13  ;;  %v9023_v18 = vld [vmem:[%s8944_s30 + $0x100] sm:$0xff]  ;;  %v9026_v19 = vld [vmem:[%s8944_s30 + $0x70] sm:$0xff] }
  0x1c   : > { %10471 = vst [vmem:[#allocation3_spill] sm:$0xff] %v9026_v19  ;;  %v509_v20 = vld [vmem:[%s8944_s30 + $0x1] sm:$0xff]  ;;  %v9036_v21 = vld [vmem:[%s8944_s30 + $0x11] sm:$0xff] }
  0x1d   : > { %v9039_v22 = vld [vmem:[%s8944_s30 + $0x21] sm:$0xff]  ;;  %v9053_v24 = vld [vmem:[%s8944_s30 + $0x31] sm:$0xff] }
  0x1e   : > { %7361 = vmatmul.mubr.msk.f32.gmra.mrb[4].mxu1 %vm250_vm0, %v9003_v14  ;;  %7375 = vmatmul.mubr.msk.f32.gmra.mrb[4].mxu0 %vm250_vm0, %v9006_v15  ;;  %v9060_v25 = vld [vmem:[%s8944_s30 + $0x41] sm:$0xff]  ;;  %v9073_v26 = vld [vmem:[%s8944_s30 + $0x51] sm:$0xff] }
  0x1f   : > { %7363 = vmatprep.mubr.msk.f32.mxu1 %vm250_vm0, %v9009_v16  ;;  %7377 = vmatprep.mubr.msk.f32.mxu0 %vm250_vm0, %v9012_v17  ;;  %v9076_v27 = vld [vmem:[%s8944_s30 + $0x61] sm:$0xff]  ;;  %v9087_v28 = vld [vmem:[%s8944_s30 + $0x71] sm:$0xff] }
  0x20   : > { %v9090_v29 = vld [vmem:[%s8944_s30 + $0x120] sm:$0xff]  ;;  %v9101_v30 = vld [vmem:[%s8944_s30 + $0x130] sm:$0xff] }
  0x21   : > { %v9104_v31 = vld [vmem:[%s8944_s30 + $0x140] sm:$0xff]  ;;  %v9118_v33 = vld [vmem:[%s8944_s30 + $0x150] sm:$0xff] }
  0x22   : > { %7364 = vmatmul.mubr.msk.f32.gmra.mrb[6].mxu1 %vm250_vm0, %v9023_v18  ;;  %7378 = vmatmul.mubr.msk.f32.gmra.mrb[6].mxu0 %vm250_vm0, %v9026_v19  ;;  %v9125_v34 = vld [vmem:[%s8944_s30 + $0x160] sm:$0xff]  ;;  %v9138_v35 = vld [vmem:[%s8944_s30 + $0x170] sm:$0xff] }
  0x23   : > { %7382 = vmatprep.mubr.msk.f32.mxu0 %vm250_vm0, %v509_v20  ;;  %7480 = vmatprep.mubr.msk.f32.mxu1 %vm250_vm0, %v509_v20  ;;  %v9141_v36 = vld [vmem:[%s8944_s30 + $0x180] sm:$0xff]  ;;  %v9152_v37 = vld [vmem:[%s8944_s30 + $0x190] sm:$0xff] }
  0x24   : > { %v9155_v38 = vld [vmem:[%s8944_s30 + $0x1b0] sm:$0xff]  ;;  %v9166_v40 = vld [vmem:[%s8944_s30 + $0x1c0] sm:$0xff] }
  0x25   : > { %v6424_v39 = vld [vmem:[%s8944_s30 + $0x91] sm:$0xff]  ;;  %v9169_v41 = vld [vmem:[%s8944_s30 + $0xa1] sm:$0xff] }
  0x26   : > { %7383 = vmatmul.mubr.msk.f32.vlgmr.msra.gmra.mrb[0].mxu0 %vm250_vm0, %v9036_v21  ;;  %7481 = vmatmul.mubr.msk.f32.vlgmr.msra.gmra.mrb[8].mxu1 %vm250_vm0, %v9036_v21  ;;  %v9172_v42 = vld [vmem:[%s8944_s30 + $0x1d0] sm:$0xff]  ;;  %v9189_v45 = vld [vmem:[%s8944_s30 + $0x1e0] sm:$0xff] }
  0x27   : > { %7493 = vmatpush3.msra.mxu1 %v8927_v1  ;;  %7395 = vmatpush3.msra.mxu0 %v8972_v9  ;;  %v9175_v43 = vld [vmem:[%s8944_s30 + $0xb1] sm:$0xff]  ;;  %v9192_v46 = vld [vmem:[%s8944_s30 + $0xc1] sm:$0xff] }
  0x28   : > { %7385 = vmatprep.mubr.msk.f32.mxu0 %vm250_vm0, %v9039_v22  ;;  %7483 = vmatprep.mubr.msk.f32.mxu1 %vm250_vm0, %v9039_v22  ;;  %v9199_v47 = vld [vmem:[%s8944_s30 + $0x1f0] sm:$0xff]  ;;  %v9215_v49 = vld [vmem:[%s8944_s30 + $0x200] sm:$0xff] }
  0x29   : > { %7506 = vmatprep.subr.mxu1 %v8933_v2  ;;  %7408 = vmatprep.subr.mxu0 %v9048_v23  ;;  %v9202_v48 = vld [vmem:[%s8944_s30 + $0xd1] sm:$0xff]  ;;  %v9218_v50 = vld [vmem:[%s8944_s30 + $0xe1] sm:$0xff] }
  0x2a   : > { %7386 = vmatmul.mubr.msk.f32.gmra.mrb[2].mxu0 %vm250_vm0, %v9053_v24  ;;  %7484 = vmatmul.mubr.msk.f32.gmra.mrb[10].mxu1 %vm250_vm0, %v9053_v24  ;;  %v9221_v51 = vld [vmem:[%s8944_s30 + $0x210] sm:$0xff]  ;;  %v9235_v53 = vld [vmem:[%s8944_s30 + $0x220] sm:$0xff] }
  0x2b   : > { %7388 = vmatprep.mubr.msk.f32.mxu0 %vm250_vm0, %v9060_v25  ;;  %7486 = vmatprep.mubr.msk.f32.mxu1 %vm250_vm0, %v9060_v25  ;;  %v9224_v52 = vld [vmem:[%s8944_s30 + $0xf1] sm:$0xff]  ;;  %v9238_v54 = vld [vmem:[%s8944_s30 + $0x101] sm:$0xff] }
  0x2c   : > { %v9241_v55 = vld [vmem:[%s8944_s30 + $0x121] sm:$0xff]  ;;  %v9252_v56 = vld [vmem:[%s8944_s30 + $0x131] sm:$0xff] }
  0x2d   : > { %v9255_v57 = vld [vmem:[%s8944_s30 + $0x141] sm:$0xff]  ;;  %v9269_v59 = vld [vmem:[%s8944_s30 + $0x151] sm:$0xff] }
  0x2e   : > { %7389 = vmatmul.mubr.msk.f32.gmra.mrb[4].mxu0 %vm250_vm0, %v9073_v26  ;;  %7487 = vmatmul.mubr.msk.f32.gmra.mrb[12].mxu1 %vm250_vm0, %v9073_v26  ;;  %v9276_v60 = vld [vmem:[%s8944_s30 + $0x161] sm:$0xff]  ;;  %v9289_v61 = vld [vmem:[%s8944_s30 + $0x171] sm:$0xff] }
  0x2f   : > { %7391 = vmatprep.mubr.msk.f32.mxu0 %vm250_vm0, %v9076_v27  ;;  %7489 = vmatprep.mubr.msk.f32.mxu1 %vm250_vm0, %v9076_v27  ;;  %v9292_v62 = vld [vmem:[%s8944_s30 + $0x181] sm:$0xff]  ;;  %v9303_v63 = vld [vmem:[%s8944_s30 + $0x191] sm:$0xff] }
  0x30   : > { %v9347_v4 = vld [vmem:[%s8944_s30 + $0x80] sm:$0xff]  ;;  %v9350_v20 = vld [vmem:[%s8944_s30 + $0x1b1] sm:$0xff] }
  0x31   : > { %10474 = vst [vmem:[#allocation6_spill] sm:$0xff] %v9347_v4  ;;  %10475 = vst [vmem:[#allocation7_spill] sm:$0xff] %v9350_v20 }
  0x32   : > { %7392 = vmatmul.mubr.msk.f32.gmra.mrb[6].mxu0 %vm250_vm0, %v9087_v28  ;;  %7490 = vmatmul.mubr.msk.f32.gmra.mrb[14].mxu1 %vm250_vm0, %v9087_v28 }
  0x33   : > { %7396 = vmatprep.mubr.msk.f32.mxu0 %vm250_vm0, %v9090_v29  ;;  %7494 = vmatprep.mubr.msk.f32.mxu1 %vm250_vm0, %v8947_v3  ;;  %v9320_v3 = vld [vmem:[%s10453_s1 + $0x40] sm:$0xff] }
  0x36   : > { %7397 = vmatmul.mubr.msk.f32.vlgmr.msra.gmra.mrb[0].mxu0 %vm250_vm0, %v9101_v30  ;;  %7495 = vmatmul.mubr.msk.f32.vlgmr.msra.gmra.mrb[8].mxu1 %vm250_vm0, %v8951_v5 }
  0x37   : > { %7507 = vmatpush3.msra.mxu1 %v8933_v2  ;;  %7409 = vmatpush3.msra.mxu0 %v9048_v23 }
  0x38   : > { %7399 = vmatprep.mubr.msk.f32.mxu0 %vm250_vm0, %v9104_v31  ;;  %7497 = vmatprep.mubr.msk.f32.mxu1 %vm250_vm0, %v8960_v7 }
  0x39   : > { %7520 = vmatprep.subr.mxu1 %v8972_v9  ;;  %7422 = vmatprep.subr.mxu0 %v9113_v32 }
  0x3a   : > { %7400 = vmatmul.mubr.msk.f32.gmra.mrb[2].mxu0 %vm250_vm0, %v9118_v33  ;;  %7498 = vmatmul.mubr.msk.f32.gmra.mrb[10].mxu1 %vm250_vm0, %v8977_v10 }
  0x3b   : > { %7402 = vmatprep.mubr.msk.f32.mxu0 %vm250_vm0, %v9125_v34  ;;  %7500 = vmatprep.mubr.msk.f32.mxu1 %vm250_vm0, %v8987_v12 }
  0x3e   : > { %7403 = vmatmul.mubr.msk.f32.gmra.mrb[4].mxu0 %vm250_vm0, %v9138_v35  ;;  %7501 = vmatmul.mubr.msk.f32.gmra.mrb[12].mxu1 %vm250_vm0, %v9003_v14 }
  0x3f   : > { %7405 = vmatprep.mubr.msk.f32.mxu0 %vm250_vm0, %v9141_v36  ;;  %7503 = vmatprep.mubr.msk.f32.mxu1 %vm250_vm0, %v9009_v16 }
  0x42   : > { %7406 = vmatmul.mubr.msk.f32.gmra.mrb[6].mxu0 %vm250_vm0, %v9152_v37  ;;  %7504 = vmatmul.mubr.msk.f32.gmra.mrb[14].mxu1 %vm250_vm0, %v9023_v18 }
  0x43   : > { %7410 = vmatprep.mubr.msk.f32.mxu0 %vm250_vm0, %v9155_v38  ;;  %7508 = vmatprep.mubr.msk.f32.mxu1 %vm250_vm0, %v6424_v39  ;;  %v9361_v39 = vld [vmem:[%s8944_s30 + $0x1c1] sm:$0xff] }
  0x44   : > { %10476 = vst [vmem:[#allocation8_spill] sm:$0xff] %v9361_v39 }
  0x46   : > { %7411 = vmatmul.mubr.msk.f32.vlgmr.msra.gmra.mrb[0].mxu0 %vm250_vm0, %v9166_v40  ;;  %7509 = vmatmul.mubr.msk.f32.vlgmr.msra.gmra.mrb[8].mxu1 %vm250_vm0, %v9169_v41 }
  0x47   : > { %7521 = vmatpush3.msra.mxu1 %v8972_v9  ;;  %7423 = vmatpush3.msra.mxu0 %v9113_v32 }
  0x48   : > { %7413 = vmatprep.mubr.msk.f32.mxu0 %vm250_vm0, %v9172_v42  ;;  %7511 = vmatprep.mubr.msk.f32.mxu1 %vm250_vm0, %v9175_v43 }
  0x49   : > { %7534 = vmatprep.subr.mxu1 %v9048_v23  ;;  %7436 = vmatprep.subr.mxu0 %v9184_v44 }
  0x4a   : > { %7414 = vmatmul.mubr.msk.f32.gmra.mrb[2].mxu0 %vm250_vm0, %v9189_v45  ;;  %7512 = vmatmul.mubr.msk.f32.gmra.mrb[10].mxu1 %vm250_vm0, %v9192_v46 }
  0x4b   : > { %7416 = vmatprep.mubr.msk.f32.mxu0 %vm250_vm0, %v9199_v47  ;;  %7514 = vmatprep.mubr.msk.f32.mxu1 %vm250_vm0, %v9202_v48 }
  0x4e   : > { %7417 = vmatmul.mubr.msk.f32.gmra.mrb[4].mxu0 %vm250_vm0, %v9215_v49  ;;  %7515 = vmatmul.mubr.msk.f32.gmra.mrb[12].mxu1 %vm250_vm0, %v9218_v50 }
  0x4f   : > { %7419 = vmatprep.mubr.msk.f32.mxu0 %vm250_vm0, %v9221_v51  ;;  %7517 = vmatprep.mubr.msk.f32.mxu1 %vm250_vm0, %v9224_v52 }
  0x52   : > { %7420 = vmatmul.mubr.msk.f32.gmra.mrb[6].mxu0 %vm250_vm0, %v9235_v53  ;;  %7518 = vmatmul.mubr.msk.f32.gmra.mrb[14].mxu1 %vm250_vm0, %v9238_v54 }
  0x53   : > { %7424 = vmatprep.mubr.msk.f32.mxu0 %vm250_vm0, %v9241_v55  ;;  %7522 = vmatprep.mubr.msk.f32.mxu1 %vm250_vm0, %v9155_v38 }
  0x56   : > { %7425 = vmatmul.mubr.msk.f32.vlgmr.msra.gmra.mrb[0].mxu0 %vm250_vm0, %v9252_v56  ;;  %7523 = vmatmul.mubr.msk.f32.vlgmr.msra.gmra.mrb[8].mxu1 %vm250_vm0, %v9166_v40 }
  0x57   : > { %7535 = vmatpush3.msra.mxu1 %v9048_v23  ;;  %7437 = vmatpush3.msra.mxu0 %v9184_v44 }
  0x58   : > { %7427 = vmatprep.mubr.msk.f32.mxu0 %vm250_vm0, %v9255_v57  ;;  %7525 = vmatprep.mubr.msk.f32.mxu1 %vm250_vm0, %v9172_v42 }
  0x59   : > { %7548 = vmatprep.subr.mxu1 %v9113_v32  ;;  %7450 = vmatprep.subr.mxu0 %v9264_v58 }
  0x5a   : > { %7428 = vmatmul.mubr.msk.f32.gmra.mrb[2].mxu0 %vm250_vm0, %v9269_v59  ;;  %7526 = vmatmul.mubr.msk.f32.gmra.mrb[10].mxu1 %vm250_vm0, %v9189_v45 }
  0x5b   : > { %7430 = vmatprep.mubr.msk.f32.mxu0 %vm250_vm0, %v9276_v60  ;;  %7528 = vmatprep.mubr.msk.f32.mxu1 %vm250_vm0, %v9199_v47 }
  0x5e   : > { %7431 = vmatmul.mubr.msk.f32.gmra.mrb[4].mxu0 %vm250_vm0, %v9289_v61  ;;  %7529 = vmatmul.mubr.msk.f32.gmra.mrb[12].mxu1 %vm250_vm0, %v9215_v49 }
  0x5f   : > { %7433 = vmatprep.mubr.msk.f32.mxu0 %vm250_vm0, %v9292_v62  ;;  %7531 = vmatprep.mubr.msk.f32.mxu1 %vm250_vm0, %v9221_v51 }
  0x62   : > { %7434 = vmatmul.mubr.msk.f32.gmra.mrb[6].mxu0 %vm250_vm0, %v9303_v63  ;;  %7532 = vmatmul.mubr.msk.f32.gmra.mrb[14].mxu1 %vm250_vm0, %v9235_v53 }
  0x63   : > { %7438 = vmatprep.mubr.msk.f32.mxu0 %vm250_vm0, %v8957_v6  ;;  %7536 = vmatprep.mubr.msk.f32.mxu1 %vm250_vm0, %v9241_v55 }
  0x66   : > { %7439 = vmatmul.mubr.msk.f32.vlgmr.msra.gmra.mrb[0].mxu0 %vm250_vm0, %v8963_v8  ;;  %7537 = vmatmul.mubr.msk.f32.vlgmr.msra.gmra.mrb[8].mxu1 %vm250_vm0, %v9252_v56 }
  0x67   : > { %7549 = vmatpush3.msra.mxu1 %v9113_v32  ;;  %7451 = vmatpush3.msra.mxu0 %v9264_v58 }
  0x68   : > { %7441 = vmatprep.mubr.msk.f32.mxu0 %vm250_vm0, %v8980_v11  ;;  %7539 = vmatprep.mubr.msk.f32.mxu1 %vm250_vm0, %v9255_v57 }
  0x69   : > { %7562 = vmatprep.subr.mxu1 %v9184_v44  ;;  %7464 = vmatprep.subr.mxu0 %v9320_v3 }
  0x6a   : > { %7442 = vmatmul.mubr.msk.f32.gmra.mrb[2].mxu0 %vm250_vm0, %v8990_v13  ;;  %7540 = vmatmul.mubr.msk.f32.gmra.mrb[10].mxu1 %vm250_vm0, %v9269_v59 }
  0x6b   : > { %7444 = vmatprep.mubr.msk.f32.mxu0 %vm250_vm0, %v9006_v15  ;;  %7542 = vmatprep.mubr.msk.f32.mxu1 %vm250_vm0, %v9276_v60 }
  0x6e   : > { %7445 = vmatmul.mubr.msk.f32.gmra.mrb[4].mxu0 %vm250_vm0, %v9012_v17  ;;  %7543 = vmatmul.mubr.msk.f32.gmra.mrb[12].mxu1 %vm250_vm0, %v9289_v61 }
  0x6f   : > { %7447 = vmatprep.mubr.msk.f32.mxu0 %vm250_vm0, %v9026_v19  ;;  %7545 = vmatprep.mubr.msk.f32.mxu1 %vm250_vm0, %v9292_v62  ;;  %v9364_v19 = vld [vmem:[%s8944_s30 + $0x1d1] sm:$0xff] }
  0x70   : > { %10477 = vst [vmem:[#allocation9_spill] sm:$0xff] %v9364_v19 }
  0x72   : > { %7448 = vmatmul.mubr.msk.f32.gmra.mrb[6].mxu0 %vm250_vm0, %v9347_v4  ;;  %7546 = vmatmul.mubr.msk.f32.gmra.mrb[14].mxu1 %vm250_vm0, %v9303_v63  ;;  %v9373_v4 = vld [vmem:[%s8944_s30 + $0x1e1] sm:$0xff] }
  0x73   : > { %7452 = vmatprep.mubr.msk.f32.mxu0 %vm250_vm0, %v8951_v5  ;;  %7550 = vmatprep.mubr.msk.f32.mxu1 %vm250_vm0, %v9350_v20  ;;  %10478 = vst [vmem:[#allocation10_spill] sm:$0xff] %v9373_v4  ;;  %v9380_v20 = vld [vmem:[%s8944_s30 + $0x1f1] sm:$0xff] }
  0x76   : > { %7453 = vmatmul.mubr.msk.f32.vlgmr.msra.gmra.mrb[0].mxu0 %vm250_vm0, %v8960_v7  ;;  %7551 = vmatmul.mubr.msk.f32.vlgmr.msra.gmra.mrb[8].mxu1 %vm250_vm0, %v9361_v39  ;;  %v9410_v39 = vld [vmem:[%s8944_s30 + $0x221] sm:$0xff] }
  0x77   : > { %7563 = vmatpush3.msra.mxu1 %v9184_v44  ;;  %7465 = vmatpush3.msra.mxu0 %v9320_v3  ;;  %v9393_v44 = vld [vmem:[%s8944_s30 + $0x201] sm:$0xff] }
  0x78   : > { %7455 = vmatprep.mubr.msk.f32.mxu0 %vm250_vm0, %v8977_v10  ;;  %7553 = vmatprep.mubr.msk.f32.mxu1 %vm250_vm0, %v9364_v19  ;;  %v9396_v19 = vld [vmem:[%s8944_s30 + $0x211] sm:$0xff] }
  0x79   : > { %7576 = vmatprep.subr.mxu1 %v9264_v58  ;;  %7604 = vmatprep.subr.mxu0 %v8922_v0 }
  0x7a   : > { %7456 = vmatmul.mubr.msk.f32.gmra.mrb[2].mxu0 %vm250_vm0, %v8987_v12  ;;  %7554 = vmatmul.mubr.msk.f32.gmra.mrb[10].mxu1 %vm250_vm0, %v9373_v4  ;;  %v9407_v4 = vld [vmem:[%s8944_s30 + $0x110] sm:$0xff] }
  0x7b   : > { %7458 = vmatprep.mubr.msk.f32.mxu0 %vm250_vm0, %v9003_v14  ;;  %7556 = vmatprep.mubr.msk.f32.mxu1 %vm250_vm0, %v9380_v20 }
  0x7e   : > { %7459 = vmatmul.mubr.msk.f32.gmra.mrb[4].mxu0 %vm250_vm0, %v9009_v16  ;;  %7557 = vmatmul.mubr.msk.f32.gmra.mrb[12].mxu1 %vm250_vm0, %v9393_v44 }
  0x7f   : > { %7461 = vmatprep.mubr.msk.f32.mxu0 %vm250_vm0, %v9023_v18  ;;  %7559 = vmatprep.mubr.msk.f32.mxu1 %vm250_vm0, %v9396_v19 }
  0x82   : > { %7462 = vmatmul.mubr.msk.f32.gmra.mrb[6].mxu0 %vm250_vm0, %v9407_v4  ;;  %7560 = vmatmul.mubr.msk.f32.gmra.mrb[14].mxu1 %vm250_vm0, %v9410_v39 }
  0x83   : > { %7466 = vmatprep.mubr.msk.f32.mxu0 %vm250_vm0, %v9036_v21  ;;  %7564 = vmatprep.mubr.msk.f32.mxu1 %vm250_vm0, %v8951_v5 }
  0x86   : > { %7467 = vmatmul.mubr.msk.f32.vlgmr.msra.gmra.mrb[0].mxu0 %vm250_vm0, %v9039_v22  ;;  %7565 = vmatmul.mubr.msk.f32.vlgmr.msra.gmra.mrb[8].mxu1 %vm250_vm0, %v8960_v7 }
  0x87   : > { %7577 = vmatpush3.msra.mxu1 %v9264_v58  ;;  %7605 = vmatpush3.msra.mxu0 %v8922_v0  ;;  %v9449_v58 = vld [vmem:[%s8944_s30 + $0x81] sm:$0xff] }
  0x88   : > { %7469 = vmatprep.mubr.msk.f32.mxu0 %vm250_vm0, %v9053_v24  ;;  %7567 = vmatprep.mubr.msk.f32.mxu1 %vm250_vm0, %v8977_v10 }
  0x89   : > { %7590 = vmatprep.subr.mxu1 %v9320_v3  ;;  %7618 = vmatprep.subr.mxu0 %v8927_v1 }
  0x8a   : > { %7470 = vmatmul.mubr.msk.f32.gmra.mrb[2].mxu0 %vm250_vm0, %v9060_v25  ;;  %7568 = vmatmul.mubr.msk.f32.gmra.mrb[10].mxu1 %vm250_vm0, %v8987_v12 }
  0x8b   : > { %7472 = vmatprep.mubr.msk.f32.mxu0 %vm250_vm0, %v9073_v26  ;;  %7570 = vmatprep.mubr.msk.f32.mxu1 %vm250_vm0, %v9003_v14 }
  0x8e   : > { %7473 = vmatmul.mubr.msk.f32.gmra.mrb[4].mxu0 %vm250_vm0, %v9076_v27  ;;  %7571 = vmatmul.mubr.msk.f32.gmra.mrb[12].mxu1 %vm250_vm0, %v9009_v16 }
  0x8f   : > { %7475 = vmatprep.mubr.msk.f32.mxu0 %vm250_vm0, %v9087_v28  ;;  %7573 = vmatprep.mubr.msk.f32.mxu1 %vm250_vm0, %v9023_v18 }
  0x92   : > { %7476 = vmatmul.mubr.msk.f32.gmra.mrb[6].mxu0 %vm250_vm0, %v9449_v58  ;;  %7574 = vmatmul.mubr.msk.f32.gmra.mrb[14].mxu1 %vm250_vm0, %v9407_v4 }
  0x93   : > { %7578 = vmatprep.mubr.msk.f32.mxu1 %vm250_vm0, %v9036_v21  ;;  %7606 = vmatprep.mubr.msk.f32.mxu0 %vm250_vm0, %v9155_v38 }
  0x96   : > { %7579 = vmatmul.mubr.msk.f32.vlgmr.msra.gmra.mrb[8].mxu1 %vm250_vm0, %v9039_v22  ;;  %7607 = vmatmul.mubr.msk.f32.vlgmr.msra.gmra.mrb[8].mxu0 %vm250_vm0, %v9166_v40 }
  0x97   : > { %7591 = vmatpush3.msra.mxu1 %v9320_v3  ;;  %7619 = vmatpush3.msra.mxu0 %v8927_v1 }
  0x98   : > { %7581 = vmatprep.mubr.msk.f32.mxu1 %vm250_vm0, %v9053_v24  ;;  %7609 = vmatprep.mubr.msk.f32.mxu0 %vm250_vm0, %v9172_v42 }
  0x99   : > { %7730 = vmatprep.subr.mxu1 %v8922_v0  ;;  %7632 = vmatprep.subr.mxu0 %v8933_v2 }
  0x9a   : > { %7582 = vmatmul.mubr.msk.f32.gmra.mrb[10].mxu1 %vm250_vm0, %v9060_v25  ;;  %7610 = vmatmul.mubr.msk.f32.gmra.mrb[10].mxu0 %vm250_vm0, %v9189_v45 }
  0x9b   : > { %7584 = vmatprep.mubr.msk.f32.mxu1 %vm250_vm0, %v9073_v26  ;;  %7612 = vmatprep.mubr.msk.f32.mxu0 %vm250_vm0, %v9199_v47 }
  0x9e   : > { %7585 = vmatmul.mubr.msk.f32.gmra.mrb[12].mxu1 %vm250_vm0, %v9076_v27  ;;  %7613 = vmatmul.mubr.msk.f32.gmra.mrb[12].mxu0 %vm250_vm0, %v9215_v49 }
  0x9f   : > { %7587 = vmatprep.mubr.msk.f32.mxu1 %vm250_vm0, %v9087_v28  ;;  %7615 = vmatprep.mubr.msk.f32.mxu0 %vm250_vm0, %v9221_v51 }
  0xa2   : > { %7588 = vmatmul.mubr.msk.f32.gmra.mrb[14].mxu1 %vm250_vm0, %v9449_v58  ;;  %7616 = vmatmul.mubr.msk.f32.gmra.mrb[14].mxu0 %vm250_vm0, %v9235_v53 }
  0xa3   : > { %7592 = vmatprep.mubr.msk.f32.mxu1 %vm250_vm0, %v9169_v41  ;;  %7620 = vmatprep.mubr.msk.f32.mxu0 %vm250_vm0, %v9090_v29 }
  0xa6   : > { %7593 = vmatmul.mubr.msk.f32.vlgmr.msra.gmra.mrb[8].mxu1 %vm250_vm0, %v9175_v43  ;;  %7621 = vmatmul.mubr.msk.f32.vlgmr.msra.gmra.mrb[8].mxu0 %vm250_vm0, %v9101_v30 }
  0xa7   : > { %7731 = vmatpush3.msra.mxu1 %v8922_v0  ;;  %7633 = vmatpush3.msra.mxu0 %v8933_v2  ;;  %v9524_v0 = vld [vmem:[%s8944_s30 + $0x111] sm:$0xff] }
  0xa8   : > { %7595 = vmatprep.mubr.msk.f32.mxu1 %vm250_vm0, %v9192_v46  ;;  %7623 = vmatprep.mubr.msk.f32.mxu0 %vm250_vm0, %v9104_v31 }
  0xa9   : > { %7744 = vmatprep.subr.mxu1 %v8927_v1  ;;  %7646 = vmatprep.subr.mxu0 %v8972_v9 }
  0xaa   : > { %7596 = vmatmul.mubr.msk.f32.gmra.mrb[10].mxu1 %vm250_vm0, %v9202_v48  ;;  %7624 = vmatmul.mubr.msk.f32.gmra.mrb[10].mxu0 %vm250_vm0, %v9118_v33 }
  0xab   : > { %7598 = vmatprep.mubr.msk.f32.mxu1 %vm250_vm0, %v9218_v50  ;;  %7626 = vmatprep.mubr.msk.f32.mxu0 %vm250_vm0, %v9125_v34 }
  0xae   : > { %7599 = vmatmul.mubr.msk.f32.gmra.mrb[12].mxu1 %vm250_vm0, %v9224_v52  ;;  %7627 = vmatmul.mubr.msk.f32.gmra.mrb[12].mxu0 %vm250_vm0, %v9138_v35 }
  0xaf   : > { %7601 = vmatprep.mubr.msk.f32.mxu1 %vm250_vm0, %v9238_v54  ;;  %7629 = vmatprep.mubr.msk.f32.mxu0 %vm250_vm0, %v9141_v36 }
  0xb2   : > { %7602 = vmatmul.mubr.msk.f32.gmra.mrb[14].mxu1 %vm250_vm0, %v9524_v0  ;;  %7630 = vmatmul.mubr.msk.f32.gmra.mrb[14].mxu0 %vm250_vm0, %v9152_v37 }
  0xb3   : > { %7634 = vmatprep.mubr.msk.f32.mxu0 %vm250_vm0, %v9241_v55  ;;  %7732 = vmatprep.mubr.msk.f32.mxu1 %vm250_vm0, %v9241_v55  ;;  %v6745_v55 = vld [vmem:[%s10455_s3 + $0x288] sm:$0xff] }
  0xb6   : > { %7635 = vmatmul.mubr.msk.f32.vlgmr.msra.gmra.mrb[8].mxu0 %vm250_vm0, %v9252_v56  ;;  %7733 = vmatmul.mubr.msk.f32.vlgmr.msra.gmra.mrb[16].mxu1 %vm250_vm0, %v9252_v56 }
  0xb7   : > { %7745 = vmatpush3.msra.mxu1 %v8927_v1  ;;  %7647 = vmatpush3.msra.mxu0 %v8972_v9  ;;  %v10479_v1 = vld [vmem:[#allocation3_spill] sm:$0xff] }
  0xb8   : > { %7637 = vmatprep.mubr.msk.f32.mxu0 %vm250_vm0, %v9255_v57  ;;  %7735 = vmatprep.mubr.msk.f32.mxu1 %vm250_vm0, %v9255_v57 }
  0xb9   : > { %7758 = vmatprep.subr.mxu1 %v8933_v2  ;;  %7660 = vmatprep.subr.mxu0 %v9048_v23 }
  0xba   : > { %7638 = vmatmul.mubr.msk.f32.gmra.mrb[10].mxu0 %vm250_vm0, %v9269_v59  ;;  %7736 = vmatmul.mubr.msk.f32.gmra.mrb[18].mxu1 %vm250_vm0, %v9269_v59 }
  0xbb   : > { %7640 = vmatprep.mubr.msk.f32.mxu0 %vm250_vm0, %v9276_v60  ;;  %7738 = vmatprep.mubr.msk.f32.mxu1 %vm250_vm0, %v9276_v60 }
  0xbe   : > { %7641 = vmatmul.mubr.msk.f32.gmra.mrb[12].mxu0 %vm250_vm0, %v9289_v61  ;;  %7739 = vmatmul.mubr.msk.f32.gmra.mrb[20].mxu1 %vm250_vm0, %v9289_v61 }
  0xbf   : > { %7643 = vmatprep.mubr.msk.f32.mxu0 %vm250_vm0, %v9292_v62  ;;  %7741 = vmatprep.mubr.msk.f32.mxu1 %vm250_vm0, %v9292_v62 }
  0xc2   : > { %7644 = vmatmul.mubr.msk.f32.gmra.mrb[14].mxu0 %vm250_vm0, %v9303_v63  ;;  %7742 = vmatmul.mubr.msk.f32.gmra.mrb[22].mxu1 %vm250_vm0, %v9303_v63 }
  0xc3   : > { %7648 = vmatprep.mubr.msk.f32.mxu0 %vm250_vm0, %v8957_v6  ;;  %7746 = vmatprep.mubr.msk.f32.mxu1 %vm250_vm0, %v9155_v38  ;;  %v10481_v6 = vld [vmem:[#allocation7_spill] sm:$0xff]  ;;  %v6737_v38 = vld [vmem:[%s10455_s3 + $0x248] sm:$0xff] }
  0xc6   : > { %7649 = vmatmul.mubr.msk.f32.vlgmr.msra.gmra.mrb[8].mxu0 %vm250_vm0, %v8963_v8  ;;  %7747 = vmatmul.mubr.msk.f32.vlgmr.msra.gmra.mrb[16].mxu1 %vm250_vm0, %v9166_v40  ;;  %v10482_v8 = vld [vmem:[#allocation8_spill] sm:$0xff] }
  0xc7   : > { %7759 = vmatpush3.msra.mxu1 %v8933_v2  ;;  %7661 = vmatpush3.msra.mxu0 %v9048_v23  ;;  %v10480_v2 = vld [vmem:[#allocation6_spill] sm:$0xff] }
  0xc8   : > { %7651 = vmatprep.mubr.msk.f32.mxu0 %vm250_vm0, %v8980_v11  ;;  %7749 = vmatprep.mubr.msk.f32.mxu1 %vm250_vm0, %v9172_v42  ;;  %v10483_v11 = vld [vmem:[#allocation9_spill] sm:$0xff] }
  0xc9   : > { %7772 = vmatprep.subr.mxu1 %v8972_v9  ;;  %7674 = vmatprep.subr.mxu0 %v9113_v32 }
  0xca   : > { %7652 = vmatmul.mubr.msk.f32.gmra.mrb[10].mxu0 %vm250_vm0, %v8990_v13  ;;  %7750 = vmatmul.mubr.msk.f32.gmra.mrb[18].mxu1 %vm250_vm0, %v9189_v45  ;;  %v10484_v13 = vld [vmem:[#allocation4_spill] sm:$0xff] }
  0xcb   : > { %7654 = vmatprep.mubr.msk.f32.mxu0 %vm250_vm0, %v9006_v15  ;;  %7752 = vmatprep.mubr.msk.f32.mxu1 %vm250_vm0, %v9199_v47  ;;  %v10485_v15 = vld [vmem:[#allocation10_spill] sm:$0xff] }
  0xce   : > { %7655 = vmatmul.mubr.msk.f32.gmra.mrb[12].mxu0 %vm250_vm0, %v9012_v17  ;;  %7753 = vmatmul.mubr.msk.f32.gmra.mrb[20].mxu1 %vm250_vm0, %v9215_v49 }
  0xcf   : > { %7657 = vmatprep.mubr.msk.f32.mxu0 %vm250_vm0, %v10479_v1  ;;  %7755 = vmatprep.mubr.msk.f32.mxu1 %vm250_vm0, %v9221_v51  ;;  %v6689_v1 = vld [vmem:[%s10455_s3 + $0xc8] sm:$0xff] }
  0xd2   : > { %7658 = vmatmul.mubr.msk.f32.gmra.mrb[14].mxu0 %vm250_vm0, %v10480_v2  ;;  %7756 = vmatmul.mubr.msk.f32.gmra.mrb[22].mxu1 %vm250_vm0, %v9235_v53 }
  0xd3   : > { %7662 = vmatprep.mubr.msk.f32.mxu0 %vm250_vm0, %v8951_v5  ;;  %7760 = vmatprep.mubr.msk.f32.mxu1 %vm250_vm0, %v10481_v6  ;;  %v9935_v6 = vld [vmem:[%s10454_s2] ss:$0 sm:$0xff] }
  0xd6   : > { %7663 = vmatmul.mubr.msk.f32.vlgmr.msra.gmra.mrb[8].mxu0 %vm250_vm0, %v8960_v7  ;;  %7761 = vmatmul.mubr.msk.f32.vlgmr.msra.gmra.mrb[16].mxu1 %vm250_vm0, %v10482_v8 }
  0xd7   : > { %7773 = vmatpush3.msra.mxu1 %v8972_v9  ;;  %7675 = vmatpush3.msra.mxu0 %v9113_v32  ;;  %v8878_v9 = vmov 0.0  }
  0xd8   : > { %7665 = vmatprep.mubr.msk.f32.mxu0 %vm250_vm0, %v8977_v10  ;;  %7763 = vmatprep.mubr.msk.f32.mxu1 %vm250_vm0, %v10483_v11  ;;  %4842 = vst [vmem:[#allocation2] sm:$0xff] %v8878_v9  ;;  %4843 = vst [vmem:[#allocation2 + $0x8] sm:$0x1] %v8878_v9 }
  0xd9   : > { %7786 = vmatprep.subr.mxu1 %v9048_v23  ;;  %7688 = vmatprep.subr.mxu0 %v10484_v13  ;;  %4844 = vst [vmem:[#allocation2 + $0x10] sm:$0xff] %v8878_v9  ;;  %4846 = vst [vmem:[#allocation2 + $0x20] sm:$0xff] %v8878_v9 }
  0xda   : > { %7666 = vmatmul.mubr.msk.f32.gmra.mrb[10].mxu0 %vm250_vm0, %v8987_v12  ;;  %7764 = vmatmul.mubr.msk.f32.gmra.mrb[18].mxu1 %vm250_vm0, %v10485_v15  ;;  %4848 = vst [vmem:[#allocation2 + $0x30] sm:$0xff] %v8878_v9  ;;  %4850 = vst [vmem:[#allocation2 + $0x40] sm:$0xff] %v8878_v9 }
  0xdb   : > { %7668 = vmatprep.mubr.msk.f32.mxu0 %vm250_vm0, %v9003_v14  ;;  %7766 = vmatprep.mubr.msk.f32.mxu1 %vm250_vm0, %v9380_v20  ;;  %4852 = vst [vmem:[#allocation2 + $0x50] sm:$0xff] %v8878_v9  ;;  %4854 = vst [vmem:[#allocation2 + $0x60] sm:$0xff] %v8878_v9 }
  0xdc   : > { %4856 = vst [vmem:[#allocation2 + $0x70] sm:$0xff] %v8878_v9  ;;  %4858 = vst [vmem:[#allocation2 + $0x80] sm:$0xff] %v8878_v9 }
  0xdd   : > { %4878 = vst [vmem:[#allocation2 + $0x120] sm:$0xff] %v8878_v9  ;;  %4880 = vst [vmem:[#allocation2 + $0x130] sm:$0xff] %v8878_v9 }
  0xde   : > { %7669 = vmatmul.mubr.msk.f32.gmra.mrb[12].mxu0 %vm250_vm0, %v9009_v16  ;;  %7767 = vmatmul.mubr.msk.f32.gmra.mrb[20].mxu1 %vm250_vm0, %v9393_v44  ;;  %4882 = vst [vmem:[#allocation2 + $0x140] sm:$0xff] %v8878_v9  ;;  %4884 = vst [vmem:[#allocation2 + $0x150] sm:$0xff] %v8878_v9 }
  0xdf   : > { %7671 = vmatprep.mubr.msk.f32.mxu0 %vm250_vm0, %v9023_v18  ;;  %7769 = vmatprep.mubr.msk.f32.mxu1 %vm250_vm0, %v9396_v19  ;;  %4886 = vst [vmem:[#allocation2 + $0x160] sm:$0xff] %v8878_v9  ;;  %4888 = vst [vmem:[#allocation2 + $0x170] sm:$0xff] %v8878_v9 }
  0xe0   : > { %4890 = vst [vmem:[#allocation2 + $0x180] sm:$0xff] %v8878_v9  ;;  %4892 = vst [vmem:[#allocation2 + $0x190] sm:$0xff] %v8878_v9 }
  0xe2   : > { %7672 = vmatmul.mubr.msk.f32.gmra.mrb[14].mxu0 %vm250_vm0, %v9407_v4  ;;  %7770 = vmatmul.mubr.msk.f32.gmra.mrb[22].mxu1 %vm250_vm0, %v9410_v39 }
  0xe3   : > { %7676 = vmatprep.mubr.msk.f32.mxu0 %vm250_vm0, %v9036_v21  ;;  %7774 = vmatprep.mubr.msk.f32.mxu1 %vm250_vm0, %v8951_v5  ;;  %v10486_v5 = vld [vmem:[#allocation5_spill] sm:$0xff] }
  0xe6   : > { %7677 = vmatmul.mubr.msk.f32.vlgmr.msra.gmra.mrb[8].mxu0 %vm250_vm0, %v9039_v22  ;;  %7775 = vmatmul.mubr.msk.f32.vlgmr.msra.gmra.mrb[16].mxu1 %vm250_vm0, %v8960_v7 }
  0xe7   : > { %7787 = vmatpush3.msra.mxu1 %v9048_v23  ;;  %7689 = vmatpush3.msra.mxu0 %v10484_v13 }
  0xe8   : > { %7679 = vmatprep.mubr.msk.f32.mxu0 %vm250_vm0, %v9053_v24  ;;  %7777 = vmatprep.mubr.msk.f32.mxu1 %vm250_vm0, %v8977_v10 }
  0xe9   : > { %v9670_v17 = vpop.f32.mrb[0].mxu1  ;;  %7800 = vmatprep.subr.mxu1 %v9113_v32  ;;  %7702 = vmatprep.subr.mxu0 %v10486_v5 }
  0xea   : > { %v9674_v29 = vpop.f32.mrb[1].mxu1  ;;  %7680 = vmatmul.mubr.msk.f32.gmra.mrb[10].mxu0 %vm250_vm0, %v9060_v25  ;;  %7778 = vmatmul.mubr.msk.f32.gmra.mrb[18].mxu1 %vm250_vm0, %v8987_v12 }
  0xeb   : > { %7682 = vmatprep.mubr.msk.f32.mxu0 %vm250_vm0, %v9073_v26  ;;  %7780 = vmatprep.mubr.msk.f32.mxu1 %vm250_vm0, %v9003_v14 }
  0xed   : > { %v9684_v7 = vpop.f32.mrb[2].mxu1 }
  0xee   : > { %v9686_v10 = vpop.f32.mrb[3].mxu1  ;;  %7683 = vmatmul.mubr.msk.f32.gmra.mrb[12].mxu0 %vm250_vm0, %v9076_v27  ;;  %7781 = vmatmul.mubr.msk.f32.gmra.mrb[20].mxu1 %vm250_vm0, %v9009_v16 }
  0xef   : > { %7685 = vmatprep.mubr.msk.f32.mxu0 %vm250_vm0, %v9087_v28  ;;  %7783 = vmatprep.mubr.msk.f32.mxu1 %vm250_vm0, %v9023_v18  ;;  %v6559_v18 = vld [vmem:[%s8944_s30 + $0x1a0] sm:$0xff] }
  0xf1   : > { %v9696_v12 = vpop.f32.mrb[4].mxu1 }
  0xf2   : > { %v9698_v23 = vpop.f32.mrb[5].mxu1  ;;  %7686 = vmatmul.mubr.msk.f32.gmra.mrb[14].mxu0 %vm250_vm0, %v9449_v58  ;;  %7784 = vmatmul.mubr.msk.f32.gmra.mrb[22].mxu1 %vm250_vm0, %v9407_v4 }
  0xf3   : > { %7690 = vmatprep.mubr.msk.f32.mxu0 %vm250_vm0, %v9101_v30  ;;  %7788 = vmatprep.mubr.msk.f32.mxu1 %vm250_vm0, %v9036_v21  ;;  %v6728_v21 = vld [vmem:[%s10455_s3 + $0x200] sm:$0xff] }
  0xf4   : > { %v6732_v30 = vld [vmem:[%s10455_s3 + $0x220] sm:$0xff] }
  0xf5   : > { %v9708_v14 = vpop.f32.mrb[6].mxu1 }
  0xf6   : > { %v9710_v16 = vpop.f32.mrb[7].mxu1  ;;  %7691 = vmatmul.mubr.msk.f32.vlgmr.msra.gmra.mrb[8].mxu0 %vm250_vm0, %v9104_v31  ;;  %7789 = vmatmul.mubr.msk.f32.vlgmr.msra.gmra.mrb[16].mxu1 %vm250_vm0, %v9039_v22  ;;  %v6729_v22 = vld [vmem:[%s10455_s3 + $0x208] sm:$0xff] }
  0xf7   : > { %7801 = vmatpush3.msra.mxu1 %v9113_v32  ;;  %7703 = vmatpush3.msra.mxu0 %v10486_v5  ;;  %v6733_v31 = vld [vmem:[%s10455_s3 + $0x228] sm:$0xff] }
  0xf8   : > { %7693 = vmatprep.mubr.msk.f32.mxu0 %vm250_vm0, %v9118_v33  ;;  %7791 = vmatprep.mubr.msk.f32.mxu1 %vm250_vm0, %v9053_v24  ;;  %v8380_v24 = vpack.c.bf16 %v6729_v22, %v6728_v21  ;;  %v8388_v32 = vpack.c.bf16 %v6733_v31, %v6732_v30  ;;  %v6734_v33 = vld [vmem:[%s10455_s3 + $0x230] sm:$0xff]  ;;  %v6749_v31 = vld [vmem:[%s10455_s3 + $0x2a8] sm:$0xff] }
  0xf9   : > { %7814 = vmatprep.subr.mxu1 %v10484_v13  ;;  %7716 = vmatprep.subr.mxu0 %v9320_v3 }
  0xfa   : > { %7694 = vmatmul.mubr.msk.f32.gmra.mrb[10].mxu0 %vm250_vm0, %v9125_v34  ;;  %7792 = vmatmul.mubr.msk.f32.gmra.mrb[18].mxu1 %vm250_vm0, %v9060_v25  ;;  %v6575_v25 = vld [vmem:[%s8944_s30 + $0x230] sm:$0xff]  ;;  %v6735_v34 = vld [vmem:[%s10455_s3 + $0x238] sm:$0xff] }
  0xfb   : > { %7696 = vmatprep.mubr.msk.f32.mxu0 %vm250_vm0, %v9138_v35  ;;  %7794 = vmatprep.mubr.msk.f32.mxu1 %vm250_vm0, %v9073_v26  ;;  %v6730_v26 = vld [vmem:[%s10455_s3 + $0x210] sm:$0xff]  ;;  %v6591_v35 = vld [vmem:[%s8944_s30 + $0x1a1] sm:$0xff] }
  0xfe   : > { %7697 = vmatmul.mubr.msk.f32.gmra.mrb[12].mxu0 %vm250_vm0, %v9141_v36  ;;  %7795 = vmatmul.mubr.msk.f32.gmra.mrb[20].mxu1 %vm250_vm0, %v9076_v27  ;;  %v6731_v27 = vld [vmem:[%s10455_s3 + $0x218] sm:$0xff]  ;;  %v8392_v36 = vpack.c.bf16 %v6735_v34, %v6734_v33 }
  0xff   : > { %7699 = vmatprep.mubr.msk.f32.mxu0 %vm250_vm0, %v9152_v37  ;;  %7797 = vmatprep.mubr.msk.f32.mxu1 %vm250_vm0, %v9087_v28  ;;  %v8384_v28 = vpack.c.bf16 %v6731_v27, %v6730_v26  ;;  %v6736_v37 = vld [vmem:[%s10455_s3 + $0x240] sm:$0xff] }
 0x100   : > { %v6748_v27 = vld [vmem:[%s10455_s3 + $0x2a0] sm:$0xff] }
 0x102   : > { %7700 = vmatmul.mubr.msk.f32.gmra.mrb[14].mxu0 %vm250_vm0, %v6559_v18  ;;  %7798 = vmatmul.mubr.msk.f32.gmra.mrb[22].mxu1 %vm250_vm0, %v9449_v58  ;;  %v6747_v18 = vld [vmem:[%s10455_s3 + $0x298] sm:$0xff] }
 0x103   : > { %7704 = vmatprep.mubr.msk.f32.mxu0 %vm250_vm0, %v9166_v40  ;;  %7802 = vmatprep.mubr.msk.f32.mxu1 %vm250_vm0, %v9169_v41  ;;  %v6681_v41 = vld [vmem:[%s10455_s3 + $0x88] sm:$0xff] }
 0x106   : > { %7705 = vmatmul.mubr.msk.f32.vlgmr.msra.gmra.mrb[8].mxu0 %vm250_vm0, %v9172_v42  ;;  %7803 = vmatmul.mubr.msk.f32.vlgmr.msra.gmra.mrb[16].mxu1 %vm250_vm0, %v9175_v43  ;;  %v6738_v43 = vld [vmem:[%s10455_s3 + $0x250] sm:$0xff] }
 0x107   : > { %7815 = vmatpush3.msra.mxu1 %v10484_v13  ;;  %7717 = vmatpush3.msra.mxu0 %v9320_v3 }
 0x108   : > { %7707 = vmatprep.mubr.msk.f32.mxu0 %vm250_vm0, %v9189_v45  ;;  %7805 = vmatprep.mubr.msk.f32.mxu1 %vm250_vm0, %v9192_v46 }
 0x109   : > { %7828 = vmatprep.subr.mxu1 %v10486_v5  ;;  %8381 = vmatprep.subr.bf16.mxu0 %v8380_v24 }
 0x10a   : > { %7708 = vmatmul.mubr.msk.f32.gmra.mrb[10].mxu0 %vm250_vm0, %v9199_v47  ;;  %7806 = vmatmul.mubr.msk.f32.gmra.mrb[18].mxu1 %vm250_vm0, %v9202_v48  ;;  %v6740_v48 = vld [vmem:[%s10455_s3 + $0x260] sm:$0xff] }
 0x10b   : > { %7710 = vmatprep.mubr.msk.f32.mxu0 %vm250_vm0, %v9215_v49  ;;  %7808 = vmatprep.mubr.msk.f32.mxu1 %vm250_vm0, %v9218_v50 }
 0x10e   : > { %7711 = vmatmul.mubr.msk.f32.gmra.mrb[12].mxu0 %vm250_vm0, %v9221_v51  ;;  %7809 = vmatmul.mubr.msk.f32.gmra.mrb[20].mxu1 %vm250_vm0, %v9224_v52  ;;  %v6743_v52 = vld [vmem:[%s10455_s3 + $0x278] sm:$0xff] }
 0x10f   : > { %7713 = vmatprep.mubr.msk.f32.mxu0 %vm250_vm0, %v9235_v53  ;;  %7811 = vmatprep.mubr.msk.f32.mxu1 %vm250_vm0, %v9238_v54  ;;  %v6744_v54 = vld [vmem:[%s10455_s3 + $0x280] sm:$0xff] }
 0x110   : > { %v9894_v58 = vpack.c.bf16 %v6745_v55, %v6744_v54  ;;  %v6752_v54 = vld [vmem:[%s10455_s3 + $0x2c0] sm:$0xff] }
 0x112   : > { %7714 = vmatmul.mubr.msk.f32.gmra.mrb[14].mxu0 %vm250_vm0, %v6575_v25  ;;  %7812 = vmatmul.mubr.msk.f32.gmra.mrb[22].mxu1 %vm250_vm0, %v9524_v0  ;;  %v6688_v0 = vld [vmem:[%s10455_s3 + $0xc0] sm:$0xff] }
 0x113   : > { %7718 = vmatprep.mubr.msk.f32.mxu0 %vm250_vm0, %v9252_v56  ;;  %7816 = vmatprep.mubr.msk.f32.mxu1 %vm250_vm0, %v9166_v40  ;;  %v6680_v40 = vld [vmem:[%s10455_s3 + $0x80] sm:$0xff] }
 0x114   : > { %v8252_v46 = vpack.c.bf16 %v6681_v41, %v6680_v40  ;;  %v8420_v40 = vpack.c.bf16 %v6749_v31, %v6748_v27  ;;  %v6750_v41 = vld [vmem:[%s10455_s3 + $0x2b0] sm:$0xff] }
 0x116   : > { %7719 = vmatmul.mubr.msk.f32.vlgmr.msra.gmra.mrb[8].mxu0 %vm250_vm0, %v9255_v57  ;;  %7817 = vmatmul.mubr.msk.f32.vlgmr.msra.gmra.mrb[16].mxu1 %vm250_vm0, %v9172_v42  ;;  %v8396_v42 = vpack.c.bf16 %v6737_v38, %v6736_v37 }
 0x117   : > { %7829 = vmatpush3.msra.mxu1 %v10486_v5  ;;  %7721 = vmatprep.mubr.msk.f32.mxu0 %vm250_vm0, %v9269_v59  ;;  %v6746_v5 = vld [vmem:[%s10455_s3 + $0x290] sm:$0xff] }
 0x118   : > { %7819 = vmatprep.mubr.msk.f32.mxu1 %vm250_vm0, %v9189_v45  ;;  %7842 = vmatprep.subr.mxu1 %v9320_v3  ;;  %v6739_v45 = vld [vmem:[%s10455_s3 + $0x258] sm:$0xff]  ;;  %v8416_v26 = vpack.c.bf16 %v6747_v18, %v6746_v5 }
 0x119   : > { %8383 = vmatpush3.bf16.msra.mxu0 %v8380_v24 }
 0x11a   : > { %7722 = vmatmul.mubr.msk.f32.gmra.mrb[10].mxu0 %vm250_vm0, %v9276_v60  ;;  %7820 = vmatmul.mubr.msk.f32.gmra.mrb[18].mxu1 %vm250_vm0, %v9199_v47  ;;  %v8400_v47 = vpack.c.bf16 %v6739_v45, %v6738_v43  ;;  %v6751_v43 = vld [vmem:[%s10455_s3 + $0x2b8] sm:$0xff]  ;;  %v6693_v45 = vld [vmem:[%s10455_s3 + $0xe8] sm:$0xff] }
 0x11b   : > { %7724 = vmatprep.mubr.msk.f32.mxu0 %vm250_vm0, %v9289_v61  ;;  %7822 = vmatprep.mubr.msk.f32.mxu1 %vm250_vm0, %v9215_v49  ;;  %v6741_v49 = vld [vmem:[%s10455_s3 + $0x268] sm:$0xff] }
 0x11c   : > { %8385 = vmatprep.subr.bf16.mxu0 %v8384_v28  ;;  %v8404_v50 = vpack.c.bf16 %v6741_v49, %v6740_v48 }
 0x11d   : > { %8387 = vmatpush3.bf16.msra.mxu0 %v8384_v28 }
 0x11e   : > { %7725 = vmatmul.mubr.msk.f32.gmra.mrb[12].mxu0 %vm250_vm0, %v9292_v62  ;;  %7823 = vmatmul.mubr.msk.f32.gmra.mrb[20].mxu1 %vm250_vm0, %v9221_v51  ;;  %v6742_v51 = vld [vmem:[%s10455_s3 + $0x270] sm:$0xff] }
 0x11f   : > { %7727 = vmatprep.mubr.msk.f32.mxu0 %vm250_vm0, %v9303_v63  ;;  %7825 = vmatprep.mubr.msk.f32.mxu1 %vm250_vm0, %v9235_v53  ;;  %v8408_v53 = vpack.c.bf16 %v6743_v52, %v6742_v51 }
 0x120   : > { %8389 = vmatprep.subr.bf16.mxu0 %v8388_v32 }
 0x121   : > { %8391 = vmatpush3.bf16.msra.mxu0 %v8388_v32 }
 0x122   : > { %7728 = vmatmul.mubr.msk.f32.gmra.mrb[14].mxu0 %vm250_vm0, %v6591_v35  ;;  %7826 = vmatmul.mubr.msk.f32.gmra.mrb[22].mxu1 %vm250_vm0, %v6575_v25 }
 0x123   : > { %7830 = vmatprep.mubr.msk.f32.mxu1 %vm250_vm0, %v9252_v56  ;;  %8393 = vmatprep.subr.bf16.mxu0 %v8392_v36  ;;  %v6682_v56 = vld [vmem:[%s10455_s3 + $0x90] sm:$0xff] }
 0x125   : > { %8395 = vmatpush3.bf16.msra.mxu0 %v8392_v36 }
 0x126   : > { %7831 = vmatmul.mubr.msk.f32.vlgmr.msra.gmra.mrb[16].mxu1 %vm250_vm0, %v9255_v57  ;;  %8397 = vmatprep.subr.bf16.mxu0 %v8396_v42  ;;  %v6683_v57 = vld [vmem:[%s10455_s3 + $0x98] sm:$0xff] }
 0x127   : > { %7843 = vmatpush3.msra.mxu1 %v9320_v3  ;;  %7833 = vmatprep.mubr.msk.f32.mxu1 %vm250_vm0, %v9269_v59  ;;  %v8256_v59 = vpack.c.bf16 %v6683_v57, %v6682_v56  ;;  %v6687_v3 = vld [vmem:[%s10455_s3 + $0xb8] sm:$0xff] }
 0x128   : > { %8253 = vmatprep.subr.bf16.mxu1 %v8252_v46  ;;  %v6695_v56 = vld [vmem:[%s10455_s3 + $0xf8] sm:$0xff] }
 0x129   : > { %8399 = vmatpush3.bf16.msra.mxu0 %v8396_v42 }
 0x12a   : > { %7834 = vmatmul.mubr.msk.f32.gmra.mrb[18].mxu1 %vm250_vm0, %v9276_v60  ;;  %8401 = vmatprep.subr.bf16.mxu0 %v8400_v47  ;;  %v6684_v60 = vld [vmem:[%s10455_s3 + $0xa0] sm:$0xff] }
 0x12b   : > { %7836 = vmatprep.mubr.msk.f32.mxu1 %vm250_vm0, %v9289_v61  ;;  %v6685_v61 = vld [vmem:[%s10455_s3 + $0xa8] sm:$0xff] }
 0x12d   : > { %8403 = vmatpush3.bf16.msra.mxu0 %v8400_v47 }
 0x12e   : > { %7837 = vmatmul.mubr.msk.f32.gmra.mrb[20].mxu1 %vm250_vm0, %v9292_v62  ;;  %8405 = vmatprep.subr.bf16.mxu0 %v8404_v50  ;;  %v8260_v62 = vpack.c.bf16 %v6685_v61, %v6684_v60  ;;  %v6754_v61 = vld [vmem:[%s10455_s3 + $0x2d0] sm:$0xff] }
 0x12f   : > { %7839 = vmatprep.mubr.msk.f32.mxu1 %vm250_vm0, %v9303_v63  ;;  %v6686_v63 = vld [vmem:[%s10455_s3 + $0xb0] sm:$0xff] }
 0x130   : > { %v8264_v4 = vpack.c.bf16 %v6687_v3, %v6686_v63  ;;  %v6756_v3 = vld [vmem:[%s10455_s3 + $0x2e0] sm:$0xff] }
 0x131   : > { %8407 = vmatpush3.bf16.msra.mxu0 %v8404_v50 }
 0x132   : > { %7840 = vmatmul.mubr.msk.f32.gmra.mrb[22].mxu1 %vm250_vm0, %v6591_v35  ;;  %8409 = vmatprep.subr.bf16.mxu0 %v8408_v53 }
 0x133   : > { %7844 = vmatprep.mubr.msk.f32.mxu1 %vm250_vm0, %v10482_v8 }
 0x135   : > { %8411 = vmatpush3.bf16.msra.mxu0 %v8408_v53  ;;  %v8424_v53 = vpack.c.bf16 %v6751_v43, %v6750_v41 }
 0x136   : > { %7845 = vmatmul.mubr.msk.f32.vlgmr.msra.gmra.mrb[16].mxu1 %vm250_vm0, %v10483_v11  ;;  %8413 = vmatprep.subr.bf16.mxu0 %v9894_v58 }
 0x137   : > { %7847 = vmatprep.mubr.msk.f32.mxu1 %vm250_vm0, %v10485_v15  ;;  %8255 = vmatpush3.bf16.msra.mxu1 %v8252_v46 }
 0x138   : > { %8257 = vmatprep.subr.bf16.mxu1 %v8256_v59 }
 0x13a   : > { %7848 = vmatmul.mubr.msk.f32.gmra.mrb[18].mxu1 %vm250_vm0, %v9380_v20  ;;  %v6671_v20 = vld [vmem:[%s8944_s30 + $0x231] sm:$0xff] }
 0x13b   : > { %7850 = vmatprep.mubr.msk.f32.mxu1 %vm250_vm0, %v9393_v44  ;;  %8259 = vmatpush3.bf16.msra.mxu1 %v8256_v59  ;;  %v8268_v44 = vpack.c.bf16 %v6689_v1, %v6688_v0  ;;  %v4958_v1 = vld [vmem:[%s10455_s3] sm:$0xff] }
 0x13c   : > { %8261 = vmatprep.subr.bf16.mxu1 %v8260_v62 }
 0x13e   : > { %7851 = vmatmul.mubr.msk.f32.gmra.mrb[20].mxu1 %vm250_vm0, %v9396_v19 }
 0x13f   : > { %7853 = vmatprep.mubr.msk.f32.mxu1 %vm250_vm0, %v9410_v39  ;;  %8263 = vmatpush3.bf16.msra.mxu1 %v8260_v62  ;;  %v6755_v62 = vld [vmem:[%s10455_s3 + $0x2d8] sm:$0xff] }
 0x140   : > { %8265 = vmatprep.subr.bf16.mxu1 %v8264_v4  ;;  %v8432_v63 = vpack.c.bf16 %v6755_v62, %v6754_v61 }
 0x142   : > { %7854 = vmatmul.mubr.msk.f32.gmra.mrb[22].mxu1 %vm250_vm0, %v6671_v20  ;;  %v4959_v20 = vld [vmem:[%s10455_s3 + $0x8] sm:$0xff] }
 0x143   : > { %8267 = vmatpush3.bf16.msra.mxu1 %v8264_v4  ;;  %7888 = vmatprep.mubr.f32.mxu1 %v8878_v9  ;;  %v6757_v4 = vld [vmem:[%s10455_s3 + $0x2e8] sm:$0xff] }
 0x144   : > { %8269 = vmatprep.subr.bf16.mxu1 %v8268_v44  ;;  %v8436_v0 = vpack.c.bf16 %v6757_v4, %v6756_v3  ;;  %v4960_v4 = vld [vmem:[%s10455_s3 + $0x10] sm:$0xff] }
 0x147   : > { %8271 = vmatpush3.bf16.msra.mxu1 %v8268_v44  ;;  %v6758_v44 = vld [vmem:[%s10455_s3 + $0x2f0] sm:$0xff] }
 0x159   : > { %v7468_v2 = vpop.f32.mrb[0].mxu0 }
 0x15a   : > { %v8540_v19 = vadd.f32 %v7468_v2, %v9670_v17  ;;  %v1495_v39 = vpop.f32.mrb[1].mxu0  ;;  %v6759_v2 = vld [vmem:[%s10455_s3 + $0x2f8] sm:$0xff] }
 0x15b   : > { %v8541_v8 = vadd.f32 %v1495_v39, %v9674_v29  ;;  %v8440_v39 = vpack.c.bf16 %v6759_v2, %v6758_v44 }
 0x15c   : > { %v1550_v11 = vadd.f32 %v8540_v19, %v9935_v6  ;;  %v10020_v19 = vpack.c.bf16 %v4959_v20, %v4958_v1 }
 0x15d   : > { %v1549_v13 = vadd.f32 %v8541_v8, %v9935_v6  ;;  %v7471_v15 = vpop.f32.mrb[2].mxu0 }
 0x15e   : > { %v1558_v21 = vmax.f32 %v1550_v11, 0.0  ;;  %v8542_v22 = vadd.f32 %v7471_v15, %v9684_v7  ;;  %v1505_v17 = vpop.f32.mrb[3].mxu0  ;;  %v6690_v7 = vld [vmem:[%s10455_s3 + $0xd0] sm:$0xff]  ;;  %v6760_v11 = vld [vmem:[%s10455_s3 + $0x300] sm:$0xff] }
 0x15f   : > { %v1557_v24 = vmax.f32 %v1549_v13, 0.0  ;;  %v8543_v29 = vadd.f32 %v1505_v17, %v9686_v10  ;;  %v6691_v10 = vld [vmem:[%s10455_s3 + $0xd8] sm:$0xff]  ;;  %v6761_v13 = vld [vmem:[%s10455_s3 + $0x308] sm:$0xff] }
 0x160   : > { %v1552_v25 = vadd.f32 %v8542_v22, %v9935_v6  ;;  %v8272_v35 = vpack.c.bf16 %v6691_v10, %v6690_v7  ;;  %v8444_v22 = vpack.c.bf16 %v6761_v13, %v6760_v11  ;;  %v4962_v13 = vld [vmem:[%s10455_s3 + $0x20] sm:$0xff] }
 0x161   : > { %v1551_v28 = vadd.f32 %v8543_v29, %v9935_v6  ;;  %v7474_v30 = vpop.f32.mrb[4].mxu0  ;;  %8064 = vmatprep.mubr.f32.mxu0 %v1557_v24  ;;  %v6762_v29 = vld [vmem:[%s10455_s3 + $0x310] sm:$0xff] }
 0x162   : > { %v1560_v32 = vmax.f32 %v1552_v25, 0.0  ;;  %v8544_v33 = vadd.f32 %v7474_v30, %v9696_v12  ;;  %v1515_v34 = vpop.f32.mrb[5].mxu0  ;;  %8065 = vmatmul.mubr.f32.vlgmr.msra.gmra.mrb[16].mxu0 %v1558_v21  ;;  %8273 = vmatprep.subr.bf16.mxu1 %v8272_v35  ;;  %v6763_v25 = vld [vmem:[%s10455_s3 + $0x318] sm:$0xff] }
 0x163   : > { %v1559_v36 = vmax.f32 %v1551_v28, 0.0  ;;  %v8545_v37 = vadd.f32 %v1515_v34, %v9698_v23  ;;  %8415 = vmatpush3.bf16.msra.mxu0 %v9894_v58  ;;  %8275 = vmatpush3.bf16.msra.mxu1 %v8272_v35  ;;  %v6692_v23 = vld [vmem:[%s10455_s3 + $0xe0] sm:$0xff]  ;;  %v8448_v31 = vpack.c.bf16 %v6763_v25, %v6762_v29  ;;  %v4964_v25 = vld [vmem:[%s10455_s3 + $0x30] sm:$0xff] }
 0x164   : > { %v1554_v38 = vadd.f32 %v8544_v33, %v9935_v6  ;;  %8417 = vmatprep.subr.bf16.mxu0 %v8416_v26  ;;  %v8276_v49 = vpack.c.bf16 %v6693_v45, %v6692_v23  ;;  %v6765_v33 = vld [vmem:[%s10455_s3 + $0x328] sm:$0xff] }
 0x165   : > { %v1553_v42 = vadd.f32 %v8545_v37, %v9935_v6  ;;  %v7477_v12 = vpop.f32.mrb[6].mxu0  ;;  %8067 = vmatprep.mubr.f32.mxu0 %v1559_v36 }
 0x166   : > { %v1562_v46 = vmax.f32 %v1554_v38, 0.0  ;;  %v8546_v47 = vadd.f32 %v7477_v12, %v9708_v14  ;;  %v1525_v48 = vpop.f32.mrb[7].mxu0  ;;  %8068 = vmatmul.mubr.f32.gmra.mrb[18].mxu0 %v1560_v32  ;;  %8277 = vmatprep.subr.bf16.mxu1 %v8276_v49  ;;  %v6753_v14 = vld [vmem:[%s10455_s3 + $0x2c8] sm:$0xff]  ;;  %v6764_v32 = vld [vmem:[%s10455_s3 + $0x320] sm:$0xff]  ;;  %v6767_v12 = vld [vmem:[%s10455_s3 + $0x338] sm:$0xff] }
 0x167   : > { %v1561_v50 = vmax.f32 %v1553_v42, 0.0  ;;  %v8547_v51 = vadd.f32 %v1525_v48, %v9710_v16  ;;  %8419 = vmatpush3.bf16.msra.mxu0 %v8416_v26  ;;  %8279 = vmatpush3.bf16.msra.mxu1 %v8276_v49  ;;  %v6694_v16 = vld [vmem:[%s10455_s3 + $0xf0] sm:$0xff]  ;;  %v8428_v60 = vpack.c.bf16 %v6753_v14, %v6752_v54  ;;  %v8452_v38 = vpack.c.bf16 %v6765_v33, %v6764_v32  ;;  %v6768_v49 = vld [vmem:[%s10455_s3 + $0x340] sm:$0xff]  ;;  %v6773_v14 = vld [vmem:[%s10455_s3 + $0x368] sm:$0xff] }
 0x168   : > { %v1556_v52 = vadd.f32 %v8546_v47, %v9935_v6  ;;  %8421 = vmatprep.subr.bf16.mxu0 %v8420_v40  ;;  %v8280_v58 = vpack.c.bf16 %v6695_v56, %v6694_v16  ;;  %v6766_v42 = vld [vmem:[%s10455_s3 + $0x330] sm:$0xff]  ;;  %v4966_v32 = vld [vmem:[%s10455_s3 + $0x40] sm:$0xff]  ;;  %v4967_v33 = vld [vmem:[%s10455_s3 + $0x48] sm:$0xff] }
 0x169   : > { %v1555_v55 = vadd.f32 %v8547_v51, %v9935_v6  ;;  %8070 = vmatprep.mubr.f32.mxu0 %v1561_v50  ;;  %v8456_v47 = vpack.c.bf16 %v6767_v12, %v6766_v42  ;;  %v6769_v50 = vld [vmem:[%s10455_s3 + $0x348] sm:$0xff]  ;;  %v6774_v56 = vld [vmem:[%s10455_s3 + $0x370] sm:$0xff]  ;;  %v4970_v42 = vld [vmem:[%s10455_s3 + $0x60] sm:$0xff] }
 0x16a   : > { %v1564_v57 = vmax.f32 %v1556_v52, 0.0  ;;  %8071 = vmatmul.mubr.f32.gmra.mrb[20].mxu0 %v1562_v46  ;;  %8281 = vmatprep.subr.bf16.mxu1 %v8280_v58  ;;  %v8460_v51 = vpack.c.bf16 %v6769_v50, %v6768_v49  ;;  %v6770_v52 = vld [vmem:[%s10455_s3 + $0x350] sm:$0xff]  ;;  %v4971_v12 = vld [vmem:[%s10455_s3 + $0x68] sm:$0xff] }
 0x16b   : > { %v1563_v59 = vmax.f32 %v1555_v55, 0.0  ;;  %8423 = vmatpush3.bf16.msra.mxu0 %v8420_v40  ;;  %8283 = vmatpush3.bf16.msra.mxu1 %v8280_v58  ;;  %v6772_v55 = vld [vmem:[%s10455_s3 + $0x360] sm:$0xff] }
 0x16c   : > { %8425 = vmatprep.subr.bf16.mxu0 %v8424_v53  ;;  %8285 = vmatprep.subr.bf16.mxu1 %v10020_v19  ;;  %v8468_v16 = vpack.c.bf16 %v6773_v14, %v6772_v55 }
 0x16d   : > { %8073 = vmatprep.mubr.f32.mxu0 %v1563_v59  ;;  %v6776_v59 = vld [vmem:[%s10455_s3 + $0x380] sm:$0xff] }
 0x16e   : > { %8074 = vmatmul.mubr.f32.gmra.mrb[22].mxu0 %v1564_v57  ;;  %v6775_v57 = vld [vmem:[%s10455_s3 + $0x378] sm:$0xff] }
 0x16f   : > { %8427 = vmatpush3.bf16.msra.mxu0 %v8424_v53  ;;  %v6771_v53 = vld [vmem:[%s10455_s3 + $0x358] sm:$0xff]  ;;  %v8472_v58 = vpack.c.bf16 %v6775_v57, %v6774_v56 }
 0x170   : > { %8429 = vmatprep.subr.bf16.mxu0 %v8428_v60  ;;  %v8464_v54 = vpack.c.bf16 %v6771_v53, %v6770_v52 }
 0x173   : > { %8431 = vmatpush3.bf16.msra.mxu0 %v8428_v60  ;;  %v6777_v60 = vld [vmem:[%s10455_s3 + $0x388] sm:$0xff] }
 0x174   : > { %8433 = vmatprep.subr.bf16.mxu0 %v8432_v63  ;;  %v10085_v61 = vpack.c.bf16 %v6777_v60, %v6776_v59 }
 0x177   : > { %8435 = vmatpush3.bf16.msra.mxu0 %v8432_v63 }
 0x178   : > { %8437 = vmatprep.subr.bf16.mxu0 %v8436_v0 }
 0x179   : > { %v7594_v8 = vpop.f32.mrb[8].mxu1 }
 0x17a   : > { %v2663_v15 = vadd.f32 %v7594_v8, %v9935_v6  ;;  %v2615_v5 = vpop.f32.mrb[9].mxu1 }
 0x17b   : > { %v2662_v18 = vadd.f32 %v9935_v6, %v2615_v5  ;;  %8439 = vmatpush3.bf16.msra.mxu0 %v8436_v0  ;;  %v4961_v0 = vld [vmem:[%s10455_s3 + $0x18] sm:$0xff] }
 0x17c   : > { %v2671_v21 = vmax.f32 %v2663_v15, 0.0  ;;  %8441 = vmatprep.subr.bf16.mxu0 %v8440_v39  ;;  %v4963_v15 = vld [vmem:[%s10455_s3 + $0x28] sm:$0xff] }
 0x17d   : > { %v2670_v17 = vmax.f32 %v2662_v18, 0.0  ;;  %v7597_v24 = vpop.f32.mrb[10].mxu1 }
 0x17e   : > { %4934 = vst [vmem:[#allocation2 + $0x131] sm:$0xff] %v2671_v21  ;;  %v2665_v26 = vadd.f32 %v7597_v24, %v9935_v6  ;;  %v2625_v27 = vpop.f32.mrb[11].mxu1 }
 0x17f   : > { %4933 = vst [vmem:[#allocation2 + $0x121] sm:$0xff] %v2670_v17  ;;  %v2664_v28 = vadd.f32 %v9935_v6, %v2625_v27  ;;  %8443 = vmatpush3.bf16.msra.mxu0 %v8440_v39  ;;  %8108 = vmatprep.mubr.f32.mxu0 %v2670_v17  ;;  %v8288_v39 = vpack.c.bf16 %v4961_v0, %v4960_v4  ;;  %v6699_v4 = vld [vmem:[%s10455_s3 + $0x118] sm:$0xff] }
 0x180   : > { %v2673_v30 = vmax.f32 %v2665_v26, 0.0  ;;  %8445 = vmatprep.subr.bf16.mxu0 %v8444_v22  ;;  %v8292_v17 = vpack.c.bf16 %v4963_v15, %v4962_v13  ;;  %v6778_v15 = vld [vmem:[%s10455_s3 + $0x390] sm:$0xff] }
 0x181   : > { %v2672_v7 = vmax.f32 %v2664_v28, 0.0  ;;  %v7600_v10 = vpop.f32.mrb[12].mxu1 }
 0x182   : > { %4936 = vst [vmem:[#allocation2 + $0x151] sm:$0xff] %v2673_v30  ;;  %v2667_v34 = vadd.f32 %v7600_v10, %v9935_v6  ;;  %v2635_v35 = vpop.f32.mrb[13].mxu1  ;;  %8109 = vmatmul.mubr.f32.vlgmr.msra.gmra.mrb[16].mxu0 %v2671_v21 }
 0x183   : > { %4935 = vst [vmem:[#allocation2 + $0x141] sm:$0xff] %v2672_v7  ;;  %v2666_v36 = vadd.f32 %v9935_v6, %v2635_v35  ;;  %8111 = vmatprep.mubr.f32.mxu0 %v2672_v7  ;;  %8447 = vmatpush3.bf16.msra.mxu0 %v8444_v22 }
 0x184   : > { %v2675_v37 = vmax.f32 %v2667_v34, 0.0  ;;  %8449 = vmatprep.subr.bf16.mxu0 %v8448_v31 }
 0x185   : > { %v2674_v40 = vmax.f32 %v2666_v36, 0.0  ;;  %v7603_v41 = vpop.f32.mrb[14].mxu1 }
 0x186   : > { %4938 = vst [vmem:[#allocation2 + $0x171] sm:$0xff] %v2675_v37  ;;  %v2669_v43 = vadd.f32 %v7603_v41, %v9935_v6  ;;  %v2645_v23 = vpop.f32.mrb[15].mxu1  ;;  %8112 = vmatmul.mubr.f32.gmra.mrb[18].mxu0 %v2673_v30 }
 0x187   : > { %4937 = vst [vmem:[#allocation2 + $0x161] sm:$0xff] %v2674_v40  ;;  %v2668_v45 = vadd.f32 %v9935_v6, %v2645_v23  ;;  %8114 = vmatprep.mubr.f32.mxu0 %v2674_v40  ;;  %8451 = vmatpush3.bf16.msra.mxu0 %v8448_v31  ;;  %v4969_v40 = vld [vmem:[%s10455_s3 + $0x58] sm:$0xff]  ;;  %v4972_v23 = vld [vmem:[%s10455_s3 + $0x70] sm:$0xff] }
 0x188   : > { %v2677_v46 = vmax.f32 %v2669_v43, 0.0  ;;  %8453 = vmatprep.subr.bf16.mxu0 %v8452_v38  ;;  %v8308_v43 = vpack.c.bf16 %v4971_v12, %v4970_v42  ;;  %v6702_v42 = vld [vmem:[%s10455_s3 + $0x130] sm:$0xff]  ;;  %v6703_v12 = vld [vmem:[%s10455_s3 + $0x138] sm:$0xff] }
 0x189   : > { %v2676_v48 = vmax.f32 %v2668_v45, 0.0 }
 0x18a   : > { %4940 = vst [vmem:[#allocation2 + $0x191] sm:$0xff] %v2677_v46  ;;  %8115 = vmatmul.mubr.f32.gmra.mrb[20].mxu0 %v2675_v37  ;;  %v8300_v37 = vpack.c.bf16 %v4967_v33, %v4966_v32 }
 0x18b   : > { %4939 = vst [vmem:[#allocation2 + $0x181] sm:$0xff] %v2676_v48  ;;  %8117 = vmatprep.mubr.f32.mxu0 %v2676_v48  ;;  %8455 = vmatpush3.bf16.msra.mxu0 %v8452_v38  ;;  %v4968_v38 = vld [vmem:[%s10455_s3 + $0x50] sm:$0xff] }
 0x18c   : > { %8457 = vmatprep.subr.bf16.mxu0 %v8456_v47  ;;  %v8304_v41 = vpack.c.bf16 %v4969_v40, %v4968_v38  ;;  %v6781_v38 = vld [vmem:[%s10455_s3 + $0x3a8] sm:$0xff] }
 0x18e   : > { %8118 = vmatmul.mubr.f32.gmra.mrb[22].mxu0 %v2677_v46  ;;  %v6696_v46 = vld [vmem:[%s10455_s3 + $0x100] sm:$0xff] }
 0x18f   : > { %8459 = vmatpush3.bf16.msra.mxu0 %v8456_v47  ;;  %v6697_v47 = vld [vmem:[%s10455_s3 + $0x108] sm:$0xff] }
 0x190   : > { %8461 = vmatprep.subr.bf16.mxu0 %v8460_v51  ;;  %v8316_v49 = vpack.c.bf16 %v6697_v47, %v6696_v46  ;;  %v8328_v46 = vpack.c.bf16 %v6703_v12, %v6702_v42  ;;  %v6704_v47 = vld [vmem:[%s10455_s3 + $0x140] sm:$0xff]  ;;  %v6714_v12 = vld [vmem:[%s10455_s3 + $0x190] sm:$0xff] }
 0x193   : > { %8463 = vmatpush3.bf16.msra.mxu0 %v8460_v51 }
 0x194   : > { %8465 = vmatprep.subr.bf16.mxu0 %v8464_v54 }
 0x197   : > { %8467 = vmatpush3.bf16.msra.mxu0 %v8464_v54 }
 0x198   : > { %8469 = vmatprep.subr.bf16.mxu0 %v8468_v16 }
 0x19b   : > { %8471 = vmatpush3.bf16.msra.mxu0 %v8468_v16 }
 0x19c   : > { %8473 = vmatprep.subr.bf16.mxu0 %v8472_v58 }
 0x19f   : > { %8475 = vmatpush3.bf16.msra.mxu0 %v8472_v58 }
 0x1a0   : > { %8477 = vmatprep.subr.bf16.mxu0 %v10085_v61 }
 0x1e9   : > { %v7720_v62 = vpop.f32.mrb[8].mxu0 }
 0x1ea   : > { %v10089_v63 = vadd.f32 %v7720_v62, %v9935_v6  ;;  %v3730_v3 = vpop.f32.mrb[9].mxu0 }
 0x1eb   : > { %v10098_v1 = vadd.f32 %v9935_v6, %v3730_v3  ;;  %v6698_v3 = vld [vmem:[%s10455_s3 + $0x110] sm:$0xff] }
 0x1ec   : > { %v3786_v20 = vmax.f32 %v10089_v63, 0.0  ;;  %v8320_v13 = vpack.c.bf16 %v6699_v4, %v6698_v3  ;;  %v6787_v3 = vld [vmem:[%s10455_s3 + $0x3d8] sm:$0xff]  ;;  %v5210_v4 = vld [vmem:[#allocation2 + $0x1] sm:$0xff]  ;;  %v6798_v63 = vld [vmem:[%s10455_s3 + $0x430] sm:$0xff] }
 0x1ed   : > { %v3785_v44 = vmax.f32 %v10098_v1, 0.0  ;;  %v7723_v2 = vpop.f32.mrb[10].mxu0  ;;  %v6789_v1 = vld [vmem:[%s10455_s3 + $0x3e8] sm:$0xff] }
 0x1ee   : > { %v10103_v8 = vadd.f32 %v7723_v2, %v9935_v6  ;;  %v3740_v11 = vpop.f32.mrb[11].mxu0 }
 0x1ef   : > { %v10112_v5 = vadd.f32 %v9935_v6, %v3740_v11  ;;  %7889 = vmatmul.mubr.f32.vlgmr.msra.gmra.mrb[24].mxu1 %v3785_v44 }
 0x1f0   : > { %v3788_v18 = vmax.f32 %v10103_v8, 0.0  ;;  %8287 = vmatpush3.bf16.msra.mxu1 %v10020_v19  ;;  %7891 = vmatprep.mubr.f32.mxu1 %v3786_v20  ;;  %v4965_v19 = vld [vmem:[%s10455_s3 + $0x38] sm:$0xff]  ;;  %v6800_v8 = vld [vmem:[%s10455_s3 + $0x440] sm:$0xff] }
 0x1f1   : > { %v3787_v21 = vmax.f32 %v10112_v5, 0.0  ;;  %v7726_v22 = vpop.f32.mrb[12].mxu0  ;;  %8289 = vmatprep.subr.bf16.mxu1 %v8288_v39  ;;  %v8296_v31 = vpack.c.bf16 %v4965_v19, %v4964_v25 }
 0x1f2   : > { %v10122_v24 = vadd.f32 %v7726_v22, %v9935_v6  ;;  %v3750_v29 = vpop.f32.mrb[13].mxu0  ;;  %v6779_v22 = vld [vmem:[%s10455_s3 + $0x398] sm:$0xff] }
 0x1f3   : > { %v10131_v26 = vadd.f32 %v9935_v6, %v3750_v29  ;;  %7892 = vmatmul.mubr.f32.gmra.mrb[26].mxu1 %v3787_v21  ;;  %v8480_v33 = vpack.c.bf16 %v6779_v22, %v6778_v15  ;;  %v6788_v22 = vld [vmem:[%s10455_s3 + $0x3e0] sm:$0xff] }
 0x1f4   : > { %v3790_v27 = vmax.f32 %v10122_v24, 0.0  ;;  %8291 = vmatpush3.bf16.msra.mxu1 %v8288_v39  ;;  %7894 = vmatprep.mubr.f32.mxu1 %v3788_v18 }
 0x1f5   : > { %v3789_v28 = vmax.f32 %v10131_v26, 0.0  ;;  %v7729_v30 = vpop.f32.mrb[14].mxu0  ;;  %8293 = vmatprep.subr.bf16.mxu1 %v8292_v17 }
 0x1f6   : > { %v10140_v7 = vadd.f32 %v7729_v30, %v9935_v6  ;;  %v3760_v10 = vpop.f32.mrb[15].mxu0 }
 0x1f7   : > { %v10149_v34 = vadd.f32 %v9935_v6, %v3760_v10  ;;  %7895 = vmatmul.mubr.f32.gmra.mrb[28].mxu1 %v3789_v28  ;;  %v6701_v10 = vld [vmem:[%s10455_s3 + $0x128] sm:$0xff] }
 0x1f8   : > { %v3792_v35 = vmax.f32 %v10140_v7, 0.0  ;;  %8295 = vmatpush3.bf16.msra.mxu1 %v8292_v17  ;;  %7897 = vmatprep.mubr.f32.mxu1 %v3790_v27  ;;  %v6804_v7 = vld [vmem:[%s10455_s3 + $0x460] sm:$0xff] }
 0x1f9   : > { %v3791_v36 = vmax.f32 %v10149_v34, 0.0  ;;  %8297 = vmatprep.subr.bf16.mxu1 %v8296_v31  ;;  %v6803_v34 = vld [vmem:[%s10455_s3 + $0x458] sm:$0xff] }
 0x1fb   : > { %7898 = vmatmul.mubr.f32.gmra.mrb[30].mxu1 %v3791_v36 }
 0x1fc   : > { %8299 = vmatpush3.bf16.msra.mxu1 %v8296_v31  ;;  %7932 = vmatprep.mubr.f32.mxu1 %v8878_v9  ;;  %v4973_v9 = vld [vmem:[%s10455_s3 + $0x78] sm:$0xff]  ;;  %v6700_v31 = vld [vmem:[%s10455_s3 + $0x120] sm:$0xff] }
 0x1fd   : > { %8301 = vmatprep.subr.bf16.mxu1 %v8300_v37  ;;  %v8312_v45 = vpack.c.bf16 %v4973_v9, %v4972_v23  ;;  %v6783_v9 = vld [vmem:[%s10455_s3 + $0x3b8] sm:$0xff] }
 0x200   : > { %8303 = vmatpush3.bf16.msra.mxu1 %v8300_v37 }
 0x201   : > { %8305 = vmatprep.subr.bf16.mxu1 %v8304_v41 }
 0x204   : > { %8307 = vmatpush3.bf16.msra.mxu1 %v8304_v41  ;;  %v8324_v41 = vpack.c.bf16 %v6701_v10, %v6700_v31  ;;  %v6791_v31 = vld [vmem:[%s10455_s3 + $0x3f8] sm:$0xff] }
 0x205   : > { %8309 = vmatprep.subr.bf16.mxu1 %v8308_v43 }
 0x208   : > { %8311 = vmatpush3.bf16.msra.mxu1 %v8308_v43 }
 0x209   : > { %v7846_v48 = vpop.f32.mrb[16].mxu1  ;;  %8313 = vmatprep.subr.bf16.mxu1 %v8312_v45 }
 0x20a   : > { %v4827_v50 = vadd.f32 %v7846_v48, %v9935_v6  ;;  %v4779_v51 = vpop.f32.mrb[17].mxu1  ;;  %v6705_v48 = vld [vmem:[%s10455_s3 + $0x148] sm:$0xff] }
 0x20b   : > { %v4826_v52 = vadd.f32 %v9935_v6, %v4779_v51  ;;  %v6784_v51 = vld [vmem:[%s10455_s3 + $0x3c0] sm:$0xff] }
 0x20c   : > { %v10186_v53 = vmax.f32 %v4827_v50, 0.0  ;;  %8315 = vmatpush3.bf16.msra.mxu1 %v8312_v45 }
 0x20d   : > { %v10188_v54 = vmax.f32 %v4826_v52, 0.0  ;;  %v7849_v55 = vpop.f32.mrb[18].mxu1  ;;  %8317 = vmatprep.subr.bf16.mxu1 %v8316_v49  ;;  %v6785_v52 = vld [vmem:[%s10455_s3 + $0x3c8] sm:$0xff] }
 0x20e   : > { %4916 = vst [vmem:[#allocation2 + $0x21] sm:$0xff] %v10186_v53  ;;  %v4829_v14 = vadd.f32 %v7849_v55, %v9935_v6  ;;  %v4789_v16 = vpop.f32.mrb[19].mxu1  ;;  %v8332_v55 = vpack.c.bf16 %v6705_v48, %v6704_v47  ;;  %v6717_v47 = vld [vmem:[%s10455_s3 + $0x1a8] sm:$0xff] }
 0x20f   : > { %4915 = vst [vmem:[#allocation2 + $0x11] sm:$0xff] %v10188_v54  ;;  %v4828_v56 = vadd.f32 %v9935_v6, %v4789_v16  ;;  %v6706_v16 = vld [vmem:[%s10455_s3 + $0x150] sm:$0xff] }
 0x210   : > { %v10194_v57 = vmax.f32 %v4829_v14, 0.0 }
 0x211   : > { %v10196_v58 = vmax.f32 %v4828_v56, 0.0  ;;  %v7852_v59 = vpop.f32.mrb[20].mxu1  ;;  %v6707_v56 = vld [vmem:[%s10455_s3 + $0x158] sm:$0xff] }
 0x212   : > { %4918 = vst [vmem:[#allocation2 + $0x41] sm:$0xff] %v10194_v57  ;;  %v4831_v60 = vadd.f32 %v7852_v59, %v9935_v6  ;;  %v4799_v62 = vpop.f32.mrb[21].mxu1  ;;  %v8492_v59 = vpack.c.bf16 %v6785_v52, %v6784_v51  ;;  %v6718_v52 = vld [vmem:[%s10455_s3 + $0x1b0] sm:$0xff] }
 0x213   : > { %4917 = vst [vmem:[#allocation2 + $0x31] sm:$0xff] %v10196_v58  ;;  %v4830_v0 = vadd.f32 %v9935_v6, %v4799_v62 }
 0x214   : > { %v10208_v2 = vmax.f32 %v4831_v60, 0.0  ;;  %v6786_v60 = vld [vmem:[%s10455_s3 + $0x3d0] sm:$0xff] }
 0x215   : > { %v10210_v39 = vmax.f32 %v4830_v0, 0.0  ;;  %v7855_v11 = vpop.f32.mrb[22].mxu1  ;;  %v4952_v30 = vld [vmem:[#allocation2 + $0x20] sm:$0xff]  ;;  %v8336_v0 = vpack.c.bf16 %v6707_v56, %v6706_v16  ;;  %v8496_v15 = vpack.c.bf16 %v6787_v3, %v6786_v60  ;;  %v6721_v16 = vld [vmem:[%s10455_s3 + $0x1c8] sm:$0xff] }
 0x216   : > { %4920 = vst [vmem:[#allocation2 + $0x61] sm:$0xff] %v10208_v2  ;;  %v10220_v17 = vadd.f32 %v7855_v11, %v9935_v6  ;;  %v4809_v29 = vpop.f32.mrb[23].mxu1  ;;  %v4951_v25 = vld [vmem:[#allocation2 + $0x10] sm:$0xff]  ;;  %v6708_v11 = vld [vmem:[%s10455_s3 + $0x160] sm:$0xff]  ;;  %v6725_v3 = vld [vmem:[%s10455_s3 + $0x1e8] sm:$0xff] }
 0x217   : > { %4919 = vst [vmem:[#allocation2 + $0x51] sm:$0xff] %v10210_v39  ;;  %v4832_v19 = vadd.f32 %v9935_v6, %v4809_v29  ;;  %7933 = vmatmul.mubr.f32.vlgmr.msra.gmra.mrb[24].mxu1 %v4951_v25  ;;  %8152 = vmatprep.mubr.f32.mxu0 %v4951_v25  ;;  %v6780_v6 = vld [vmem:[%s10455_s3 + $0x3a0] sm:$0xff]  ;;  %v6710_v29 = vld [vmem:[%s10455_s3 + $0x170] sm:$0xff]  ;;  %v6711_v25 = vld [vmem:[%s10455_s3 + $0x178] sm:$0xff] }
 0x218   : > { %v4841_v32 = vmax.f32 %v10220_v17, 0.0  ;;  %8319 = vmatpush3.bf16.msra.mxu1 %v8316_v49  ;;  %7935 = vmatprep.mubr.f32.mxu1 %v4952_v30  ;;  %v8484_v23 = vpack.c.bf16 %v6781_v38, %v6780_v6  ;;  %v8344_v10 = vpack.c.bf16 %v6711_v25, %v6710_v29  ;;  %v6713_v6 = vld [vmem:[%s10455_s3 + $0x188] sm:$0xff]  ;;  %v5348_v60 = vld [vmem:[#allocation2 + $0x120] sm:$0xff]  ;;  %v5349_v29 = vld [vmem:[#allocation2 + $0x130] sm:$0xff] }
 0x219   : > { %v10231_v37 = vmax.f32 %v4832_v19, 0.0  ;;  %8153 = vmatmul.mubr.f32.vlgmr.msra.gmra.mrb[16].mxu0 %v4952_v30  ;;  %8321 = vmatprep.subr.bf16.mxu1 %v8320_v13  ;;  %v4954_v43 = vld [vmem:[#allocation2 + $0x40] sm:$0xff]  ;;  %v8500_v19 = vpack.c.bf16 %v6789_v1, %v6788_v22  ;;  %v6790_v30 = vld [vmem:[%s10455_s3 + $0x3f0] sm:$0xff]  ;;  %v6807_v22 = vld [vmem:[%s10455_s3 + $0x478] sm:$0xff] }
 0x21a   : > { %4922 = vst [vmem:[#allocation2 + $0x81] sm:$0xff] %v4841_v32  ;;  %8479 = vmatpush3.bf16.msra.mxu0 %v10085_v61  ;;  %v4953_v40 = vld [vmem:[#allocation2 + $0x30] sm:$0xff]  ;;  %v8504_v38 = vpack.c.bf16 %v6791_v31, %v6790_v30  ;;  %v5350_v25 = vld [vmem:[#allocation2 + $0x140] sm:$0xff] }
 0x21b   : > { %4921 = vst [vmem:[#allocation2 + $0x71] sm:$0xff] %v10231_v37  ;;  %7936 = vmatmul.mubr.f32.gmra.mrb[26].mxu1 %v4953_v40  ;;  %8155 = vmatprep.mubr.f32.mxu0 %v4953_v40  ;;  %v6782_v61 = vld [vmem:[%s10455_s3 + $0x3b0] sm:$0xff]  ;;  %v6792_v40 = vld [vmem:[%s10455_s3 + $0x400] sm:$0xff] }
 0x21c   : > { %8323 = vmatpush3.bf16.msra.mxu1 %v8320_v13  ;;  %8481 = vmatprep.subr.bf16.mxu0 %v8480_v33  ;;  %v8488_v50 = vpack.c.bf16 %v6783_v9, %v6782_v61  ;;  %v6709_v13 = vld [vmem:[%s10455_s3 + $0x168] sm:$0xff]  ;;  %v6794_v61 = vld [vmem:[%s10455_s3 + $0x410] sm:$0xff]  ;;  %v6795_v9 = vld [vmem:[%s10455_s3 + $0x418] sm:$0xff] }
 0x21d   : > { %7938 = vmatprep.mubr.f32.mxu1 %v4954_v43  ;;  %8156 = vmatmul.mubr.f32.gmra.mrb[18].mxu0 %v4954_v43  ;;  %v4956_v49 = vld [vmem:[#allocation2 + $0x60] sm:$0xff]  ;;  %v6715_v43 = vld [vmem:[%s10455_s3 + $0x198] sm:$0xff]  ;;  %v8512_v48 = vpack.c.bf16 %v6795_v9, %v6794_v61  ;;  %v5353_v31 = vld [vmem:[#allocation2 + $0x170] sm:$0xff] }
 0x21e   : > { %8483 = vmatpush3.bf16.msra.mxu0 %v8480_v33  ;;  %8325 = vmatprep.subr.bf16.mxu1 %v8324_v41  ;;  %v4955_v45 = vld [vmem:[#allocation2 + $0x50] sm:$0xff]  ;;  %v6712_v33 = vld [vmem:[%s10455_s3 + $0x180] sm:$0xff] }
 0x21f   : > { %7939 = vmatmul.mubr.f32.gmra.mrb[28].mxu1 %v4955_v45  ;;  %8158 = vmatprep.mubr.f32.mxu0 %v4955_v45  ;;  %v8348_v42 = vpack.c.bf16 %v6713_v6, %v6712_v33  ;;  %v8352_v45 = vpack.c.bf16 %v6715_v43, %v6714_v12  ;;  %v5352_v30 = vld [vmem:[#allocation2 + $0x160] sm:$0xff] }
 0x220   : > { %8327 = vmatpush3.bf16.msra.mxu1 %v8324_v41  ;;  %8485 = vmatprep.subr.bf16.mxu0 %v8484_v23  ;;  %v6793_v41 = vld [vmem:[%s10455_s3 + $0x408] sm:$0xff] }
 0x221   : > { %7941 = vmatprep.mubr.f32.mxu1 %v4956_v49  ;;  %8159 = vmatmul.mubr.f32.gmra.mrb[20].mxu0 %v4956_v49  ;;  %v5769_v62 = vld [vmem:[#allocation2 + $0x80] sm:$0xff] }
 0x222   : > { %8487 = vmatpush3.bf16.msra.mxu0 %v8484_v23  ;;  %8329 = vmatprep.subr.bf16.mxu1 %v8328_v46  ;;  %v4957_v14 = vld [vmem:[#allocation2 + $0x70] sm:$0xff]  ;;  %v8508_v23 = vpack.c.bf16 %v6793_v41, %v6792_v40  ;;  %v6796_v49 = vld [vmem:[%s10455_s3 + $0x420] sm:$0xff] }
 0x223   : > { %7942 = vmatmul.mubr.f32.gmra.mrb[30].mxu1 %v4957_v14  ;;  %8161 = vmatprep.mubr.f32.mxu0 %v4957_v14 }
 0x224   : > { %8331 = vmatpush3.bf16.msra.mxu1 %v8328_v46  ;;  %8489 = vmatprep.subr.bf16.mxu0 %v8488_v50  ;;  %v6716_v46 = vld [vmem:[%s10455_s3 + $0x1a0] sm:$0xff] }
 0x225   : > { %8162 = vmatmul.mubr.f32.gmra.mrb[22].mxu0 %v5769_v62  ;;  %8333 = vmatprep.subr.bf16.mxu1 %v8332_v55  ;;  %v8356_v51 = vpack.c.bf16 %v6717_v47, %v6716_v46  ;;  %v6724_v62 = vld [vmem:[%s10455_s3 + $0x1e0] sm:$0xff] }
 0x226   : > { %8491 = vmatpush3.bf16.msra.mxu0 %v8488_v50  ;;  %8196 = vmatprep.mubr.f32.mxu0 %v3785_v44  ;;  %v8340_v44 = vpack.c.bf16 %v6709_v13, %v6708_v11  ;;  %v6797_v50 = vld [vmem:[%s10455_s3 + $0x428] sm:$0xff]  ;;  %v6727_v11 = vld [vmem:[%s10455_s3 + $0x1f8] sm:$0xff] }
 0x227   : > { %8493 = vmatprep.subr.bf16.mxu0 %v8492_v59  ;;  %7976 = vmatprep.mubr.f32.mxu1 %v5210_v4  ;;  %v8516_v14 = vpack.c.bf16 %v6797_v50, %v6796_v49 }
 0x228   : > { %8335 = vmatpush3.bf16.msra.mxu1 %v8332_v55  ;;  %v6719_v55 = vld [vmem:[%s10455_s3 + $0x1b8] sm:$0xff] }
 0x229   : > { %8337 = vmatprep.subr.bf16.mxu1 %v8336_v0  ;;  %v8360_v5 = vpack.c.bf16 %v6719_v55, %v6718_v52 }
 0x22a   : > { %8495 = vmatpush3.bf16.msra.mxu0 %v8492_v59  ;;  %v6723_v59 = vld [vmem:[%s10455_s3 + $0x1d8] sm:$0xff] }
 0x22b   : > { %8497 = vmatprep.subr.bf16.mxu0 %v8496_v15 }
 0x22c   : > { %8339 = vmatpush3.bf16.msra.mxu1 %v8336_v0  ;;  %v6726_v0 = vld [vmem:[%s10455_s3 + $0x1f0] sm:$0xff] }
 0x22d   : > { %8341 = vmatprep.subr.bf16.mxu1 %v8340_v44  ;;  %v8376_v1 = vpack.c.bf16 %v6727_v11, %v6726_v0 }
 0x22e   : > { %8499 = vmatpush3.bf16.msra.mxu0 %v8496_v15  ;;  %v6806_v15 = vld [vmem:[%s10455_s3 + $0x470] sm:$0xff] }
 0x22f   : > { %8501 = vmatprep.subr.bf16.mxu0 %v8500_v19 }
 0x230   : > { %8343 = vmatpush3.bf16.msra.mxu1 %v8340_v44  ;;  %v8536_v44 = vpack.c.bf16 %v6807_v22, %v6806_v15 }
 0x231   : > { %8345 = vmatprep.subr.bf16.mxu1 %v8344_v10 }
 0x232   : > { %8503 = vmatpush3.bf16.msra.mxu0 %v8500_v19  ;;  %v5351_v19 = vld [vmem:[#allocation2 + $0x150] sm:$0xff] }
 0x233   : > { %8505 = vmatprep.subr.bf16.mxu0 %v8504_v38 }
 0x234   : > { %8347 = vmatpush3.bf16.msra.mxu1 %v8344_v10  ;;  %v5354_v10 = vld [vmem:[#allocation2 + $0x180] sm:$0xff] }
 0x235   : > { %8349 = vmatprep.subr.bf16.mxu1 %v8348_v42 }
 0x236   : > { %8507 = vmatpush3.bf16.msra.mxu0 %v8504_v38 }
 0x237   : > { %7977 = vmatmul.mubr.f32.vlgmr.msra.gmra.mrb[24].mxu1 %v10188_v54  ;;  %8509 = vmatprep.subr.bf16.mxu0 %v8508_v23 }
 0x238   : > { %7979 = vmatprep.mubr.f32.mxu1 %v10186_v53  ;;  %8351 = vmatpush3.bf16.msra.mxu1 %v8348_v42 }
 0x239   : > { %8197 = vmatmul.mubr.f32.vlgmr.msra.gmra.mrb[16].mxu0 %v3786_v20  ;;  %8353 = vmatprep.subr.bf16.mxu1 %v8352_v45  ;;  %v6799_v20 = vld [vmem:[%s10455_s3 + $0x438] sm:$0xff] }
 0x23a   : > { %8199 = vmatprep.mubr.f32.mxu0 %v3787_v21  ;;  %8511 = vmatpush3.bf16.msra.mxu0 %v8508_v23  ;;  %v6720_v21 = vld [vmem:[%s10455_s3 + $0x1c0] sm:$0xff]  ;;  %v8520_v56 = vpack.c.bf16 %v6799_v20, %v6798_v63 }
 0x23b   : > { %7980 = vmatmul.mubr.f32.gmra.mrb[26].mxu1 %v10196_v58  ;;  %8513 = vmatprep.subr.bf16.mxu0 %v8512_v48  ;;  %v8364_v26 = vpack.c.bf16 %v6721_v16, %v6720_v21 }
 0x23c   : > { %7982 = vmatprep.mubr.f32.mxu1 %v10194_v57  ;;  %8355 = vmatpush3.bf16.msra.mxu1 %v8352_v45 }
 0x23d   : > { %8200 = vmatmul.mubr.f32.gmra.mrb[18].mxu0 %v3788_v18  ;;  %8357 = vmatprep.subr.bf16.mxu1 %v8356_v51  ;;  %v6801_v18 = vld [vmem:[%s10455_s3 + $0x448] sm:$0xff] }
 0x23e   : > { %8202 = vmatprep.mubr.f32.mxu0 %v3789_v28  ;;  %8515 = vmatpush3.bf16.msra.mxu0 %v8512_v48  ;;  %v6722_v28 = vld [vmem:[%s10455_s3 + $0x1d0] sm:$0xff]  ;;  %v8524_v24 = vpack.c.bf16 %v6801_v18, %v6800_v8 }
 0x23f   : > { %7983 = vmatmul.mubr.f32.gmra.mrb[28].mxu1 %v10210_v39  ;;  %8517 = vmatprep.subr.bf16.mxu0 %v8516_v14 }
 0x240   : > { %7985 = vmatprep.mubr.f32.mxu1 %v10208_v2  ;;  %8359 = vmatpush3.bf16.msra.mxu1 %v8356_v51 }
 0x241   : > { %8203 = vmatmul.mubr.f32.gmra.mrb[20].mxu0 %v3790_v27  ;;  %8361 = vmatprep.subr.bf16.mxu1 %v8360_v5  ;;  %v6802_v27 = vld [vmem:[%s10455_s3 + $0x450] sm:$0xff] }
 0x242   : > { %8205 = vmatprep.mubr.f32.mxu0 %v3791_v36  ;;  %8519 = vmatpush3.bf16.msra.mxu0 %v8516_v14  ;;  %v8368_v36 = vpack.c.bf16 %v6723_v59, %v6722_v28  ;;  %v8528_v4 = vpack.c.bf16 %v6803_v34, %v6802_v27 }
 0x243   : > { %7986 = vmatmul.mubr.f32.gmra.mrb[30].mxu1 %v10231_v37  ;;  %8521 = vmatprep.subr.bf16.mxu0 %v8520_v56 }
 0x244   : > { %8363 = vmatpush3.bf16.msra.mxu1 %v8360_v5  ;;  %8020 = vmatprep.mubr.f32.mxu1 %v5348_v60 }
 0x245   : > { %8206 = vmatmul.mubr.f32.gmra.mrb[22].mxu0 %v3792_v35  ;;  %8365 = vmatprep.subr.bf16.mxu1 %v8364_v26  ;;  %v6805_v35 = vld [vmem:[%s10455_s3 + $0x468] sm:$0xff] }
 0x246   : > { %8523 = vmatpush3.bf16.msra.mxu0 %v8520_v56  ;;  %8240 = vmatprep.mubr.f32.mxu0 %v10188_v54  ;;  %v8372_v54 = vpack.c.bf16 %v6725_v3, %v6724_v62  ;;  %v8532_v13 = vpack.c.bf16 %v6805_v35, %v6804_v7 }
 0x247   : > { %8525 = vmatprep.subr.bf16.mxu0 %v8524_v24 }
 0x248   : > { %8367 = vmatpush3.bf16.msra.mxu1 %v8364_v26 }
 0x249   : > { %8369 = vmatprep.subr.bf16.mxu1 %v8368_v36 }
 0x24a   : > { %8527 = vmatpush3.bf16.msra.mxu0 %v8524_v24 }
 0x24b   : > { %8529 = vmatprep.subr.bf16.mxu0 %v8528_v4 }
 0x24c   : > { %8371 = vmatpush3.bf16.msra.mxu1 %v8368_v36 }
 0x24d   : > { %8373 = vmatprep.subr.bf16.mxu1 %v8372_v54 }
 0x24e   : > { %8531 = vmatpush3.bf16.msra.mxu0 %v8528_v4 }
 0x24f   : > { %8533 = vmatprep.subr.bf16.mxu0 %v8532_v13 }
 0x250   : > { %8375 = vmatpush3.bf16.msra.mxu1 %v8372_v54 }
 0x251   : > { %8377 = vmatprep.subr.bf16.mxu1 %v8376_v1 }
 0x252   : > { %8535 = vmatpush3.bf16.msra.mxu0 %v8532_v13 }
 0x253   : > { %8537 = vmatprep.subr.bf16.mxu0 %v8536_v44 }
 0x254   : > { %8379 = vmatpush3.bf16.msra.mxu1 %v8376_v1 }
 0x256   : > { %8539 = vmatpush3.bf16.msra.mxu0 %v8536_v44 }
 0x257   : > { %8021 = vmatmul.mubr.f32.vlgmr.msra.gmra.mrb[24].mxu1 %v5349_v29 }
 0x258   : > { %8023 = vmatprep.mubr.f32.mxu1 %v5350_v25 }
 0x259   : > { %8241 = vmatmul.mubr.f32.vlgmr.msra.gmra.mrb[16].mxu0 %v10186_v53  ;;  %v5355_v53 = vld [vmem:[#allocation2 + $0x190] sm:$0xff] }
 0x25a   : > { %8243 = vmatprep.mubr.f32.mxu0 %v10196_v58 }
 0x25b   : > { %8024 = vmatmul.mubr.f32.gmra.mrb[26].mxu1 %v5351_v19 }
 0x25c   : > { %8026 = vmatprep.mubr.f32.mxu1 %v5352_v30 }
 0x25d   : > { %8244 = vmatmul.mubr.f32.gmra.mrb[18].mxu0 %v10194_v57 }
 0x25e   : > { %8246 = vmatprep.mubr.f32.mxu0 %v10210_v39  ;;  %v6808_v39 = vld [vmem:[%s10456_s4] ss:$0 sm:$0xff] }
 0x25f   : > { %8027 = vmatmul.mubr.f32.gmra.mrb[28].mxu1 %v5353_v31 }
 0x260   : > { %8029 = vmatprep.mubr.f32.mxu1 %v5354_v10 }
 0x261   : > { %8247 = vmatmul.mubr.f32.gmra.mrb[20].mxu0 %v10208_v2 }
 0x262   : > { %8249 = vmatprep.mubr.f32.mxu0 %v10231_v37 }
 0x263   : > { %8030 = vmatmul.mubr.f32.gmra.mrb[30].mxu1 %v5355_v53 }
 0x265   : > { %8250 = vmatmul.mubr.f32.gmra.mrb[22].mxu0 %v4841_v32 }
 0x32a   : > { %v8022_v58 = vpop.f32.mrb[24].mxu1 }
 0x32b   : > { %v5439_v33 = vpop.f32.mrb[25].mxu1 }
 0x32c   : > { %v8242_v57 = vpop.f32.mrb[16].mxu0 }
 0x32d   : > { %v8548_v6 = vadd.f32 %v8242_v57, %v8022_v58  ;;  %v6129_v38 = vpop.f32.mrb[17].mxu0 }
 0x32e   : > { %v8549_v2 = vadd.f32 %v6129_v38, %v5439_v33  ;;  %v8025_v40 = vpop.f32.mrb[26].mxu1 }
 0x32f   : > { %v6184_v37 = vadd.f32 %v8548_v6, %v6808_v39  ;;  %v5449_v41 = vpop.f32.mrb[27].mxu1 }
 0x330   : > { %v6183_v17 = vadd.f32 %v8549_v2, %v6808_v39  ;;  %v8245_v32 = vpop.f32.mrb[18].mxu0 }
 0x331   : > { %v6192_v42 = vmax.f32 %v6184_v37, 0.0  ;;  %v8550_v12 = vadd.f32 %v8245_v32, %v8025_v40  ;;  %v6139_v43 = vpop.f32.mrb[19].mxu0 }
 0x332   : > { %v6191_v23 = vmax.f32 %v6183_v17, 0.0  ;;  %v8551_v61 = vadd.f32 %v6139_v43, %v5449_v41  ;;  %v8028_v9 = vpop.f32.mrb[28].mxu1 }
 0x333   : > { %6200 = vst [vmem:[%s10439_s16 + $0x8] sm:$0xff] %v6192_v42  ;;  %v6186_v45 = vadd.f32 %v8550_v12, %v6808_v39  ;;  %v5459_v46 = vpop.f32.mrb[29].mxu1 }
 0x334   : > { %6199 = vst [vmem:[%s10439_s16] sm:$0xff] %v6191_v23  ;;  %v6185_v47 = vadd.f32 %v8551_v61, %v6808_v39  ;;  %v8248_v48 = vpop.f32.mrb[20].mxu0 }
 0x335   : > { %v6194_v49 = vmax.f32 %v6186_v45, 0.0  ;;  %v8552_v50 = vadd.f32 %v8248_v48, %v8028_v9  ;;  %v6149_v51 = vpop.f32.mrb[21].mxu0 }
 0x336   : > { %v6193_v52 = vmax.f32 %v6185_v47, 0.0  ;;  %v8553_v55 = vadd.f32 %v6149_v51, %v5459_v46  ;;  %v8031_v14 = vpop.f32.mrb[30].mxu1 }
 0x337   : > { %6202 = vst [vmem:[%s10439_s16 + $0x18] sm:$0xff] %v6194_v49  ;;  %v6188_v63 = vadd.f32 %v8552_v50, %v6808_v39  ;;  %v5469_v20 = vpop.f32.mrb[31].mxu1 }
 0x338   : > { %6201 = vst [vmem:[%s10439_s16 + $0x10] sm:$0xff] %v6193_v52  ;;  %v6187_v5 = vadd.f32 %v8553_v55, %v6808_v39  ;;  %v8251_v21 = vpop.f32.mrb[22].mxu0 }
 0x339   : > { %v6196_v16 = vmax.f32 %v6188_v63, 0.0  ;;  %v8554_v56 = vadd.f32 %v8251_v21, %v8031_v14  ;;  %v6159_v8 = vpop.f32.mrb[23].mxu0 }
 0x33a   : > { %v6195_v18 = vmax.f32 %v6187_v5, 0.0  ;;  %v8555_v26 = vadd.f32 %v6159_v8, %v5469_v20 }
 0x33b   : > { %6204 = vst [vmem:[%s10439_s16 + $0x28] sm:$0xff] %v6196_v16  ;;  %v6190_v28 = vadd.f32 %v8554_v56, %v6808_v39 }
 0x33c   : > { %6203 = vst [vmem:[%s10439_s16 + $0x20] sm:$0xff] %v6195_v18  ;;  %v6189_v59 = vadd.f32 %v8555_v26, %v6808_v39 }
 0x33d   : > { %v6198_v60 = vmax.f32 %v6190_v28, 0.0 }
 0x33e   : > { %v6197_v24 = vmax.f32 %v6189_v59, 0.0 }
 0x33f   : > { %6206 = vst [vmem:[%s10439_s16 + $0x38] sm:$0xff] %v6198_v60 }
 0x340   : > { %6205 = vst [vmem:[%s10439_s16 + $0x30] sm:$0xff] %v6197_v24 }
 0x341 PF: > { %s15_s18 = sadd.s32 1, %s8876_s18  }
 0x342   : > { %p12_p5 = scmp.ge.s32.totalorder %s15_s18, 4  }
 0x344   :  { %14 = sbr.rel (!%p12_p5) target bundleno = 1 (0x1), region = 98 }

</bundles_post_ra>
